<compile_context>
chip_gen: v5e
topology: v5e:2x2
jax: 0.10.0
libtpu: 0.0.40
codegen_flags: <defaults>
</compile_context>

<pallas_src>
import numpy as np
import jax
import jax.numpy as jnp
from jax import lax
from jax.experimental import pallas as pl
from jax.experimental.pallas import tpu as pltpu

# ----------------------------- sizes --------------------------------------
B, LQ, LD = 2, 8, 16          # batch, question len, document len
V, E, H = 50, 32, 32          # vocab, embedding dim, rnn hidden size
DOC_IN = 2 * E                # doc rnn input (emb ++ qemb-match)
DOC_HID = 2 * H               # bidirectional doc hidden
Q_HID = 2 * H                 # bidirectional question hidden
Q_REP = Q_HID + DOC_HID       # span_dependency question rep
MAX_ANS_LEN = 15

# Finite "minus infinity" for masking: a fully padded row yields a uniform
# softmax instead of NaN (deliberate, documented semantic difference); PAD
# positions in the log-softmax outputs are ~-1e30 rather than -inf.
NEG = -1e30


def _full_spec(shape):
    nd = len(shape)
    return pl.BlockSpec(shape, lambda *_: (0,) * nd)


# --------------------------- fused DrQA kernel -----------------------------
def _drqa_kernel(xd_ref, xq_ref, xd_mask_ref, xq_mask_ref,
                 qemb_wt_ref, qemb_b_ref,
                 d_wih_ref, d_b_ref, q_wih_ref, q_b_ref, whh_ref,
                 sa_w_ref, sa_b_ref,
                 start_wt_ref, start_b_ref, end_wt_ref, end_b_ref,
                 start_ref, end_ref):
    f32 = jnp.float32

    def rev_rows(x):
        # exact time reversal via static row slices (no lax.rev, no matmul)
        n = x.shape[0]
        return jnp.concatenate([x[n - 1 - i:n - i, :] for i in range(n)], axis=0)

    def masked_softmax(s, pad_mask):
        s = jnp.where(pad_mask > 0.5, NEG, s)
        s = s - jnp.max(s, axis=-1, keepdims=True)
        e = jnp.exp(s)
        return e / jnp.sum(e, axis=-1, keepdims=True)

    xd = xd_ref[...]                        # (B*LD, E)
    xq = xq_ref[...]                        # (B*LQ, E)
    xd_mask = xd_mask_ref[...]              # (B, LD), 1.0 == PAD
    xq_mask = xq_mask_ref[...]              # (B, LQ)

    # ---- phase 1: SeqAttnMatch + hoisted BiRNN input projections (batched) --
    qemb_wt = qemb_wt_ref[...]              # (E, E)
    qemb_b = qemb_b_ref[...]                # (1, E)
    xp = jnp.maximum(jnp.dot(xd, qemb_wt, preferred_element_type=f32) + qemb_b, 0.0)
    yp = jnp.maximum(jnp.dot(xq, qemb_wt, preferred_element_type=f32) + qemb_b, 0.0)

    xqw_rows = []
    for b in range(B):
        xp_b = xp[b * LD:(b + 1) * LD]
        yp_b = yp[b * LQ:(b + 1) * LQ]
        sc = lax.dot_general(xp_b, yp_b, (((1,), (1,)), ((), ())),
                             preferred_element_type=f32)               # (LD, LQ)
        alpha = masked_softmax(sc, xq_mask[b:b + 1, :])
        xqw_rows.append(jnp.dot(alpha, xq[b * LQ:(b + 1) * LQ],
                                preferred_element_type=f32))           # (LD, E)
    xqw = jnp.concatenate(xqw_rows, axis=0)                            # (B*LD, E)

    d_wih = d_wih_ref[...]                  # (2E, 2H) packed [wih_f | wih_b]
    d_b = d_b_ref[...]                      # (1, 2H)
    q_wih = q_wih_ref[...]                  # (E, 2H)
    q_b = q_b_ref[...]                      # (1, 2H)
    # drnn_input = [xd | xqw]; the concat is folded into the split weight
    # (the two dots are kept adjacent -> MRB accumulation on v7x).
    zd = (jnp.dot(xd, d_wih[:E, :], preferred_element_type=f32)
          + jnp.dot(xqw, d_wih[E:, :], preferred_element_type=f32) + d_b)  # (B*LD, 2H)
    zq = jnp.dot(xq, q_wih, preferred_element_type=f32) + q_b             # (B*LQ, 2H)

    # pack per-batch fused step inputs: [zd_f(t) | zd_b(L-1-t) | zq_f(t) | zq_b(L-1-t)]
    z_list = []
    for b in range(B):
        zd_b = zd[b * LD:(b + 1) * LD]                                   # (LD, 2H)
        zq_b = zq[b * LQ:(b + 1) * LQ]                                   # (LQ, 2H)
        zd_pk = jnp.concatenate([zd_b[:, :H], rev_rows(zd_b)[:, H:]], axis=1)
        zq_pk = jnp.concatenate([zq_b[:, :H], rev_rows(zq_b)[:, H:]], axis=1)
        zq_pk = jnp.concatenate([zq_pk, jnp.zeros((LD - LQ, 2 * H), f32)], axis=0)
        z_list.append(jnp.concatenate([zd_pk, zq_pk], axis=1))           # (LD, 4H)

    # ---- phase 2: fused, batched bidirectional tanh-RNN (doc + question) ----
    whh = whh_ref[...]                      # (4H, 4H) block-diag
    h = jnp.zeros((B, 4 * H), f32)          # [h_doc_f | h_doc_b | h_q_f | h_q_b]
    hs = []
    # TODO(synk): at realistic lengths replace the full unroll with
    # lax.fori_loop(..., unroll=4..8); at LD=16 full unroll is fine.
    for t in range(LD):
        inp = jnp.concatenate([z_list[b][t:t + 1, :] for b in range(B)], axis=0)
        h = jnp.tanh(inp + jnp.dot(h, whh, preferred_element_type=f32))
        hs.append(h)

    # ---- phase 3: de-interleave hiddens, question merge, start/end attn -----
    sa_w = sa_w_ref[...]                    # (1, 2H)
    sa_b = sa_b_ref[...]                    # (1, 1)
    start_wt = start_wt_ref[...]            # (2H, 2H)
    start_b = start_b_ref[...]              # (1, 2H)
    end_wt = end_wt_ref[...]                # (4H, 2H)
    end_b = end_b_ref[...]                  # (1, 2H)

    start_rows = []
    end_rows = []
    for b in range(B):
        H_b = jnp.concatenate([hs[t][b:b + 1, :] for t in range(LD)], axis=0)  # (LD, 4H)
        H_rev = rev_rows(H_b)
        doc_h = jnp.concatenate([H_b[:, :H], H_rev[:, H:2 * H]], axis=1)       # (LD, 2H)
        q_h = jnp.concatenate([H_b[:LQ, 2 * H:3 * H],
                               H_rev[LD - LQ:, 3 * H:]], axis=1)               # (LQ, 2H)
        md = xd_mask[b:b + 1, :]
        mq = xq_mask[b:b + 1, :]

        # LinearSeqAttn + weighted_avg (question merge) -- all on the MXU
        s_q = lax.dot_general(sa_w, q_h, (((1,), (1,)), ((), ())),
                              preferred_element_type=f32) + sa_b               # (1, LQ)
        alpha_q = masked_softmax(s_q, mq)
        q_hidden = jnp.dot(alpha_q, q_h, preferred_element_type=f32)           # (1, 2H)

        # start BilinearSeqAttn (training mode -> log-softmax)
        wy = jnp.dot(q_hidden, start_wt, preferred_element_type=f32) + start_b
        s_s = lax.dot_general(wy, doc_h, (((1,), (1,)), ((), ())),
                              preferred_element_type=f32)                      # (1, LD)
        s_s = jnp.where(md > 0.5, NEG, s_s)
        s_s = s_s - jnp.max(s_s, axis=-1, keepdims=True)
        e_s = jnp.exp(s_s)
        denom = jnp.sum(e_s, axis=-1, keepdims=True)
        start_rows.append(s_s - jnp.log(denom))
        # softmax(start)-weighted doc summary (span_dependency) -- exact division
        p_s = e_s / denom
        doc_sum = jnp.dot(p_s, doc_h, preferred_element_type=f32)              # (1, 2H)

        # end BilinearSeqAttn with [q_hidden | doc_sum] question rep
        wy2 = (jnp.dot(q_hidden, end_wt[:Q_HID, :], preferred_element_type=f32)
               + jnp.dot(doc_sum, end_wt[Q_HID:, :], preferred_element_type=f32)
               + end_b)
        s_e = lax.dot_general(wy2, doc_h, (((1,), (1,)), ((), ())),
                              preferred_element_type=f32)
        s_e = jnp.where(md > 0.5, NEG, s_e)
        s_e = s_e - jnp.max(s_e, axis=-1, keepdims=True)
        end_rows.append(s_e - jnp.log(jnp.sum(jnp.exp(s_e), axis=-1, keepdims=True)))

    # store each output exactly once
    start_ref[...] = jnp.concatenate(start_rows, axis=0)
    end_ref[...] = jnp.concatenate(end_rows, axis=0)


# -------------------- parameter packing (pure JAX, one-time) ----------------
def _pack_rnn_in(p):
    wih_f, whh_f, bf, wih_b, whh_b, bb = p
    wih = jnp.concatenate([wih_f, wih_b], axis=1)        # (D, 2H)
    bias = jnp.concatenate([bf, bb], axis=1)             # (1, 2H)
    return wih, bias, whh_f, whh_b


def _block_diag(blocks):
    rows = []
    for i, blk in enumerate(blocks):
        row = []
        for j, other in enumerate(blocks):
            row.append(blk if i == j
                       else jnp.zeros((blk.shape[0], other.shape[1]), blk.dtype))
        rows.append(jnp.concatenate(row, axis=1))
    return jnp.concatenate(rows, axis=0)


# ------------------------------- forward -----------------------------------
def extract_spans(start_scores, end_scores):
    """Numeric part of extract_predictions: banded outer product + argmax."""
    p_s = jnp.exp(start_scores)
    p_e = jnp.exp(end_scores)
    L = start_scores.shape[1]
    outer = p_s[:, :, None] * p_e[:, None, :]
    ii = jnp.arange(L)[:, None]
    jj = jnp.arange(L)[None, :]
    band = (jj >= ii) & ((jj - ii) <= (MAX_ANS_LEN - 1))
    outer = jnp.where(band[None], outer, 0.0)
    flat = outer.reshape(outer.shape[0], -1)
    idx = jnp.argmax(flat, axis=1)
    return jnp.stack([idx // L, idx % L], axis=1)


def drqa_forward(params, que_ids, doc_ids, que_len, doc_len):
    f32 = jnp.float32
    # embedding lookup (glue)
    xq_emb = params['embed'][que_ids]                            # (B, Lq, E)
    xd_emb = params['embed'][doc_ids]                            # (B, Ld, E)
    # masks: 1.0 == PAD (dropout rates are 0 / eval => no dropout applied)
    xq_mask = (jnp.arange(LQ)[None, :] >= que_len[:, None]).astype(f32)
    xd_mask = (jnp.arange(LD)[None, :] >= doc_len[:, None]).astype(f32)

    d_wih, d_b, d_whh_f, d_whh_b = _pack_rnn_in(params['doc_rnn'])
    q_wih, q_b, q_whh_f, q_whh_b = _pack_rnn_in(params['q_rnn'])
    # fused recurrent weight: (4H, 4H) = (128, 128) block-diag -> one MXU tile/step
    whh_fused = _block_diag([d_whh_f, d_whh_b, q_whh_f, q_whh_b])

    xd_flat = xd_emb.reshape(B * LD, E)
    xq_flat = xq_emb.reshape(B * LQ, E)

    inputs = (xd_flat, xq_flat, xd_mask, xq_mask,
              params['qemb_wt'], params['qemb_b'],
              d_wih, d_b, q_wih, q_b, whh_fused,
              params['selfattn_w'], params['selfattn_b'],
              params['start_wt'], params['start_b'],
              params['end_wt'], params['end_b'])

    start_scores, end_scores = pl.pallas_call(
        _drqa_kernel,
        out_shape=(jax.ShapeDtypeStruct((B, LD), f32),
                   jax.ShapeDtypeStruct((B, LD), f32)),
        grid_spec=pltpu.PrefetchScalarGridSpec(
            num_scalar_prefetch=0,
            grid=(1,),
            in_specs=[_full_spec(a.shape) for a in inputs],
            out_specs=(_full_spec((B, LD)), _full_spec((B, LD)))),
        compiler_params=pltpu.CompilerParams(
            dimension_semantics=("arbitrary",)),
    )(*inputs)

    spans = extract_spans(start_scores, end_scores)
    # TODO(synk): converting spans to answer text (vocab.itos / raw offsets) is
    # string processing with no Pallas equivalent; numeric spans are returned.
    return start_scores, end_scores, spans


# --------------------------- pure-JAX reference -----------------------------
def ref_forward(params, que_ids, doc_ids, que_len, doc_len):
    emb = params['embed']
    xq = emb[que_ids]; xd = emb[doc_ids]
    xq_mask = (jnp.arange(LQ)[None, :] >= que_len[:, None]).astype(jnp.float32)
    xd_mask = (jnp.arange(LD)[None, :] >= doc_len[:, None]).astype(jnp.float32)

    wt, b = params['qemb_wt'], params['qemb_b']
    xp = jax.nn.relu(xd @ wt + b)
    yp = jax.nn.relu(xq @ wt + b)
    scores = jnp.einsum('ble,bke->blk', xp, yp)
    scores = jnp.where(xq_mask[:, None, :] > 0.5, -jnp.inf, scores)
    alpha = jax.nn.softmax(scores, axis=-1)
    xq_w = jnp.einsum('blk,bke->ble', alpha, xq)
    drnn_in = jnp.concatenate([xd, xq_w], axis=2)

    def birnn_ref(x, p):
        wih_f, whh_f, bf, wih_b, whh_b, bb = p

        def run(xx, wih, whh, bias):
            def step(h, x_t):
                h = jnp.tanh(x_t @ wih + h @ whh + bias)
                return h, h
            h0 = jnp.zeros((xx.shape[1], wih.shape[1]), jnp.float32)
            _, hs = lax.scan(step, h0, xx)
            return hs

        x_t = jnp.transpose(x, (1, 0, 2))
        hf = run(x_t, wih_f, whh_f, bf)
        hb = run(x_t[::-1], wih_b, whh_b, bb)[::-1]
        return jnp.transpose(jnp.concatenate([hf, hb], -1), (1, 0, 2))

    doc_h = birnn_ref(drnn_in, params['doc_rnn'])
    q_h = birnn_ref(xq, params['q_rnn'])

    s = jnp.sum(q_h * params['selfattn_w'], axis=-1) + params['selfattn_b']
    s = jnp.where(xq_mask > 0.5, -jnp.inf, s)
    qa = jax.nn.softmax(s, axis=-1)
    q_hidden = jnp.einsum('bl,bld->bd', qa, q_h)

    def bilinear(x, y, wt, b, mask):
        wy = y @ wt + b
        sc = jnp.einsum('bld,bd->bl', x, wy)
        sc = jnp.where(mask > 0.5, -jnp.inf, sc)
        return jax.nn.log_softmax(sc, axis=-1)

    start = bilinear(doc_h, q_hidden, params['start_wt'], params['start_b'], xd_mask)
    doc_sum = jnp.einsum('bl,bld->bd', jnp.exp(start), doc_h)
    q_hidden2 = jnp.concatenate([q_hidden, doc_sum], axis=1)
    end = bilinear(doc_h, q_hidden2, params['end_wt'], params['end_b'], xd_mask)
    return start, end


# --------------------------------- main -------------------------------------
if __name__ == "__main__":
    ks = jax.random.split(jax.random.PRNGKey(0), 20)

    def w_init(k, shape, fan_in):
        return (jax.random.normal(k, shape, jnp.float32) / np.sqrt(fan_in)).astype(jnp.float32)

    params = {
        'embed': (0.5 * jax.random.normal(ks[0], (V, E), jnp.float32)).astype(jnp.float32),
        'qemb_wt': w_init(ks[1], (E, E), E),
        'qemb_b': 0.01 * jax.random.normal(ks[2], (1, E), jnp.float32),
        'doc_rnn': (w_init(ks[3], (DOC_IN, H), DOC_IN), w_init(ks[4], (H, H), H),
                    0.01 * jax.random.normal(ks[5], (1, H), jnp.float32),
                    w_init(ks[6], (DOC_IN, H), DOC_IN), w_init(ks[7], (H, H), H),
                    0.01 * jax.random.normal(ks[8], (1, H), jnp.float32)),
        'q_rnn': (w_init(ks[9], (E, H), E), w_init(ks[10], (H, H), H),
                  0.01 * jax.random.normal(ks[11], (1, H), jnp.float32),
                  w_init(ks[12], (E, H), E), w_init(ks[13], (H, H), H),
                  0.01 * jax.random.normal(ks[14], (1, H), jnp.float32)),
        'selfattn_w': w_init(ks[15], (1, Q_HID), Q_HID),
        'selfattn_b': jnp.zeros((1, 1), jnp.float32),
        'start_wt': w_init(ks[16], (Q_HID, DOC_HID), Q_HID),
        'start_b': 0.01 * jax.random.normal(ks[17], (1, DOC_HID), jnp.float32),
        'end_wt': w_init(ks[18], (Q_REP, DOC_HID), Q_REP),
        'end_b': 0.01 * jax.random.normal(ks[19], (1, DOC_HID), jnp.float32),
    }

    kq, kd = jax.random.split(jax.random.PRNGKey(1))
    que_ids = jax.random.randint(kq, (B, LQ), 0, V)
    doc_ids = jax.random.randint(kd, (B, LD), 0, V)
    que_len = jnp.array([LQ, 5], dtype=jnp.int32)
    doc_len = jnp.array([LD, 12], dtype=jnp.int32)

    fwd = jax.jit(drqa_forward)
    start_scores, end_scores, spans = fwd(params, que_ids, doc_ids, que_len, doc_len)
    jax.block_until_ready((start_scores, end_scores, spans))

    # correctness check against pure-JAX reference (compare in probability space
    # to avoid comparing -inf vs -1e30 log-probs at PAD positions; tolerance
    # covers MXU default-precision differences between kernel and reference)
    r_start, r_end = ref_forward(params, que_ids, doc_ids, que_len, doc_len)
    np.testing.assert_allclose(np.exp(np.asarray(start_scores)),
                               np.exp(np.asarray(r_start)), atol=5e-3, rtol=5e-3)
    np.testing.assert_allclose(np.exp(np.asarray(end_scores)),
                               np.exp(np.asarray(r_end)), atol=5e-3, rtol=5e-3)

    print("KERNEL_OK")
</pallas_src>

<mosaic_0001>
module attributes {stable_mosaic.version = 11 : i64} {
  func.func @_drqa_kernel(%arg0: i32, %arg1: memref<32x32xf32, #tpu.memory_space<vmem>>, %arg2: memref<16x32xf32, #tpu.memory_space<vmem>>, %arg3: memref<2x16xf32, #tpu.memory_space<vmem>>, %arg4: memref<2x8xf32, #tpu.memory_space<vmem>>, %arg5: memref<32x32xf32, #tpu.memory_space<vmem>>, %arg6: memref<1x32xf32, #tpu.memory_space<vmem>>, %arg7: memref<64x64xf32, #tpu.memory_space<vmem>>, %arg8: memref<1x64xf32, #tpu.memory_space<vmem>>, %arg9: memref<32x64xf32, #tpu.memory_space<vmem>>, %arg10: memref<1x64xf32, #tpu.memory_space<vmem>>, %arg11: memref<128x128xf32, #tpu.memory_space<vmem>>, %arg12: memref<1x64xf32, #tpu.memory_space<vmem>>, %arg13: memref<1x1xf32, #tpu.memory_space<vmem>>, %arg14: memref<64x64xf32, #tpu.memory_space<vmem>>, %arg15: memref<1x64xf32, #tpu.memory_space<vmem>>, %arg16: memref<128x64xf32, #tpu.memory_space<vmem>>, %arg17: memref<1x64xf32, #tpu.memory_space<vmem>>, %arg18: memref<2x16xf32, #tpu.memory_space<vmem>>, %arg19: memref<2x16xf32, #tpu.memory_space<vmem>>) attributes {dimension_semantics = [#tpu.dimension_semantics<arbitrary>], iteration_bounds = array<i64: 1>, scalar_prefetch = 0 : i64, scratch_operands = 0 : i64, tpu.core_type = #tpu.core_type<tc>, window_params = [{pipeline_mode = #tpu.pipeline_mode<synchronous>, transform_indices = @transform_0, window_bounds = array<i64: 32, 32>}, {pipeline_mode = #tpu.pipeline_mode<synchronous>, transform_indices = @transform_1, window_bounds = array<i64: 16, 32>}, {pipeline_mode = #tpu.pipeline_mode<synchronous>, transform_indices = @transform_2, window_bounds = array<i64: 2, 16>}, {pipeline_mode = #tpu.pipeline_mode<synchronous>, transform_indices = @transform_3, window_bounds = array<i64: 2, 8>}, {pipeline_mode = #tpu.pipeline_mode<synchronous>, transform_indices = @transform_4, window_bounds = array<i64: 32, 32>}, {pipeline_mode = #tpu.pipeline_mode<synchronous>, transform_indices = @transform_5, window_bounds = array<i64: 1, 32>}, {pipeline_mode = #tpu.pipeline_mode<synchronous>, transform_indices = @transform_6, window_bounds = array<i64: 64, 64>}, {pipeline_mode = #tpu.pipeline_mode<synchronous>, transform_indices = @transform_7, window_bounds = array<i64: 1, 64>}, {pipeline_mode = #tpu.pipeline_mode<synchronous>, transform_indices = @transform_8, window_bounds = array<i64: 32, 64>}, {pipeline_mode = #tpu.pipeline_mode<synchronous>, transform_indices = @transform_9, window_bounds = array<i64: 1, 64>}, {pipeline_mode = #tpu.pipeline_mode<synchronous>, transform_indices = @transform_10, window_bounds = array<i64: 128, 128>}, {pipeline_mode = #tpu.pipeline_mode<synchronous>, transform_indices = @transform_11, window_bounds = array<i64: 1, 64>}, {pipeline_mode = #tpu.pipeline_mode<synchronous>, transform_indices = @transform_12, window_bounds = array<i64: 1, 1>}, {pipeline_mode = #tpu.pipeline_mode<synchronous>, transform_indices = @transform_13, window_bounds = array<i64: 64, 64>}, {pipeline_mode = #tpu.pipeline_mode<synchronous>, transform_indices = @transform_14, window_bounds = array<i64: 1, 64>}, {pipeline_mode = #tpu.pipeline_mode<synchronous>, transform_indices = @transform_15, window_bounds = array<i64: 128, 64>}, {pipeline_mode = #tpu.pipeline_mode<synchronous>, transform_indices = @transform_16, window_bounds = array<i64: 1, 64>}, {pipeline_mode = #tpu.pipeline_mode<synchronous>, transform_indices = @transform_17, window_bounds = array<i64: 2, 16>}, {pipeline_mode = #tpu.pipeline_mode<synchronous>, transform_indices = @transform_18, window_bounds = array<i64: 2, 16>}]} {
    %c0 = arith.constant 0 : index
    %c0_0 = arith.constant 0 : index
    %0 = vector.load %arg1[%c0, %c0_0] : memref<32x32xf32, #tpu.memory_space<vmem>>, vector<32x32xf32>
    %c0_1 = arith.constant 0 : index
    %c0_2 = arith.constant 0 : index
    %1 = vector.load %arg2[%c0_1, %c0_2] : memref<16x32xf32, #tpu.memory_space<vmem>>, vector<16x32xf32>
    %c0_3 = arith.constant 0 : index
    %c0_4 = arith.constant 0 : index
    %2 = vector.load %arg3[%c0_3, %c0_4] : memref<2x16xf32, #tpu.memory_space<vmem>>, vector<2x16xf32>
    %c0_5 = arith.constant 0 : index
    %c0_6 = arith.constant 0 : index
    %3 = vector.load %arg4[%c0_5, %c0_6] : memref<2x8xf32, #tpu.memory_space<vmem>>, vector<2x8xf32>
    %c0_7 = arith.constant 0 : index
    %c0_8 = arith.constant 0 : index
    %4 = vector.load %arg5[%c0_7, %c0_8] : memref<32x32xf32, #tpu.memory_space<vmem>>, vector<32x32xf32>
    %c0_9 = arith.constant 0 : index
    %c0_10 = arith.constant 0 : index
    %5 = vector.load %arg6[%c0_9, %c0_10] : memref<1x32xf32, #tpu.memory_space<vmem>>, vector<1x32xf32>
    %cst = arith.constant dense<0.000000e+00> : vector<32x32xf32>
    %6 = tpu.matmul %0, %4, %cst {dimension_numbers = #tpu.dot_dimension_numbers<[1], [0], [0], [1], [0, 0, 1, 1], [], []>} : vector<32x32xf32>, vector<32x32xf32>, vector<32x32xf32> -> vector<32x32xf32>
    %7 = vector.broadcast %5 : vector<1x32xf32> to vector<32x32xf32>
    %8 = arith.addf %6, %7 : vector<32x32xf32>
    %cst_11 = arith.constant 0.000000e+00 : f32
    %9 = vector.broadcast %cst_11 : f32 to vector<32x32xf32>
    %10 = arith.maximumf %8, %9 : vector<32x32xf32>
    %cst_12 = arith.constant dense<0.000000e+00> : vector<16x32xf32>
    %11 = tpu.matmul %1, %4, %cst_12 {dimension_numbers = #tpu.dot_dimension_numbers<[1], [0], [0], [1], [0, 0, 1, 1], [], []>} : vector<16x32xf32>, vector<32x32xf32>, vector<16x32xf32> -> vector<16x32xf32>
    %12 = vector.broadcast %5 : vector<1x32xf32> to vector<16x32xf32>
    %13 = arith.addf %11, %12 : vector<16x32xf32>
    %cst_13 = arith.constant 0.000000e+00 : f32
    %14 = vector.broadcast %cst_13 : f32 to vector<16x32xf32>
    %15 = arith.maximumf %13, %14 : vector<16x32xf32>
    %16 = vector.extract_strided_slice %10 {offsets = [0, 0], sizes = [16, 32], strides = [1, 1]} : vector<32x32xf32> to vector<16x32xf32>
    %17 = vector.extract_strided_slice %15 {offsets = [0, 0], sizes = [8, 32], strides = [1, 1]} : vector<16x32xf32> to vector<8x32xf32>
    %cst_14 = arith.constant dense<0.000000e+00> : vector<16x8xf32>
    %18 = tpu.matmul %16, %17, %cst_14 {dimension_numbers = #tpu.dot_dimension_numbers<[1], [1], [0], [0], [0, 0, 1, 0], [], []>} : vector<16x32xf32>, vector<8x32xf32>, vector<16x8xf32> -> vector<16x8xf32>
    %19 = vector.extract_strided_slice %3 {offsets = [0, 0], sizes = [1, 8], strides = [1, 1]} : vector<2x8xf32> to vector<1x8xf32>
    %cst_15 = arith.constant 5.000000e-01 : f32
    %20 = vector.broadcast %cst_15 : f32 to vector<1x8xf32>
    %21 = arith.cmpf ogt, %19, %20 : vector<1x8xf32>
    %cst_16 = arith.constant -1.000000e+30 : f32
    %22 = vector.shape_cast %21 : vector<1x8xi1> to vector<1x8xi1>
    %23 = vector.broadcast %22 : vector<1x8xi1> to vector<16x8xi1>
    %24 = vector.broadcast %cst_16 : f32 to vector<16x8xf32>
    %25 = arith.select %23, %24, %18 : vector<16x8xi1>, vector<16x8xf32>
    %cst_17 = arith.constant dense<0xFF800000> : vector<16xf32>
    %26 = vector.multi_reduction <maximumf>, %25, %cst_17 [1] : vector<16x8xf32> to vector<16xf32>
    %27 = vector.shape_cast %26 : vector<16xf32> to vector<16x1xf32>
    %28 = vector.broadcast %27 : vector<16x1xf32> to vector<16x8xf32>
    %29 = arith.subf %25, %28 : vector<16x8xf32>
    %30 = math.exp %29 : vector<16x8xf32>
    %cst_18 = arith.constant dense<0.000000e+00> : vector<16xf32>
    %31 = vector.multi_reduction <add>, %30, %cst_18 [1] : vector<16x8xf32> to vector<16xf32>
    %32 = vector.shape_cast %31 : vector<16xf32> to vector<16x1xf32>
    %33 = vector.broadcast %32 : vector<16x1xf32> to vector<16x8xf32>
    %34 = arith.divf %30, %33 : vector<16x8xf32>
    %35 = vector.extract_strided_slice %1 {offsets = [0, 0], sizes = [8, 32], strides = [1, 1]} : vector<16x32xf32> to vector<8x32xf32>
    %cst_19 = arith.constant dense<0.000000e+00> : vector<16x32xf32>
    %36 = tpu.matmul %34, %35, %cst_19 {dimension_numbers = #tpu.dot_dimension_numbers<[1], [0], [0], [1], [0, 0, 1, 1], [], []>} : vector<16x8xf32>, vector<8x32xf32>, vector<16x32xf32> -> vector<16x32xf32>
    %37 = vector.extract_strided_slice %10 {offsets = [16, 0], sizes = [16, 32], strides = [1, 1]} : vector<32x32xf32> to vector<16x32xf32>
    %38 = vector.extract_strided_slice %15 {offsets = [8, 0], sizes = [8, 32], strides = [1, 1]} : vector<16x32xf32> to vector<8x32xf32>
    %cst_20 = arith.constant dense<0.000000e+00> : vector<16x8xf32>
    %39 = tpu.matmul %37, %38, %cst_20 {dimension_numbers = #tpu.dot_dimension_numbers<[1], [1], [0], [0], [0, 0, 1, 0], [], []>} : vector<16x32xf32>, vector<8x32xf32>, vector<16x8xf32> -> vector<16x8xf32>
    %40 = vector.extract_strided_slice %3 {offsets = [1, 0], sizes = [1, 8], strides = [1, 1]} : vector<2x8xf32> to vector<1x8xf32>
    %cst_21 = arith.constant 5.000000e-01 : f32
    %41 = vector.broadcast %cst_21 : f32 to vector<1x8xf32>
    %42 = arith.cmpf ogt, %40, %41 : vector<1x8xf32>
    %cst_22 = arith.constant -1.000000e+30 : f32
    %43 = vector.shape_cast %42 : vector<1x8xi1> to vector<1x8xi1>
    %44 = vector.broadcast %43 : vector<1x8xi1> to vector<16x8xi1>
    %45 = vector.broadcast %cst_22 : f32 to vector<16x8xf32>
    %46 = arith.select %44, %45, %39 : vector<16x8xi1>, vector<16x8xf32>
    %cst_23 = arith.constant dense<0xFF800000> : vector<16xf32>
    %47 = vector.multi_reduction <maximumf>, %46, %cst_23 [1] : vector<16x8xf32> to vector<16xf32>
    %48 = vector.shape_cast %47 : vector<16xf32> to vector<16x1xf32>
    %49 = vector.broadcast %48 : vector<16x1xf32> to vector<16x8xf32>
    %50 = arith.subf %46, %49 : vector<16x8xf32>
    %51 = math.exp %50 : vector<16x8xf32>
    %cst_24 = arith.constant dense<0.000000e+00> : vector<16xf32>
    %52 = vector.multi_reduction <add>, %51, %cst_24 [1] : vector<16x8xf32> to vector<16xf32>
    %53 = vector.shape_cast %52 : vector<16xf32> to vector<16x1xf32>
    %54 = vector.broadcast %53 : vector<16x1xf32> to vector<16x8xf32>
    %55 = arith.divf %51, %54 : vector<16x8xf32>
    %56 = vector.extract_strided_slice %1 {offsets = [8, 0], sizes = [8, 32], strides = [1, 1]} : vector<16x32xf32> to vector<8x32xf32>
    %cst_25 = arith.constant dense<0.000000e+00> : vector<16x32xf32>
    %57 = tpu.matmul %55, %56, %cst_25 {dimension_numbers = #tpu.dot_dimension_numbers<[1], [0], [0], [1], [0, 0, 1, 1], [], []>} : vector<16x8xf32>, vector<8x32xf32>, vector<16x32xf32> -> vector<16x32xf32>
    %58 = tpu.concatenate %36, %57 in 0 : vector<16x32xf32>, vector<16x32xf32> -> vector<32x32xf32>
    %c0_26 = arith.constant 0 : index
    %c0_27 = arith.constant 0 : index
    %59 = vector.load %arg7[%c0_26, %c0_27] : memref<64x64xf32, #tpu.memory_space<vmem>>, vector<64x64xf32>
    %c0_28 = arith.constant 0 : index
    %c0_29 = arith.constant 0 : index
    %60 = vector.load %arg8[%c0_28, %c0_29] : memref<1x64xf32, #tpu.memory_space<vmem>>, vector<1x64xf32>
    %c0_30 = arith.constant 0 : index
    %c0_31 = arith.constant 0 : index
    %61 = vector.load %arg9[%c0_30, %c0_31] : memref<32x64xf32, #tpu.memory_space<vmem>>, vector<32x64xf32>
    %c0_32 = arith.constant 0 : index
    %c0_33 = arith.constant 0 : index
    %62 = vector.load %arg10[%c0_32, %c0_33] : memref<1x64xf32, #tpu.memory_space<vmem>>, vector<1x64xf32>
    %63 = vector.extract_strided_slice %59 {offsets = [0, 0], sizes = [32, 64], strides = [1, 1]} : vector<64x64xf32> to vector<32x64xf32>
    %cst_34 = arith.constant dense<0.000000e+00> : vector<32x64xf32>
    %64 = tpu.matmul %0, %63, %cst_34 {dimension_numbers = #tpu.dot_dimension_numbers<[1], [0], [0], [1], [0, 0, 1, 1], [], []>} : vector<32x32xf32>, vector<32x64xf32>, vector<32x64xf32> -> vector<32x64xf32>
    %65 = vector.extract_strided_slice %59 {offsets = [32, 0], sizes = [32, 64], strides = [1, 1]} : vector<64x64xf32> to vector<32x64xf32>
    %cst_35 = arith.constant dense<0.000000e+00> : vector<32x64xf32>
    %66 = tpu.matmul %58, %65, %cst_35 {dimension_numbers = #tpu.dot_dimension_numbers<[1], [0], [0], [1], [0, 0, 1, 1], [], []>} : vector<32x32xf32>, vector<32x64xf32>, vector<32x64xf32> -> vector<32x64xf32>
    %67 = arith.addf %64, %66 : vector<32x64xf32>
    %68 = vector.broadcast %60 : vector<1x64xf32> to vector<32x64xf32>
    %69 = arith.addf %67, %68 : vector<32x64xf32>
    %cst_36 = arith.constant dense<0.000000e+00> : vector<16x64xf32>
    %70 = tpu.matmul %1, %61, %cst_36 {dimension_numbers = #tpu.dot_dimension_numbers<[1], [0], [0], [1], [0, 0, 1, 1], [], []>} : vector<16x32xf32>, vector<32x64xf32>, vector<16x64xf32> -> vector<16x64xf32>
    %71 = vector.broadcast %62 : vector<1x64xf32> to vector<16x64xf32>
    %72 = arith.addf %70, %71 : vector<16x64xf32>
    %73 = vector.extract_strided_slice %69 {offsets = [0, 0], sizes = [16, 64], strides = [1, 1]} : vector<32x64xf32> to vector<16x64xf32>
    %74 = vector.extract_strided_slice %72 {offsets = [0, 0], sizes = [8, 64], strides = [1, 1]} : vector<16x64xf32> to vector<8x64xf32>
    %75 = vector.extract_strided_slice %73 {offsets = [0, 0], sizes = [16, 32], strides = [1, 1]} : vector<16x64xf32> to vector<16x32xf32>
    %76 = vector.extract_strided_slice %73 {offsets = [15, 0], sizes = [1, 64], strides = [1, 1]} : vector<16x64xf32> to vector<1x64xf32>
    %77 = vector.extract_strided_slice %73 {offsets = [14, 0], sizes = [1, 64], strides = [1, 1]} : vector<16x64xf32> to vector<1x64xf32>
    %78 = vector.extract_strided_slice %73 {offsets = [13, 0], sizes = [1, 64], strides = [1, 1]} : vector<16x64xf32> to vector<1x64xf32>
    %79 = vector.extract_strided_slice %73 {offsets = [12, 0], sizes = [1, 64], strides = [1, 1]} : vector<16x64xf32> to vector<1x64xf32>
    %80 = vector.extract_strided_slice %73 {offsets = [11, 0], sizes = [1, 64], strides = [1, 1]} : vector<16x64xf32> to vector<1x64xf32>
    %81 = vector.extract_strided_slice %73 {offsets = [10, 0], sizes = [1, 64], strides = [1, 1]} : vector<16x64xf32> to vector<1x64xf32>
    %82 = vector.extract_strided_slice %73 {offsets = [9, 0], sizes = [1, 64], strides = [1, 1]} : vector<16x64xf32> to vector<1x64xf32>
    %83 = vector.extract_strided_slice %73 {offsets = [8, 0], sizes = [1, 64], strides = [1, 1]} : vector<16x64xf32> to vector<1x64xf32>
    %84 = vector.extract_strided_slice %73 {offsets = [7, 0], sizes = [1, 64], strides = [1, 1]} : vector<16x64xf32> to vector<1x64xf32>
    %85 = vector.extract_strided_slice %73 {offsets = [6, 0], sizes = [1, 64], strides = [1, 1]} : vector<16x64xf32> to vector<1x64xf32>
    %86 = vector.extract_strided_slice %73 {offsets = [5, 0], sizes = [1, 64], strides = [1, 1]} : vector<16x64xf32> to vector<1x64xf32>
    %87 = vector.extract_strided_slice %73 {offsets = [4, 0], sizes = [1, 64], strides = [1, 1]} : vector<16x64xf32> to vector<1x64xf32>
    %88 = vector.extract_strided_slice %73 {offsets = [3, 0], sizes = [1, 64], strides = [1, 1]} : vector<16x64xf32> to vector<1x64xf32>
    %89 = vector.extract_strided_slice %73 {offsets = [2, 0], sizes = [1, 64], strides = [1, 1]} : vector<16x64xf32> to vector<1x64xf32>
    %90 = vector.extract_strided_slice %73 {offsets = [1, 0], sizes = [1, 64], strides = [1, 1]} : vector<16x64xf32> to vector<1x64xf32>
    %91 = vector.extract_strided_slice %73 {offsets = [0, 0], sizes = [1, 64], strides = [1, 1]} : vector<16x64xf32> to vector<1x64xf32>
    %92 = tpu.concatenate %76, %77, %78, %79, %80, %81, %82, %83, %84, %85, %86, %87, %88, %89, %90, %91 in 0 : vector<1x64xf32>, vector<1x64xf32>, vector<1x64xf32>, vector<1x64xf32>, vector<1x64xf32>, vector<1x64xf32>, vector<1x64xf32>, vector<1x64xf32>, vector<1x64xf32>, vector<1x64xf32>, vector<1x64xf32>, vector<1x64xf32>, vector<1x64xf32>, vector<1x64xf32>, vector<1x64xf32>, vector<1x64xf32> -> vector<16x64xf32>
    %93 = vector.extract_strided_slice %92 {offsets = [0, 32], sizes = [16, 32], strides = [1, 1]} : vector<16x64xf32> to vector<16x32xf32>
    %94 = tpu.concatenate %75, %93 in 1 : vector<16x32xf32>, vector<16x32xf32> -> vector<16x64xf32>
    %95 = vector.extract_strided_slice %74 {offsets = [0, 0], sizes = [8, 32], strides = [1, 1]} : vector<8x64xf32> to vector<8x32xf32>
    %96 = vector.extract_strided_slice %74 {offsets = [7, 0], sizes = [1, 64], strides = [1, 1]} : vector<8x64xf32> to vector<1x64xf32>
    %97 = vector.extract_strided_slice %74 {offsets = [6, 0], sizes = [1, 64], strides = [1, 1]} : vector<8x64xf32> to vector<1x64xf32>
    %98 = vector.extract_strided_slice %74 {offsets = [5, 0], sizes = [1, 64], strides = [1, 1]} : vector<8x64xf32> to vector<1x64xf32>
    %99 = vector.extract_strided_slice %74 {offsets = [4, 0], sizes = [1, 64], strides = [1, 1]} : vector<8x64xf32> to vector<1x64xf32>
    %100 = vector.extract_strided_slice %74 {offsets = [3, 0], sizes = [1, 64], strides = [1, 1]} : vector<8x64xf32> to vector<1x64xf32>
    %101 = vector.extract_strided_slice %74 {offsets = [2, 0], sizes = [1, 64], strides = [1, 1]} : vector<8x64xf32> to vector<1x64xf32>
    %102 = vector.extract_strided_slice %74 {offsets = [1, 0], sizes = [1, 64], strides = [1, 1]} : vector<8x64xf32> to vector<1x64xf32>
    %103 = vector.extract_strided_slice %74 {offsets = [0, 0], sizes = [1, 64], strides = [1, 1]} : vector<8x64xf32> to vector<1x64xf32>
    %104 = tpu.concatenate %96, %97, %98, %99, %100, %101, %102, %103 in 0 : vector<1x64xf32>, vector<1x64xf32>, vector<1x64xf32>, vector<1x64xf32>, vector<1x64xf32>, vector<1x64xf32>, vector<1x64xf32>, vector<1x64xf32> -> vector<8x64xf32>
    %105 = vector.extract_strided_slice %104 {offsets = [0, 32], sizes = [8, 32], strides = [1, 1]} : vector<8x64xf32> to vector<8x32xf32>
    %106 = tpu.concatenate %95, %105 in 1 : vector<8x32xf32>, vector<8x32xf32> -> vector<8x64xf32>
    %cst_37 = arith.constant 0.000000e+00 : f32
    %107 = vector.broadcast %cst_37 : f32 to vector<8x64xf32>
    %108 = tpu.concatenate %106, %107 in 0 : vector<8x64xf32>, vector<8x64xf32> -> vector<16x64xf32>
    %109 = tpu.concatenate %94, %108 in 1 : vector<16x64xf32>, vector<16x64xf32> -> vector<16x128xf32>
    %110 = vector.extract_strided_slice %69 {offsets = [16, 0], sizes = [16, 64], strides = [1, 1]} : vector<32x64xf32> to vector<16x64xf32>
    %111 = vector.extract_strided_slice %72 {offsets = [8, 0], sizes = [8, 64], strides = [1, 1]} : vector<16x64xf32> to vector<8x64xf32>
    %112 = vector.extract_strided_slice %110 {offsets = [0, 0], sizes = [16, 32], strides = [1, 1]} : vector<16x64xf32> to vector<16x32xf32>
    %113 = vector.extract_strided_slice %110 {offsets = [15, 0], sizes = [1, 64], strides = [1, 1]} : vector<16x64xf32> to vector<1x64xf32>
    %114 = vector.extract_strided_slice %110 {offsets = [14, 0], sizes = [1, 64], strides = [1, 1]} : vector<16x64xf32> to vector<1x64xf32>
    %115 = vector.extract_strided_slice %110 {offsets = [13, 0], sizes = [1, 64], strides = [1, 1]} : vector<16x64xf32> to vector<1x64xf32>
    %116 = vector.extract_strided_slice %110 {offsets = [12, 0], sizes = [1, 64], strides = [1, 1]} : vector<16x64xf32> to vector<1x64xf32>
    %117 = vector.extract_strided_slice %110 {offsets = [11, 0], sizes = [1, 64], strides = [1, 1]} : vector<16x64xf32> to vector<1x64xf32>
    %118 = vector.extract_strided_slice %110 {offsets = [10, 0], sizes = [1, 64], strides = [1, 1]} : vector<16x64xf32> to vector<1x64xf32>
    %119 = vector.extract_strided_slice %110 {offsets = [9, 0], sizes = [1, 64], strides = [1, 1]} : vector<16x64xf32> to vector<1x64xf32>
    %120 = vector.extract_strided_slice %110 {offsets = [8, 0], sizes = [1, 64], strides = [1, 1]} : vector<16x64xf32> to vector<1x64xf32>
    %121 = vector.extract_strided_slice %110 {offsets = [7, 0], sizes = [1, 64], strides = [1, 1]} : vector<16x64xf32> to vector<1x64xf32>
    %122 = vector.extract_strided_slice %110 {offsets = [6, 0], sizes = [1, 64], strides = [1, 1]} : vector<16x64xf32> to vector<1x64xf32>
    %123 = vector.extract_strided_slice %110 {offsets = [5, 0], sizes = [1, 64], strides = [1, 1]} : vector<16x64xf32> to vector<1x64xf32>
    %124 = vector.extract_strided_slice %110 {offsets = [4, 0], sizes = [1, 64], strides = [1, 1]} : vector<16x64xf32> to vector<1x64xf32>
    %125 = vector.extract_strided_slice %110 {offsets = [3, 0], sizes = [1, 64], strides = [1, 1]} : vector<16x64xf32> to vector<1x64xf32>
    %126 = vector.extract_strided_slice %110 {offsets = [2, 0], sizes = [1, 64], strides = [1, 1]} : vector<16x64xf32> to vector<1x64xf32>
    %127 = vector.extract_strided_slice %110 {offsets = [1, 0], sizes = [1, 64], strides = [1, 1]} : vector<16x64xf32> to vector<1x64xf32>
    %128 = vector.extract_strided_slice %110 {offsets = [0, 0], sizes = [1, 64], strides = [1, 1]} : vector<16x64xf32> to vector<1x64xf32>
    %129 = tpu.concatenate %113, %114, %115, %116, %117, %118, %119, %120, %121, %122, %123, %124, %125, %126, %127, %128 in 0 : vector<1x64xf32>, vector<1x64xf32>, vector<1x64xf32>, vector<1x64xf32>, vector<1x64xf32>, vector<1x64xf32>, vector<1x64xf32>, vector<1x64xf32>, vector<1x64xf32>, vector<1x64xf32>, vector<1x64xf32>, vector<1x64xf32>, vector<1x64xf32>, vector<1x64xf32>, vector<1x64xf32>, vector<1x64xf32> -> vector<16x64xf32>
    %130 = vector.extract_strided_slice %129 {offsets = [0, 32], sizes = [16, 32], strides = [1, 1]} : vector<16x64xf32> to vector<16x32xf32>
    %131 = tpu.concatenate %112, %130 in 1 : vector<16x32xf32>, vector<16x32xf32> -> vector<16x64xf32>
    %132 = vector.extract_strided_slice %111 {offsets = [0, 0], sizes = [8, 32], strides = [1, 1]} : vector<8x64xf32> to vector<8x32xf32>
    %133 = vector.extract_strided_slice %111 {offsets = [7, 0], sizes = [1, 64], strides = [1, 1]} : vector<8x64xf32> to vector<1x64xf32>
    %134 = vector.extract_strided_slice %111 {offsets = [6, 0], sizes = [1, 64], strides = [1, 1]} : vector<8x64xf32> to vector<1x64xf32>
    %135 = vector.extract_strided_slice %111 {offsets = [5, 0], sizes = [1, 64], strides = [1, 1]} : vector<8x64xf32> to vector<1x64xf32>
    %136 = vector.extract_strided_slice %111 {offsets = [4, 0], sizes = [1, 64], strides = [1, 1]} : vector<8x64xf32> to vector<1x64xf32>
    %137 = vector.extract_strided_slice %111 {offsets = [3, 0], sizes = [1, 64], strides = [1, 1]} : vector<8x64xf32> to vector<1x64xf32>
    %138 = vector.extract_strided_slice %111 {offsets = [2, 0], sizes = [1, 64], strides = [1, 1]} : vector<8x64xf32> to vector<1x64xf32>
    %139 = vector.extract_strided_slice %111 {offsets = [1, 0], sizes = [1, 64], strides = [1, 1]} : vector<8x64xf32> to vector<1x64xf32>
    %140 = vector.extract_strided_slice %111 {offsets = [0, 0], sizes = [1, 64], strides = [1, 1]} : vector<8x64xf32> to vector<1x64xf32>
    %141 = tpu.concatenate %133, %134, %135, %136, %137, %138, %139, %140 in 0 : vector<1x64xf32>, vector<1x64xf32>, vector<1x64xf32>, vector<1x64xf32>, vector<1x64xf32>, vector<1x64xf32>, vector<1x64xf32>, vector<1x64xf32> -> vector<8x64xf32>
    %142 = vector.extract_strided_slice %141 {offsets = [0, 32], sizes = [8, 32], strides = [1, 1]} : vector<8x64xf32> to vector<8x32xf32>
    %143 = tpu.concatenate %132, %142 in 1 : vector<8x32xf32>, vector<8x32xf32> -> vector<8x64xf32>
    %cst_38 = arith.constant 0.000000e+00 : f32
    %144 = vector.broadcast %cst_38 : f32 to vector<8x64xf32>
    %145 = tpu.concatenate %143, %144 in 0 : vector<8x64xf32>, vector<8x64xf32> -> vector<16x64xf32>
    %146 = tpu.concatenate %131, %145 in 1 : vector<16x64xf32>, vector<16x64xf32> -> vector<16x128xf32>
    %c0_39 = arith.constant 0 : index
    %c0_40 = arith.constant 0 : index
    %147 = vector.load %arg11[%c0_39, %c0_40] : memref<128x128xf32, #tpu.memory_space<vmem>>, vector<128x128xf32>
    %cst_41 = arith.constant 0.000000e+00 : f32
    %148 = vector.broadcast %cst_41 : f32 to vector<2x128xf32>
    %149 = vector.extract_strided_slice %109 {offsets = [0, 0], sizes = [1, 128], strides = [1, 1]} : vector<16x128xf32> to vector<1x128xf32>
    %150 = vector.extract_strided_slice %146 {offsets = [0, 0], sizes = [1, 128], strides = [1, 1]} : vector<16x128xf32> to vector<1x128xf32>
    %151 = tpu.concatenate %149, %150 in 0 : vector<1x128xf32>, vector<1x128xf32> -> vector<2x128xf32>
    %cst_42 = arith.constant dense<0.000000e+00> : vector<2x128xf32>
    %152 = tpu.matmul %148, %147, %cst_42 {dimension_numbers = #tpu.dot_dimension_numbers<[1], [0], [0], [1], [0, 0, 1, 1], [], []>} : vector<2x128xf32>, vector<128x128xf32>, vector<2x128xf32> -> vector<2x128xf32>
    %153 = arith.addf %151, %152 : vector<2x128xf32>
    %154 = math.tanh %153 : vector<2x128xf32>
    %155 = vector.extract_strided_slice %109 {offsets = [1, 0], sizes = [1, 128], strides = [1, 1]} : vector<16x128xf32> to vector<1x128xf32>
    %156 = vector.extract_strided_slice %146 {offsets = [1, 0], sizes = [1, 128], strides = [1, 1]} : vector<16x128xf32> to vector<1x128xf32>
    %157 = tpu.concatenate %155, %156 in 0 : vector<1x128xf32>, vector<1x128xf32> -> vector<2x128xf32>
    %cst_43 = arith.constant dense<0.000000e+00> : vector<2x128xf32>
    %158 = tpu.matmul %154, %147, %cst_43 {dimension_numbers = #tpu.dot_dimension_numbers<[1], [0], [0], [1], [0, 0, 1, 1], [], []>} : vector<2x128xf32>, vector<128x128xf32>, vector<2x128xf32> -> vector<2x128xf32>
    %159 = arith.addf %157, %158 : vector<2x128xf32>
    %160 = math.tanh %159 : vector<2x128xf32>
    %161 = vector.extract_strided_slice %109 {offsets = [2, 0], sizes = [1, 128], strides = [1, 1]} : vector<16x128xf32> to vector<1x128xf32>
    %162 = vector.extract_strided_slice %146 {offsets = [2, 0], sizes = [1, 128], strides = [1, 1]} : vector<16x128xf32> to vector<1x128xf32>
    %163 = tpu.concatenate %161, %162 in 0 : vector<1x128xf32>, vector<1x128xf32> -> vector<2x128xf32>
    %cst_44 = arith.constant dense<0.000000e+00> : vector<2x128xf32>
    %164 = tpu.matmul %160, %147, %cst_44 {dimension_numbers = #tpu.dot_dimension_numbers<[1], [0], [0], [1], [0, 0, 1, 1], [], []>} : vector<2x128xf32>, vector<128x128xf32>, vector<2x128xf32> -> vector<2x128xf32>
    %165 = arith.addf %163, %164 : vector<2x128xf32>
    %166 = math.tanh %165 : vector<2x128xf32>
    %167 = vector.extract_strided_slice %109 {offsets = [3, 0], sizes = [1, 128], strides = [1, 1]} : vector<16x128xf32> to vector<1x128xf32>
    %168 = vector.extract_strided_slice %146 {offsets = [3, 0], sizes = [1, 128], strides = [1, 1]} : vector<16x128xf32> to vector<1x128xf32>
    %169 = tpu.concatenate %167, %168 in 0 : vector<1x128xf32>, vector<1x128xf32> -> vector<2x128xf32>
    %cst_45 = arith.constant dense<0.000000e+00> : vector<2x128xf32>
    %170 = tpu.matmul %166, %147, %cst_45 {dimension_numbers = #tpu.dot_dimension_numbers<[1], [0], [0], [1], [0, 0, 1, 1], [], []>} : vector<2x128xf32>, vector<128x128xf32>, vector<2x128xf32> -> vector<2x128xf32>
    %171 = arith.addf %169, %170 : vector<2x128xf32>
    %172 = math.tanh %171 : vector<2x128xf32>
    %173 = vector.extract_strided_slice %109 {offsets = [4, 0], sizes = [1, 128], strides = [1, 1]} : vector<16x128xf32> to vector<1x128xf32>
    %174 = vector.extract_strided_slice %146 {offsets = [4, 0], sizes = [1, 128], strides = [1, 1]} : vector<16x128xf32> to vector<1x128xf32>
    %175 = tpu.concatenate %173, %174 in 0 : vector<1x128xf32>, vector<1x128xf32> -> vector<2x128xf32>
    %cst_46 = arith.constant dense<0.000000e+00> : vector<2x128xf32>
    %176 = tpu.matmul %172, %147, %cst_46 {dimension_numbers = #tpu.dot_dimension_numbers<[1], [0], [0], [1], [0, 0, 1, 1], [], []>} : vector<2x128xf32>, vector<128x128xf32>, vector<2x128xf32> -> vector<2x128xf32>
    %177 = arith.addf %175, %176 : vector<2x128xf32>
    %178 = math.tanh %177 : vector<2x128xf32>
    %179 = vector.extract_strided_slice %109 {offsets = [5, 0], sizes = [1, 128], strides = [1, 1]} : vector<16x128xf32> to vector<1x128xf32>
    %180 = vector.extract_strided_slice %146 {offsets = [5, 0], sizes = [1, 128], strides = [1, 1]} : vector<16x128xf32> to vector<1x128xf32>
    %181 = tpu.concatenate %179, %180 in 0 : vector<1x128xf32>, vector<1x128xf32> -> vector<2x128xf32>
    %cst_47 = arith.constant dense<0.000000e+00> : vector<2x128xf32>
    %182 = tpu.matmul %178, %147, %cst_47 {dimension_numbers = #tpu.dot_dimension_numbers<[1], [0], [0], [1], [0, 0, 1, 1], [], []>} : vector<2x128xf32>, vector<128x128xf32>, vector<2x128xf32> -> vector<2x128xf32>
    %183 = arith.addf %181, %182 : vector<2x128xf32>
    %184 = math.tanh %183 : vector<2x128xf32>
    %185 = vector.extract_strided_slice %109 {offsets = [6, 0], sizes = [1, 128], strides = [1, 1]} : vector<16x128xf32> to vector<1x128xf32>
    %186 = vector.extract_strided_slice %146 {offsets = [6, 0], sizes = [1, 128], strides = [1, 1]} : vector<16x128xf32> to vector<1x128xf32>
    %187 = tpu.concatenate %185, %186 in 0 : vector<1x128xf32>, vector<1x128xf32> -> vector<2x128xf32>
    %cst_48 = arith.constant dense<0.000000e+00> : vector<2x128xf32>
    %188 = tpu.matmul %184, %147, %cst_48 {dimension_numbers = #tpu.dot_dimension_numbers<[1], [0], [0], [1], [0, 0, 1, 1], [], []>} : vector<2x128xf32>, vector<128x128xf32>, vector<2x128xf32> -> vector<2x128xf32>
    %189 = arith.addf %187, %188 : vector<2x128xf32>
    %190 = math.tanh %189 : vector<2x128xf32>
    %191 = vector.extract_strided_slice %109 {offsets = [7, 0], sizes = [1, 128], strides = [1, 1]} : vector<16x128xf32> to vector<1x128xf32>
    %192 = vector.extract_strided_slice %146 {offsets = [7, 0], sizes = [1, 128], strides = [1, 1]} : vector<16x128xf32> to vector<1x128xf32>
    %193 = tpu.concatenate %191, %192 in 0 : vector<1x128xf32>, vector<1x128xf32> -> vector<2x128xf32>
    %cst_49 = arith.constant dense<0.000000e+00> : vector<2x128xf32>
    %194 = tpu.matmul %190, %147, %cst_49 {dimension_numbers = #tpu.dot_dimension_numbers<[1], [0], [0], [1], [0, 0, 1, 1], [], []>} : vector<2x128xf32>, vector<128x128xf32>, vector<2x128xf32> -> vector<2x128xf32>
    %195 = arith.addf %193, %194 : vector<2x128xf32>
    %196 = math.tanh %195 : vector<2x128xf32>
    %197 = vector.extract_strided_slice %109 {offsets = [8, 0], sizes = [1, 128], strides = [1, 1]} : vector<16x128xf32> to vector<1x128xf32>
    %198 = vector.extract_strided_slice %146 {offsets = [8, 0], sizes = [1, 128], strides = [1, 1]} : vector<16x128xf32> to vector<1x128xf32>
    %199 = tpu.concatenate %197, %198 in 0 : vector<1x128xf32>, vector<1x128xf32> -> vector<2x128xf32>
    %cst_50 = arith.constant dense<0.000000e+00> : vector<2x128xf32>
    %200 = tpu.matmul %196, %147, %cst_50 {dimension_numbers = #tpu.dot_dimension_numbers<[1], [0], [0], [1], [0, 0, 1, 1], [], []>} : vector<2x128xf32>, vector<128x128xf32>, vector<2x128xf32> -> vector<2x128xf32>
    %201 = arith.addf %199, %200 : vector<2x128xf32>
    %202 = math.tanh %201 : vector<2x128xf32>
    %203 = vector.extract_strided_slice %109 {offsets = [9, 0], sizes = [1, 128], strides = [1, 1]} : vector<16x128xf32> to vector<1x128xf32>
    %204 = vector.extract_strided_slice %146 {offsets = [9, 0], sizes = [1, 128], strides = [1, 1]} : vector<16x128xf32> to vector<1x128xf32>
    %205 = tpu.concatenate %203, %204 in 0 : vector<1x128xf32>, vector<1x128xf32> -> vector<2x128xf32>
    %cst_51 = arith.constant dense<0.000000e+00> : vector<2x128xf32>
    %206 = tpu.matmul %202, %147, %cst_51 {dimension_numbers = #tpu.dot_dimension_numbers<[1], [0], [0], [1], [0, 0, 1, 1], [], []>} : vector<2x128xf32>, vector<128x128xf32>, vector<2x128xf32> -> vector<2x128xf32>
    %207 = arith.addf %205, %206 : vector<2x128xf32>
    %208 = math.tanh %207 : vector<2x128xf32>
    %209 = vector.extract_strided_slice %109 {offsets = [10, 0], sizes = [1, 128], strides = [1, 1]} : vector<16x128xf32> to vector<1x128xf32>
    %210 = vector.extract_strided_slice %146 {offsets = [10, 0], sizes = [1, 128], strides = [1, 1]} : vector<16x128xf32> to vector<1x128xf32>
    %211 = tpu.concatenate %209, %210 in 0 : vector<1x128xf32>, vector<1x128xf32> -> vector<2x128xf32>
    %cst_52 = arith.constant dense<0.000000e+00> : vector<2x128xf32>
    %212 = tpu.matmul %208, %147, %cst_52 {dimension_numbers = #tpu.dot_dimension_numbers<[1], [0], [0], [1], [0, 0, 1, 1], [], []>} : vector<2x128xf32>, vector<128x128xf32>, vector<2x128xf32> -> vector<2x128xf32>
    %213 = arith.addf %211, %212 : vector<2x128xf32>
    %214 = math.tanh %213 : vector<2x128xf32>
    %215 = vector.extract_strided_slice %109 {offsets = [11, 0], sizes = [1, 128], strides = [1, 1]} : vector<16x128xf32> to vector<1x128xf32>
    %216 = vector.extract_strided_slice %146 {offsets = [11, 0], sizes = [1, 128], strides = [1, 1]} : vector<16x128xf32> to vector<1x128xf32>
    %217 = tpu.concatenate %215, %216 in 0 : vector<1x128xf32>, vector<1x128xf32> -> vector<2x128xf32>
    %cst_53 = arith.constant dense<0.000000e+00> : vector<2x128xf32>
    %218 = tpu.matmul %214, %147, %cst_53 {dimension_numbers = #tpu.dot_dimension_numbers<[1], [0], [0], [1], [0, 0, 1, 1], [], []>} : vector<2x128xf32>, vector<128x128xf32>, vector<2x128xf32> -> vector<2x128xf32>
    %219 = arith.addf %217, %218 : vector<2x128xf32>
    %220 = math.tanh %219 : vector<2x128xf32>
    %221 = vector.extract_strided_slice %109 {offsets = [12, 0], sizes = [1, 128], strides = [1, 1]} : vector<16x128xf32> to vector<1x128xf32>
    %222 = vector.extract_strided_slice %146 {offsets = [12, 0], sizes = [1, 128], strides = [1, 1]} : vector<16x128xf32> to vector<1x128xf32>
    %223 = tpu.concatenate %221, %222 in 0 : vector<1x128xf32>, vector<1x128xf32> -> vector<2x128xf32>
    %cst_54 = arith.constant dense<0.000000e+00> : vector<2x128xf32>
    %224 = tpu.matmul %220, %147, %cst_54 {dimension_numbers = #tpu.dot_dimension_numbers<[1], [0], [0], [1], [0, 0, 1, 1], [], []>} : vector<2x128xf32>, vector<128x128xf32>, vector<2x128xf32> -> vector<2x128xf32>
    %225 = arith.addf %223, %224 : vector<2x128xf32>
    %226 = math.tanh %225 : vector<2x128xf32>
    %227 = vector.extract_strided_slice %109 {offsets = [13, 0], sizes = [1, 128], strides = [1, 1]} : vector<16x128xf32> to vector<1x128xf32>
    %228 = vector.extract_strided_slice %146 {offsets = [13, 0], sizes = [1, 128], strides = [1, 1]} : vector<16x128xf32> to vector<1x128xf32>
    %229 = tpu.concatenate %227, %228 in 0 : vector<1x128xf32>, vector<1x128xf32> -> vector<2x128xf32>
    %cst_55 = arith.constant dense<0.000000e+00> : vector<2x128xf32>
    %230 = tpu.matmul %226, %147, %cst_55 {dimension_numbers = #tpu.dot_dimension_numbers<[1], [0], [0], [1], [0, 0, 1, 1], [], []>} : vector<2x128xf32>, vector<128x128xf32>, vector<2x128xf32> -> vector<2x128xf32>
    %231 = arith.addf %229, %230 : vector<2x128xf32>
    %232 = math.tanh %231 : vector<2x128xf32>
    %233 = vector.extract_strided_slice %109 {offsets = [14, 0], sizes = [1, 128], strides = [1, 1]} : vector<16x128xf32> to vector<1x128xf32>
    %234 = vector.extract_strided_slice %146 {offsets = [14, 0], sizes = [1, 128], strides = [1, 1]} : vector<16x128xf32> to vector<1x128xf32>
    %235 = tpu.concatenate %233, %234 in 0 : vector<1x128xf32>, vector<1x128xf32> -> vector<2x128xf32>
    %cst_56 = arith.constant dense<0.000000e+00> : vector<2x128xf32>
    %236 = tpu.matmul %232, %147, %cst_56 {dimension_numbers = #tpu.dot_dimension_numbers<[1], [0], [0], [1], [0, 0, 1, 1], [], []>} : vector<2x128xf32>, vector<128x128xf32>, vector<2x128xf32> -> vector<2x128xf32>
    %237 = arith.addf %235, %236 : vector<2x128xf32>
    %238 = math.tanh %237 : vector<2x128xf32>
    %239 = vector.extract_strided_slice %109 {offsets = [15, 0], sizes = [1, 128], strides = [1, 1]} : vector<16x128xf32> to vector<1x128xf32>
    %240 = vector.extract_strided_slice %146 {offsets = [15, 0], sizes = [1, 128], strides = [1, 1]} : vector<16x128xf32> to vector<1x128xf32>
    %241 = tpu.concatenate %239, %240 in 0 : vector<1x128xf32>, vector<1x128xf32> -> vector<2x128xf32>
    %cst_57 = arith.constant dense<0.000000e+00> : vector<2x128xf32>
    %242 = tpu.matmul %238, %147, %cst_57 {dimension_numbers = #tpu.dot_dimension_numbers<[1], [0], [0], [1], [0, 0, 1, 1], [], []>} : vector<2x128xf32>, vector<128x128xf32>, vector<2x128xf32> -> vector<2x128xf32>
    %243 = arith.addf %241, %242 : vector<2x128xf32>
    %244 = math.tanh %243 : vector<2x128xf32>
    %c0_58 = arith.constant 0 : index
    %c0_59 = arith.constant 0 : index
    %245 = vector.load %arg12[%c0_58, %c0_59] : memref<1x64xf32, #tpu.memory_space<vmem>>, vector<1x64xf32>
    %c0_60 = arith.constant 0 : index
    %c0_61 = arith.constant 0 : index
    %246 = vector.load %arg13[%c0_60, %c0_61] : memref<1x1xf32, #tpu.memory_space<vmem>>, vector<1x1xf32>
    %c0_62 = arith.constant 0 : index
    %c0_63 = arith.constant 0 : index
    %247 = vector.load %arg14[%c0_62, %c0_63] : memref<64x64xf32, #tpu.memory_space<vmem>>, vector<64x64xf32>
    %c0_64 = arith.constant 0 : index
    %c0_65 = arith.constant 0 : index
    %248 = vector.load %arg15[%c0_64, %c0_65] : memref<1x64xf32, #tpu.memory_space<vmem>>, vector<1x64xf32>
    %c0_66 = arith.constant 0 : index
    %c0_67 = arith.constant 0 : index
    %249 = vector.load %arg16[%c0_66, %c0_67] : memref<128x64xf32, #tpu.memory_space<vmem>>, vector<128x64xf32>
    %c0_68 = arith.constant 0 : index
    %c0_69 = arith.constant 0 : index
    %250 = vector.load %arg17[%c0_68, %c0_69] : memref<1x64xf32, #tpu.memory_space<vmem>>, vector<1x64xf32>
    %251 = vector.extract_strided_slice %154 {offsets = [0, 0], sizes = [1, 128], strides = [1, 1]} : vector<2x128xf32> to vector<1x128xf32>
    %252 = vector.extract_strided_slice %160 {offsets = [0, 0], sizes = [1, 128], strides = [1, 1]} : vector<2x128xf32> to vector<1x128xf32>
    %253 = vector.extract_strided_slice %166 {offsets = [0, 0], sizes = [1, 128], strides = [1, 1]} : vector<2x128xf32> to vector<1x128xf32>
    %254 = vector.extract_strided_slice %172 {offsets = [0, 0], sizes = [1, 128], strides = [1, 1]} : vector<2x128xf32> to vector<1x128xf32>
    %255 = vector.extract_strided_slice %178 {offsets = [0, 0], sizes = [1, 128], strides = [1, 1]} : vector<2x128xf32> to vector<1x128xf32>
    %256 = vector.extract_strided_slice %184 {offsets = [0, 0], sizes = [1, 128], strides = [1, 1]} : vector<2x128xf32> to vector<1x128xf32>
    %257 = vector.extract_strided_slice %190 {offsets = [0, 0], sizes = [1, 128], strides = [1, 1]} : vector<2x128xf32> to vector<1x128xf32>
    %258 = vector.extract_strided_slice %196 {offsets = [0, 0], sizes = [1, 128], strides = [1, 1]} : vector<2x128xf32> to vector<1x128xf32>
    %259 = vector.extract_strided_slice %202 {offsets = [0, 0], sizes = [1, 128], strides = [1, 1]} : vector<2x128xf32> to vector<1x128xf32>
    %260 = vector.extract_strided_slice %208 {offsets = [0, 0], sizes = [1, 128], strides = [1, 1]} : vector<2x128xf32> to vector<1x128xf32>
    %261 = vector.extract_strided_slice %214 {offsets = [0, 0], sizes = [1, 128], strides = [1, 1]} : vector<2x128xf32> to vector<1x128xf32>
    %262 = vector.extract_strided_slice %220 {offsets = [0, 0], sizes = [1, 128], strides = [1, 1]} : vector<2x128xf32> to vector<1x128xf32>
    %263 = vector.extract_strided_slice %226 {offsets = [0, 0], sizes = [1, 128], strides = [1, 1]} : vector<2x128xf32> to vector<1x128xf32>
    %264 = vector.extract_strided_slice %232 {offsets = [0, 0], sizes = [1, 128], strides = [1, 1]} : vector<2x128xf32> to vector<1x128xf32>
    %265 = vector.extract_strided_slice %238 {offsets = [0, 0], sizes = [1, 128], strides = [1, 1]} : vector<2x128xf32> to vector<1x128xf32>
    %266 = vector.extract_strided_slice %244 {offsets = [0, 0], sizes = [1, 128], strides = [1, 1]} : vector<2x128xf32> to vector<1x128xf32>
    %267 = tpu.concatenate %251, %252, %253, %254, %255, %256, %257, %258, %259, %260, %261, %262, %263, %264, %265, %266 in 0 : vector<1x128xf32>, vector<1x128xf32>, vector<1x128xf32>, vector<1x128xf32>, vector<1x128xf32>, vector<1x128xf32>, vector<1x128xf32>, vector<1x128xf32>, vector<1x128xf32>, vector<1x128xf32>, vector<1x128xf32>, vector<1x128xf32>, vector<1x128xf32>, vector<1x128xf32>, vector<1x128xf32>, vector<1x128xf32> -> vector<16x128xf32>
    %268 = vector.extract_strided_slice %267 {offsets = [15, 0], sizes = [1, 128], strides = [1, 1]} : vector<16x128xf32> to vector<1x128xf32>
    %269 = vector.extract_strided_slice %267 {offsets = [14, 0], sizes = [1, 128], strides = [1, 1]} : vector<16x128xf32> to vector<1x128xf32>
    %270 = vector.extract_strided_slice %267 {offsets = [13, 0], sizes = [1, 128], strides = [1, 1]} : vector<16x128xf32> to vector<1x128xf32>
    %271 = vector.extract_strided_slice %267 {offsets = [12, 0], sizes = [1, 128], strides = [1, 1]} : vector<16x128xf32> to vector<1x128xf32>
    %272 = vector.extract_strided_slice %267 {offsets = [11, 0], sizes = [1, 128], strides = [1, 1]} : vector<16x128xf32> to vector<1x128xf32>
    %273 = vector.extract_strided_slice %267 {offsets = [10, 0], sizes = [1, 128], strides = [1, 1]} : vector<16x128xf32> to vector<1x128xf32>
    %274 = vector.extract_strided_slice %267 {offsets = [9, 0], sizes = [1, 128], strides = [1, 1]} : vector<16x128xf32> to vector<1x128xf32>
    %275 = vector.extract_strided_slice %267 {offsets = [8, 0], sizes = [1, 128], strides = [1, 1]} : vector<16x128xf32> to vector<1x128xf32>
    %276 = vector.extract_strided_slice %267 {offsets = [7, 0], sizes = [1, 128], strides = [1, 1]} : vector<16x128xf32> to vector<1x128xf32>
    %277 = vector.extract_strided_slice %267 {offsets = [6, 0], sizes = [1, 128], strides = [1, 1]} : vector<16x128xf32> to vector<1x128xf32>
    %278 = vector.extract_strided_slice %267 {offsets = [5, 0], sizes = [1, 128], strides = [1, 1]} : vector<16x128xf32> to vector<1x128xf32>
    %279 = vector.extract_strided_slice %267 {offsets = [4, 0], sizes = [1, 128], strides = [1, 1]} : vector<16x128xf32> to vector<1x128xf32>
    %280 = vector.extract_strided_slice %267 {offsets = [3, 0], sizes = [1, 128], strides = [1, 1]} : vector<16x128xf32> to vector<1x128xf32>
    %281 = vector.extract_strided_slice %267 {offsets = [2, 0], sizes = [1, 128], strides = [1, 1]} : vector<16x128xf32> to vector<1x128xf32>
    %282 = vector.extract_strided_slice %267 {offsets = [1, 0], sizes = [1, 128], strides = [1, 1]} : vector<16x128xf32> to vector<1x128xf32>
    %283 = vector.extract_strided_slice %267 {offsets = [0, 0], sizes = [1, 128], strides = [1, 1]} : vector<16x128xf32> to vector<1x128xf32>
    %284 = tpu.concatenate %268, %269, %270, %271, %272, %273, %274, %275, %276, %277, %278, %279, %280, %281, %282, %283 in 0 : vector<1x128xf32>, vector<1x128xf32>, vector<1x128xf32>, vector<1x128xf32>, vector<1x128xf32>, vector<1x128xf32>, vector<1x128xf32>, vector<1x128xf32>, vector<1x128xf32>, vector<1x128xf32>, vector<1x128xf32>, vector<1x128xf32>, vector<1x128xf32>, vector<1x128xf32>, vector<1x128xf32>, vector<1x128xf32> -> vector<16x128xf32>
    %285 = vector.extract_strided_slice %267 {offsets = [0, 0], sizes = [16, 32], strides = [1, 1]} : vector<16x128xf32> to vector<16x32xf32>
    %286 = vector.extract_strided_slice %284 {offsets = [0, 32], sizes = [16, 32], strides = [1, 1]} : vector<16x128xf32> to vector<16x32xf32>
    %287 = tpu.concatenate %285, %286 in 1 : vector<16x32xf32>, vector<16x32xf32> -> vector<16x64xf32>
    %288 = vector.extract_strided_slice %267 {offsets = [0, 64], sizes = [8, 32], strides = [1, 1]} : vector<16x128xf32> to vector<8x32xf32>
    %289 = vector.extract_strided_slice %284 {offsets = [8, 96], sizes = [8, 32], strides = [1, 1]} : vector<16x128xf32> to vector<8x32xf32>
    %290 = tpu.concatenate %288, %289 in 1 : vector<8x32xf32>, vector<8x32xf32> -> vector<8x64xf32>
    %291 = vector.extract_strided_slice %2 {offsets = [0, 0], sizes = [1, 16], strides = [1, 1]} : vector<2x16xf32> to vector<1x16xf32>
    %292 = vector.extract_strided_slice %3 {offsets = [0, 0], sizes = [1, 8], strides = [1, 1]} : vector<2x8xf32> to vector<1x8xf32>
    %cst_70 = arith.constant dense<0.000000e+00> : vector<1x8xf32>
    %293 = tpu.matmul %245, %290, %cst_70 {dimension_numbers = #tpu.dot_dimension_numbers<[1], [1], [0], [0], [0, 0, 1, 0], [], []>} : vector<1x64xf32>, vector<8x64xf32>, vector<1x8xf32> -> vector<1x8xf32>
    %294 = vector.broadcast %246 : vector<1x1xf32> to vector<1x8xf32>
    %295 = arith.addf %293, %294 : vector<1x8xf32>
    %cst_71 = arith.constant 5.000000e-01 : f32
    %296 = vector.broadcast %cst_71 : f32 to vector<1x8xf32>
    %297 = arith.cmpf ogt, %292, %296 : vector<1x8xf32>
    %cst_72 = arith.constant -1.000000e+30 : f32
    %298 = vector.broadcast %cst_72 : f32 to vector<1x8xf32>
    %299 = arith.select %297, %298, %295 : vector<1x8xi1>, vector<1x8xf32>
    %cst_73 = arith.constant dense<0xFF800000> : vector<1xf32>
    %300 = vector.multi_reduction <maximumf>, %299, %cst_73 [1] : vector<1x8xf32> to vector<1xf32>
    %301 = vector.shape_cast %300 : vector<1xf32> to vector<1x1xf32>
    %302 = vector.broadcast %301 : vector<1x1xf32> to vector<1x8xf32>
    %303 = arith.subf %299, %302 : vector<1x8xf32>
    %304 = math.exp %303 : vector<1x8xf32>
    %cst_74 = arith.constant dense<0.000000e+00> : vector<1xf32>
    %305 = vector.multi_reduction <add>, %304, %cst_74 [1] : vector<1x8xf32> to vector<1xf32>
    %306 = vector.shape_cast %305 : vector<1xf32> to vector<1x1xf32>
    %307 = vector.broadcast %306 : vector<1x1xf32> to vector<1x8xf32>
    %308 = arith.divf %304, %307 : vector<1x8xf32>
    %cst_75 = arith.constant dense<0.000000e+00> : vector<1x64xf32>
    %309 = tpu.matmul %308, %290, %cst_75 {dimension_numbers = #tpu.dot_dimension_numbers<[1], [0], [0], [1], [0, 0, 1, 1], [], []>} : vector<1x8xf32>, vector<8x64xf32>, vector<1x64xf32> -> vector<1x64xf32>
    %cst_76 = arith.constant dense<0.000000e+00> : vector<1x64xf32>
    %310 = tpu.matmul %309, %247, %cst_76 {dimension_numbers = #tpu.dot_dimension_numbers<[1], [0], [0], [1], [0, 0, 1, 1], [], []>} : vector<1x64xf32>, vector<64x64xf32>, vector<1x64xf32> -> vector<1x64xf32>
    %311 = arith.addf %310, %248 : vector<1x64xf32>
    %cst_77 = arith.constant dense<0.000000e+00> : vector<1x16xf32>
    %312 = tpu.matmul %311, %287, %cst_77 {dimension_numbers = #tpu.dot_dimension_numbers<[1], [1], [0], [0], [0, 0, 1, 0], [], []>} : vector<1x64xf32>, vector<16x64xf32>, vector<1x16xf32> -> vector<1x16xf32>
    %cst_78 = arith.constant 5.000000e-01 : f32
    %313 = vector.broadcast %cst_78 : f32 to vector<1x16xf32>
    %314 = arith.cmpf ogt, %291, %313 : vector<1x16xf32>
    %cst_79 = arith.constant -1.000000e+30 : f32
    %315 = vector.broadcast %cst_79 : f32 to vector<1x16xf32>
    %316 = arith.select %314, %315, %312 : vector<1x16xi1>, vector<1x16xf32>
    %cst_80 = arith.constant dense<0xFF800000> : vector<1xf32>
    %317 = vector.multi_reduction <maximumf>, %316, %cst_80 [1] : vector<1x16xf32> to vector<1xf32>
    %318 = vector.shape_cast %317 : vector<1xf32> to vector<1x1xf32>
    %319 = vector.broadcast %318 : vector<1x1xf32> to vector<1x16xf32>
    %320 = arith.subf %316, %319 : vector<1x16xf32>
    %321 = math.exp %320 : vector<1x16xf32>
    %cst_81 = arith.constant dense<0.000000e+00> : vector<1xf32>
    %322 = vector.multi_reduction <add>, %321, %cst_81 [1] : vector<1x16xf32> to vector<1xf32>
    %323 = vector.shape_cast %322 : vector<1xf32> to vector<1x1xf32>
    %324 = math.log %323 : vector<1x1xf32>
    %325 = vector.broadcast %324 : vector<1x1xf32> to vector<1x16xf32>
    %326 = arith.subf %320, %325 : vector<1x16xf32>
    %327 = vector.broadcast %323 : vector<1x1xf32> to vector<1x16xf32>
    %328 = arith.divf %321, %327 : vector<1x16xf32>
    %cst_82 = arith.constant dense<0.000000e+00> : vector<1x64xf32>
    %329 = tpu.matmul %328, %287, %cst_82 {dimension_numbers = #tpu.dot_dimension_numbers<[1], [0], [0], [1], [0, 0, 1, 1], [], []>} : vector<1x16xf32>, vector<16x64xf32>, vector<1x64xf32> -> vector<1x64xf32>
    %330 = vector.extract_strided_slice %249 {offsets = [0, 0], sizes = [64, 64], strides = [1, 1]} : vector<128x64xf32> to vector<64x64xf32>
    %cst_83 = arith.constant dense<0.000000e+00> : vector<1x64xf32>
    %331 = tpu.matmul %309, %330, %cst_83 {dimension_numbers = #tpu.dot_dimension_numbers<[1], [0], [0], [1], [0, 0, 1, 1], [], []>} : vector<1x64xf32>, vector<64x64xf32>, vector<1x64xf32> -> vector<1x64xf32>
    %332 = vector.extract_strided_slice %249 {offsets = [64, 0], sizes = [64, 64], strides = [1, 1]} : vector<128x64xf32> to vector<64x64xf32>
    %cst_84 = arith.constant dense<0.000000e+00> : vector<1x64xf32>
    %333 = tpu.matmul %329, %332, %cst_84 {dimension_numbers = #tpu.dot_dimension_numbers<[1], [0], [0], [1], [0, 0, 1, 1], [], []>} : vector<1x64xf32>, vector<64x64xf32>, vector<1x64xf32> -> vector<1x64xf32>
    %334 = arith.addf %331, %333 : vector<1x64xf32>
    %335 = arith.addf %334, %250 : vector<1x64xf32>
    %cst_85 = arith.constant dense<0.000000e+00> : vector<1x16xf32>
    %336 = tpu.matmul %335, %287, %cst_85 {dimension_numbers = #tpu.dot_dimension_numbers<[1], [1], [0], [0], [0, 0, 1, 0], [], []>} : vector<1x64xf32>, vector<16x64xf32>, vector<1x16xf32> -> vector<1x16xf32>
    %cst_86 = arith.constant 5.000000e-01 : f32
    %337 = vector.broadcast %cst_86 : f32 to vector<1x16xf32>
    %338 = arith.cmpf ogt, %291, %337 : vector<1x16xf32>
    %cst_87 = arith.constant -1.000000e+30 : f32
    %339 = vector.broadcast %cst_87 : f32 to vector<1x16xf32>
    %340 = arith.select %338, %339, %336 : vector<1x16xi1>, vector<1x16xf32>
    %cst_88 = arith.constant dense<0xFF800000> : vector<1xf32>
    %341 = vector.multi_reduction <maximumf>, %340, %cst_88 [1] : vector<1x16xf32> to vector<1xf32>
    %342 = vector.shape_cast %341 : vector<1xf32> to vector<1x1xf32>
    %343 = vector.broadcast %342 : vector<1x1xf32> to vector<1x16xf32>
    %344 = arith.subf %340, %343 : vector<1x16xf32>
    %345 = math.exp %344 : vector<1x16xf32>
    %cst_89 = arith.constant dense<0.000000e+00> : vector<1xf32>
    %346 = vector.multi_reduction <add>, %345, %cst_89 [1] : vector<1x16xf32> to vector<1xf32>
    %347 = vector.shape_cast %346 : vector<1xf32> to vector<1x1xf32>
    %348 = math.log %347 : vector<1x1xf32>
    %349 = vector.broadcast %348 : vector<1x1xf32> to vector<1x16xf32>
    %350 = arith.subf %344, %349 : vector<1x16xf32>
    %351 = vector.extract_strided_slice %154 {offsets = [1, 0], sizes = [1, 128], strides = [1, 1]} : vector<2x128xf32> to vector<1x128xf32>
    %352 = vector.extract_strided_slice %160 {offsets = [1, 0], sizes = [1, 128], strides = [1, 1]} : vector<2x128xf32> to vector<1x128xf32>
    %353 = vector.extract_strided_slice %166 {offsets = [1, 0], sizes = [1, 128], strides = [1, 1]} : vector<2x128xf32> to vector<1x128xf32>
    %354 = vector.extract_strided_slice %172 {offsets = [1, 0], sizes = [1, 128], strides = [1, 1]} : vector<2x128xf32> to vector<1x128xf32>
    %355 = vector.extract_strided_slice %178 {offsets = [1, 0], sizes = [1, 128], strides = [1, 1]} : vector<2x128xf32> to vector<1x128xf32>
    %356 = vector.extract_strided_slice %184 {offsets = [1, 0], sizes = [1, 128], strides = [1, 1]} : vector<2x128xf32> to vector<1x128xf32>
    %357 = vector.extract_strided_slice %190 {offsets = [1, 0], sizes = [1, 128], strides = [1, 1]} : vector<2x128xf32> to vector<1x128xf32>
    %358 = vector.extract_strided_slice %196 {offsets = [1, 0], sizes = [1, 128], strides = [1, 1]} : vector<2x128xf32> to vector<1x128xf32>
    %359 = vector.extract_strided_slice %202 {offsets = [1, 0], sizes = [1, 128], strides = [1, 1]} : vector<2x128xf32> to vector<1x128xf32>
    %360 = vector.extract_strided_slice %208 {offsets = [1, 0], sizes = [1, 128], strides = [1, 1]} : vector<2x128xf32> to vector<1x128xf32>
    %361 = vector.extract_strided_slice %214 {offsets = [1, 0], sizes = [1, 128], strides = [1, 1]} : vector<2x128xf32> to vector<1x128xf32>
    %362 = vector.extract_strided_slice %220 {offsets = [1, 0], sizes = [1, 128], strides = [1, 1]} : vector<2x128xf32> to vector<1x128xf32>
    %363 = vector.extract_strided_slice %226 {offsets = [1, 0], sizes = [1, 128], strides = [1, 1]} : vector<2x128xf32> to vector<1x128xf32>
    %364 = vector.extract_strided_slice %232 {offsets = [1, 0], sizes = [1, 128], strides = [1, 1]} : vector<2x128xf32> to vector<1x128xf32>
    %365 = vector.extract_strided_slice %238 {offsets = [1, 0], sizes = [1, 128], strides = [1, 1]} : vector<2x128xf32> to vector<1x128xf32>
    %366 = vector.extract_strided_slice %244 {offsets = [1, 0], sizes = [1, 128], strides = [1, 1]} : vector<2x128xf32> to vector<1x128xf32>
    %367 = tpu.concatenate %351, %352, %353, %354, %355, %356, %357, %358, %359, %360, %361, %362, %363, %364, %365, %366 in 0 : vector<1x128xf32>, vector<1x128xf32>, vector<1x128xf32>, vector<1x128xf32>, vector<1x128xf32>, vector<1x128xf32>, vector<1x128xf32>, vector<1x128xf32>, vector<1x128xf32>, vector<1x128xf32>, vector<1x128xf32>, vector<1x128xf32>, vector<1x128xf32>, vector<1x128xf32>, vector<1x128xf32>, vector<1x128xf32> -> vector<16x128xf32>
    %368 = vector.extract_strided_slice %367 {offsets = [15, 0], sizes = [1, 128], strides = [1, 1]} : vector<16x128xf32> to vector<1x128xf32>
    %369 = vector.extract_strided_slice %367 {offsets = [14, 0], sizes = [1, 128], strides = [1, 1]} : vector<16x128xf32> to vector<1x128xf32>
    %370 = vector.extract_strided_slice %367 {offsets = [13, 0], sizes = [1, 128], strides = [1, 1]} : vector<16x128xf32> to vector<1x128xf32>
    %371 = vector.extract_strided_slice %367 {offsets = [12, 0], sizes = [1, 128], strides = [1, 1]} : vector<16x128xf32> to vector<1x128xf32>
    %372 = vector.extract_strided_slice %367 {offsets = [11, 0], sizes = [1, 128], strides = [1, 1]} : vector<16x128xf32> to vector<1x128xf32>
    %373 = vector.extract_strided_slice %367 {offsets = [10, 0], sizes = [1, 128], strides = [1, 1]} : vector<16x128xf32> to vector<1x128xf32>
    %374 = vector.extract_strided_slice %367 {offsets = [9, 0], sizes = [1, 128], strides = [1, 1]} : vector<16x128xf32> to vector<1x128xf32>
    %375 = vector.extract_strided_slice %367 {offsets = [8, 0], sizes = [1, 128], strides = [1, 1]} : vector<16x128xf32> to vector<1x128xf32>
    %376 = vector.extract_strided_slice %367 {offsets = [7, 0], sizes = [1, 128], strides = [1, 1]} : vector<16x128xf32> to vector<1x128xf32>
    %377 = vector.extract_strided_slice %367 {offsets = [6, 0], sizes = [1, 128], strides = [1, 1]} : vector<16x128xf32> to vector<1x128xf32>
    %378 = vector.extract_strided_slice %367 {offsets = [5, 0], sizes = [1, 128], strides = [1, 1]} : vector<16x128xf32> to vector<1x128xf32>
    %379 = vector.extract_strided_slice %367 {offsets = [4, 0], sizes = [1, 128], strides = [1, 1]} : vector<16x128xf32> to vector<1x128xf32>
    %380 = vector.extract_strided_slice %367 {offsets = [3, 0], sizes = [1, 128], strides = [1, 1]} : vector<16x128xf32> to vector<1x128xf32>
    %381 = vector.extract_strided_slice %367 {offsets = [2, 0], sizes = [1, 128], strides = [1, 1]} : vector<16x128xf32> to vector<1x128xf32>
    %382 = vector.extract_strided_slice %367 {offsets = [1, 0], sizes = [1, 128], strides = [1, 1]} : vector<16x128xf32> to vector<1x128xf32>
    %383 = vector.extract_strided_slice %367 {offsets = [0, 0], sizes = [1, 128], strides = [1, 1]} : vector<16x128xf32> to vector<1x128xf32>
    %384 = tpu.concatenate %368, %369, %370, %371, %372, %373, %374, %375, %376, %377, %378, %379, %380, %381, %382, %383 in 0 : vector<1x128xf32>, vector<1x128xf32>, vector<1x128xf32>, vector<1x128xf32>, vector<1x128xf32>, vector<1x128xf32>, vector<1x128xf32>, vector<1x128xf32>, vector<1x128xf32>, vector<1x128xf32>, vector<1x128xf32>, vector<1x128xf32>, vector<1x128xf32>, vector<1x128xf32>, vector<1x128xf32>, vector<1x128xf32> -> vector<16x128xf32>
    %385 = vector.extract_strided_slice %367 {offsets = [0, 0], sizes = [16, 32], strides = [1, 1]} : vector<16x128xf32> to vector<16x32xf32>
    %386 = vector.extract_strided_slice %384 {offsets = [0, 32], sizes = [16, 32], strides = [1, 1]} : vector<16x128xf32> to vector<16x32xf32>
    %387 = tpu.concatenate %385, %386 in 1 : vector<16x32xf32>, vector<16x32xf32> -> vector<16x64xf32>
    %388 = vector.extract_strided_slice %367 {offsets = [0, 64], sizes = [8, 32], strides = [1, 1]} : vector<16x128xf32> to vector<8x32xf32>
    %389 = vector.extract_strided_slice %384 {offsets = [8, 96], sizes = [8, 32], strides = [1, 1]} : vector<16x128xf32> to vector<8x32xf32>
    %390 = tpu.concatenate %388, %389 in 1 : vector<8x32xf32>, vector<8x32xf32> -> vector<8x64xf32>
    %391 = vector.extract_strided_slice %2 {offsets = [1, 0], sizes = [1, 16], strides = [1, 1]} : vector<2x16xf32> to vector<1x16xf32>
    %392 = vector.extract_strided_slice %3 {offsets = [1, 0], sizes = [1, 8], strides = [1, 1]} : vector<2x8xf32> to vector<1x8xf32>
    %cst_90 = arith.constant dense<0.000000e+00> : vector<1x8xf32>
    %393 = tpu.matmul %245, %390, %cst_90 {dimension_numbers = #tpu.dot_dimension_numbers<[1], [1], [0], [0], [0, 0, 1, 0], [], []>} : vector<1x64xf32>, vector<8x64xf32>, vector<1x8xf32> -> vector<1x8xf32>
    %394 = vector.broadcast %246 : vector<1x1xf32> to vector<1x8xf32>
    %395 = arith.addf %393, %394 : vector<1x8xf32>
    %cst_91 = arith.constant 5.000000e-01 : f32
    %396 = vector.broadcast %cst_91 : f32 to vector<1x8xf32>
    %397 = arith.cmpf ogt, %392, %396 : vector<1x8xf32>
    %cst_92 = arith.constant -1.000000e+30 : f32
    %398 = vector.broadcast %cst_92 : f32 to vector<1x8xf32>
    %399 = arith.select %397, %398, %395 : vector<1x8xi1>, vector<1x8xf32>
    %cst_93 = arith.constant dense<0xFF800000> : vector<1xf32>
    %400 = vector.multi_reduction <maximumf>, %399, %cst_93 [1] : vector<1x8xf32> to vector<1xf32>
    %401 = vector.shape_cast %400 : vector<1xf32> to vector<1x1xf32>
    %402 = vector.broadcast %401 : vector<1x1xf32> to vector<1x8xf32>
    %403 = arith.subf %399, %402 : vector<1x8xf32>
    %404 = math.exp %403 : vector<1x8xf32>
    %cst_94 = arith.constant dense<0.000000e+00> : vector<1xf32>
    %405 = vector.multi_reduction <add>, %404, %cst_94 [1] : vector<1x8xf32> to vector<1xf32>
    %406 = vector.shape_cast %405 : vector<1xf32> to vector<1x1xf32>
    %407 = vector.broadcast %406 : vector<1x1xf32> to vector<1x8xf32>
    %408 = arith.divf %404, %407 : vector<1x8xf32>
    %cst_95 = arith.constant dense<0.000000e+00> : vector<1x64xf32>
    %409 = tpu.matmul %408, %390, %cst_95 {dimension_numbers = #tpu.dot_dimension_numbers<[1], [0], [0], [1], [0, 0, 1, 1], [], []>} : vector<1x8xf32>, vector<8x64xf32>, vector<1x64xf32> -> vector<1x64xf32>
    %cst_96 = arith.constant dense<0.000000e+00> : vector<1x64xf32>
    %410 = tpu.matmul %409, %247, %cst_96 {dimension_numbers = #tpu.dot_dimension_numbers<[1], [0], [0], [1], [0, 0, 1, 1], [], []>} : vector<1x64xf32>, vector<64x64xf32>, vector<1x64xf32> -> vector<1x64xf32>
    %411 = arith.addf %410, %248 : vector<1x64xf32>
    %cst_97 = arith.constant dense<0.000000e+00> : vector<1x16xf32>
    %412 = tpu.matmul %411, %387, %cst_97 {dimension_numbers = #tpu.dot_dimension_numbers<[1], [1], [0], [0], [0, 0, 1, 0], [], []>} : vector<1x64xf32>, vector<16x64xf32>, vector<1x16xf32> -> vector<1x16xf32>
    %cst_98 = arith.constant 5.000000e-01 : f32
    %413 = vector.broadcast %cst_98 : f32 to vector<1x16xf32>
    %414 = arith.cmpf ogt, %391, %413 : vector<1x16xf32>
    %cst_99 = arith.constant -1.000000e+30 : f32
    %415 = vector.broadcast %cst_99 : f32 to vector<1x16xf32>
    %416 = arith.select %414, %415, %412 : vector<1x16xi1>, vector<1x16xf32>
    %cst_100 = arith.constant dense<0xFF800000> : vector<1xf32>
    %417 = vector.multi_reduction <maximumf>, %416, %cst_100 [1] : vector<1x16xf32> to vector<1xf32>
    %418 = vector.shape_cast %417 : vector<1xf32> to vector<1x1xf32>
    %419 = vector.broadcast %418 : vector<1x1xf32> to vector<1x16xf32>
    %420 = arith.subf %416, %419 : vector<1x16xf32>
    %421 = math.exp %420 : vector<1x16xf32>
    %cst_101 = arith.constant dense<0.000000e+00> : vector<1xf32>
    %422 = vector.multi_reduction <add>, %421, %cst_101 [1] : vector<1x16xf32> to vector<1xf32>
    %423 = vector.shape_cast %422 : vector<1xf32> to vector<1x1xf32>
    %424 = math.log %423 : vector<1x1xf32>
    %425 = vector.broadcast %424 : vector<1x1xf32> to vector<1x16xf32>
    %426 = arith.subf %420, %425 : vector<1x16xf32>
    %427 = vector.broadcast %423 : vector<1x1xf32> to vector<1x16xf32>
    %428 = arith.divf %421, %427 : vector<1x16xf32>
    %cst_102 = arith.constant dense<0.000000e+00> : vector<1x64xf32>
    %429 = tpu.matmul %428, %387, %cst_102 {dimension_numbers = #tpu.dot_dimension_numbers<[1], [0], [0], [1], [0, 0, 1, 1], [], []>} : vector<1x16xf32>, vector<16x64xf32>, vector<1x64xf32> -> vector<1x64xf32>
    %430 = vector.extract_strided_slice %249 {offsets = [0, 0], sizes = [64, 64], strides = [1, 1]} : vector<128x64xf32> to vector<64x64xf32>
    %cst_103 = arith.constant dense<0.000000e+00> : vector<1x64xf32>
    %431 = tpu.matmul %409, %430, %cst_103 {dimension_numbers = #tpu.dot_dimension_numbers<[1], [0], [0], [1], [0, 0, 1, 1], [], []>} : vector<1x64xf32>, vector<64x64xf32>, vector<1x64xf32> -> vector<1x64xf32>
    %432 = vector.extract_strided_slice %249 {offsets = [64, 0], sizes = [64, 64], strides = [1, 1]} : vector<128x64xf32> to vector<64x64xf32>
    %cst_104 = arith.constant dense<0.000000e+00> : vector<1x64xf32>
    %433 = tpu.matmul %429, %432, %cst_104 {dimension_numbers = #tpu.dot_dimension_numbers<[1], [0], [0], [1], [0, 0, 1, 1], [], []>} : vector<1x64xf32>, vector<64x64xf32>, vector<1x64xf32> -> vector<1x64xf32>
    %434 = arith.addf %431, %433 : vector<1x64xf32>
    %435 = arith.addf %434, %250 : vector<1x64xf32>
    %cst_105 = arith.constant dense<0.000000e+00> : vector<1x16xf32>
    %436 = tpu.matmul %435, %387, %cst_105 {dimension_numbers = #tpu.dot_dimension_numbers<[1], [1], [0], [0], [0, 0, 1, 0], [], []>} : vector<1x64xf32>, vector<16x64xf32>, vector<1x16xf32> -> vector<1x16xf32>
    %cst_106 = arith.constant 5.000000e-01 : f32
    %437 = vector.broadcast %cst_106 : f32 to vector<1x16xf32>
    %438 = arith.cmpf ogt, %391, %437 : vector<1x16xf32>
    %cst_107 = arith.constant -1.000000e+30 : f32
    %439 = vector.broadcast %cst_107 : f32 to vector<1x16xf32>
    %440 = arith.select %438, %439, %436 : vector<1x16xi1>, vector<1x16xf32>
    %cst_108 = arith.constant dense<0xFF800000> : vector<1xf32>
    %441 = vector.multi_reduction <maximumf>, %440, %cst_108 [1] : vector<1x16xf32> to vector<1xf32>
    %442 = vector.shape_cast %441 : vector<1xf32> to vector<1x1xf32>
    %443 = vector.broadcast %442 : vector<1x1xf32> to vector<1x16xf32>
    %444 = arith.subf %440, %443 : vector<1x16xf32>
    %445 = math.exp %444 : vector<1x16xf32>
    %cst_109 = arith.constant dense<0.000000e+00> : vector<1xf32>
    %446 = vector.multi_reduction <add>, %445, %cst_109 [1] : vector<1x16xf32> to vector<1xf32>
    %447 = vector.shape_cast %446 : vector<1xf32> to vector<1x1xf32>
    %448 = math.log %447 : vector<1x1xf32>
    %449 = vector.broadcast %448 : vector<1x1xf32> to vector<1x16xf32>
    %450 = arith.subf %444, %449 : vector<1x16xf32>
    %451 = tpu.concatenate %326, %426 in 0 : vector<1x16xf32>, vector<1x16xf32> -> vector<2x16xf32>
    %c0_110 = arith.constant 0 : index
    %c0_111 = arith.constant 0 : index
    %452 = vector.load %arg18[%c0_110, %c0_111] : memref<2x16xf32, #tpu.memory_space<vmem>>, vector<2x16xf32>
    tpu.vector_store %arg18[%c0_110, %c0_111], %451 {strides = array<i32>} : memref<2x16xf32, #tpu.memory_space<vmem>>, vector<2x16xf32>,
    %453 = tpu.concatenate %350, %450 in 0 : vector<1x16xf32>, vector<1x16xf32> -> vector<2x16xf32>
    %c0_112 = arith.constant 0 : index
    %c0_113 = arith.constant 0 : index
    %454 = vector.load %arg19[%c0_112, %c0_113] : memref<2x16xf32, #tpu.memory_space<vmem>>, vector<2x16xf32>
    tpu.vector_store %arg19[%c0_112, %c0_113], %453 {strides = array<i32>} : memref<2x16xf32, #tpu.memory_space<vmem>>, vector<2x16xf32>,
    return
  }
  func.func @transform_0(%arg0: i32) -> (i32, i32) {
    %c0_i32 = arith.constant 0 : i32
    %c0_i32_0 = arith.constant 0 : i32
    %c0_i32_1 = arith.constant 0 : i32
    return %c0_i32, %c0_i32_0 : i32, i32
  }
  func.func @transform_1(%arg0: i32) -> (i32, i32) {
    %c0_i32 = arith.constant 0 : i32
    %c0_i32_0 = arith.constant 0 : i32
    %c0_i32_1 = arith.constant 0 : i32
    return %c0_i32, %c0_i32_0 : i32, i32
  }
  func.func @transform_2(%arg0: i32) -> (i32, i32) {
    %c0_i32 = arith.constant 0 : i32
    %c0_i32_0 = arith.constant 0 : i32
    %c0_i32_1 = arith.constant 0 : i32
    return %c0_i32, %c0_i32_0 : i32, i32
  }
  func.func @transform_3(%arg0: i32) -> (i32, i32) {
    %c0_i32 = arith.constant 0 : i32
    %c0_i32_0 = arith.constant 0 : i32
    %c0_i32_1 = arith.constant 0 : i32
    return %c0_i32, %c0_i32_0 : i32, i32
  }
  func.func @transform_4(%arg0: i32) -> (i32, i32) {
    %c0_i32 = arith.constant 0 : i32
    %c0_i32_0 = arith.constant 0 : i32
    %c0_i32_1 = arith.constant 0 : i32
    return %c0_i32, %c0_i32_0 : i32, i32
  }
  func.func @transform_5(%arg0: i32) -> (i32, i32) {
    %c0_i32 = arith.constant 0 : i32
    %c0_i32_0 = arith.constant 0 : i32
    %c0_i32_1 = arith.constant 0 : i32
    return %c0_i32, %c0_i32_0 : i32, i32
  }
  func.func @transform_6(%arg0: i32) -> (i32, i32) {
    %c0_i32 = arith.constant 0 : i32
    %c0_i32_0 = arith.constant 0 : i32
    %c0_i32_1 = arith.constant 0 : i32
    return %c0_i32, %c0_i32_0 : i32, i32
  }
  func.func @transform_7(%arg0: i32) -> (i32, i32) {
    %c0_i32 = arith.constant 0 : i32
    %c0_i32_0 = arith.constant 0 : i32
    %c0_i32_1 = arith.constant 0 : i32
    return %c0_i32, %c0_i32_0 : i32, i32
  }
  func.func @transform_8(%arg0: i32) -> (i32, i32) {
    %c0_i32 = arith.constant 0 : i32
    %c0_i32_0 = arith.constant 0 : i32
    %c0_i32_1 = arith.constant 0 : i32
    return %c0_i32, %c0_i32_0 : i32, i32
  }
  func.func @transform_9(%arg0: i32) -> (i32, i32) {
    %c0_i32 = arith.constant 0 : i32
    %c0_i32_0 = arith.constant 0 : i32
    %c0_i32_1 = arith.constant 0 : i32
    return %c0_i32, %c0_i32_0 : i32, i32
  }
  func.func @transform_10(%arg0: i32) -> (i32, i32) {
    %c0_i32 = arith.constant 0 : i32
    %c0_i32_0 = arith.constant 0 : i32
    %c0_i32_1 = arith.constant 0 : i32
    return %c0_i32, %c0_i32_0 : i32, i32
  }
  func.func @transform_11(%arg0: i32) -> (i32, i32) {
    %c0_i32 = arith.constant 0 : i32
    %c0_i32_0 = arith.constant 0 : i32
    %c0_i32_1 = arith.constant 0 : i32
    return %c0_i32, %c0_i32_0 : i32, i32
  }
  func.func @transform_12(%arg0: i32) -> (i32, i32) {
    %c0_i32 = arith.constant 0 : i32
    %c0_i32_0 = arith.constant 0 : i32
    %c0_i32_1 = arith.constant 0 : i32
    return %c0_i32, %c0_i32_0 : i32, i32
  }
  func.func @transform_13(%arg0: i32) -> (i32, i32) {
    %c0_i32 = arith.constant 0 : i32
    %c0_i32_0 = arith.constant 0 : i32
    %c0_i32_1 = arith.constant 0 : i32
    return %c0_i32, %c0_i32_0 : i32, i32
  }
  func.func @transform_14(%arg0: i32) -> (i32, i32) {
    %c0_i32 = arith.constant 0 : i32
    %c0_i32_0 = arith.constant 0 : i32
    %c0_i32_1 = arith.constant 0 : i32
    return %c0_i32, %c0_i32_0 : i32, i32
  }
  func.func @transform_15(%arg0: i32) -> (i32, i32) {
    %c0_i32 = arith.constant 0 : i32
    %c0_i32_0 = arith.constant 0 : i32
    %c0_i32_1 = arith.constant 0 : i32
    return %c0_i32, %c0_i32_0 : i32, i32
  }
  func.func @transform_16(%arg0: i32) -> (i32, i32) {
    %c0_i32 = arith.constant 0 : i32
    %c0_i32_0 = arith.constant 0 : i32
    %c0_i32_1 = arith.constant 0 : i32
    return %c0_i32, %c0_i32_0 : i32, i32
  }
  func.func @transform_17(%arg0: i32) -> (i32, i32) {
    %c0_i32 = arith.constant 0 : i32
    %c0_i32_0 = arith.constant 0 : i32
    %c0_i32_1 = arith.constant 0 : i32
    return %c0_i32, %c0_i32_0 : i32, i32
  }
  func.func @transform_18(%arg0: i32) -> (i32, i32) {
    %c0_i32 = arith.constant 0 : i32
    %c0_i32_0 = arith.constant 0 : i32
    %c0_i32_1 = arith.constant 0 : i32
    return %c0_i32, %c0_i32_0 : i32, i32
  }
}

</mosaic_0001>

<bundles_post_ra>
// kernel: drqa_forward.1
= control target key start
LH: loop header
LB: loop body
LE: loop exit
PB: predicated region body
PF: predicated region fallthrough
CT: control target
= control target key end

     0   :  { %vm76_vm0 = vcmask 261120   ;;  %v1965_v17 = vmov 0   ;;  %vm191_vm3 = vcmask 64512   ;;  %s3064_s4 = inlined_call_operand.vmem [shape: f32[32,32], index: 4, kind: input, shape index: {}]   ;;  %s3065_s1 = inlined_call_operand.vmem [shape: f32[16,32], index: 1, kind: input, shape index: {}]   ;;  %s3066_s5 = inlined_call_operand.vmem [shape: f32[1,32], index: 5, kind: input, shape index: {}]   ;;  %s3067_s0 = inlined_call_operand.vmem [shape: f32[32,32], index: 0, kind: input, shape index: {}]   ;;  %s3068_s3 = inlined_call_operand.vmem [shape: f32[2,8], index: 3, kind: input, shape index: {}]   ;;  %s3069_s6 = inlined_call_operand.vmem [shape: f32[64,64], index: 6, kind: input, shape index: {}]   ;;  %s3070_s8 = inlined_call_operand.vmem [shape: f32[32,64], index: 8, kind: input, shape index: {}]   ;;  %s3071_s10 = inlined_call_operand.vmem [shape: f32[128,128], index: 10, kind: input, shape index: {}]   ;;  %s3072_s7 = inlined_call_operand.vmem [shape: f32[1,64], index: 7, kind: input, shape index: {}]   ;;  %s3073_s9 = inlined_call_operand.vmem [shape: f32[1,64], index: 9, kind: input, shape index: {}]   ;;  %s3074_s12 = inlined_call_operand.<no memory space> [shape: f32[1,1], index: 12, kind: input, shape index: {}]   ;;  %s3075_s11 = inlined_call_operand.vmem [shape: f32[1,64], index: 11, kind: input, shape index: {}]   ;;  %s3076_s13 = inlined_call_operand.vmem [shape: f32[64,64], index: 13, kind: input, shape index: {}]   ;;  %s3077_s15 = inlined_call_operand.vmem [shape: f32[128,64], index: 15, kind: input, shape index: {}]   ;;  %s3078_s14 = inlined_call_operand.vmem [shape: f32[1,64], index: 14, kind: input, shape index: {}]   ;;  %s3079_s2 = inlined_call_operand.vmem [shape: f32[2,16], index: 2, kind: input, shape index: {}]   ;;  %s3080_s16 = inlined_call_operand.vmem [shape: f32[1,64], index: 16, kind: input, shape index: {}]   ;;  %s3081_s17 = inlined_call_operand.vmem [shape: f32[2,16], index: 17, kind: output, shape index: {0}]   ;;  %s3082_s18 = inlined_call_operand.vmem [shape: f32[2,16], index: 18, kind: output, shape index: {1}]  }
   0x1   :  { %3085 = sst [smem:[#allocation3_spill]] %s3064_s4  ;;  %v2084_v5 = vld [vmem:[%s3067_s0] sm:$0xff]  ;;  %v2094_v6 = vld [vmem:[%s3067_s0 + $0x8] sm:$0xff]  ;;  %1884 = vset.pattern.permute.xlu2 %v1965_v17  ;;  %1885 = vset.pattern.permute.xlu0 %v1965_v17  ;;  %v2127_v28 = vld [vmem:[%s3067_s0 + $0x10] sm:$0xff]  ;;  %s1967_s4 = smov 64  }
   0x2   :  { %3086 = sst [smem:[#allocation4_spill]] %s3065_s1  ;;  %v2112_v18 = vld [vmem:[%s3068_s3] sm:$0x3]  ;;  %v2137_v29 = vld [vmem:[%s3067_s0 + $0x18] sm:$0xff] }
   0x3   :  { %3087 = sst [smem:[#allocation5_spill]] %s3066_s5  ;;  %vm185_vm1 = vcmp.gt.f32.partialorder %v2112_v18, 0.5 }
   0x4   :  { %s3088_s29 = sld [smem:[#allocation3_spill]]  ;;  %v186_v19 = vsel %vm185_vm1, 1, %v1965_v17 }
   0x5   :  { %s3089_s20 = sld [smem:[#allocation4_spill]]  ;;  %v187_v20 = vperm.slane %v186_v19, 0  ;;  %v301_v57 = vperm.slane %v186_v19, 1 }
   0x6   :  { %s3090_s30 = sld [smem:[#allocation5_spill]] }
   0x7   :  { %vm188_vm2 = vcmp.eq.s32.totalorder %v187_v20, 1  ;;  %vm302_vm8 = vcmp.eq.s32.totalorder %v301_v57, 1 }
   0xa   :  { %v71_v0 = vld [vmem:[%s3088_s29 + $0x18] sm:$0xff]  ;;  %v70_v1 = vld [vmem:[%s3088_s29 + $0x10] sm:$0xff]  ;;  %v69_v3 = vld [vmem:[%s3088_s29 + $0x8] sm:$0xff] }
   0xb   :  { %140 = vmatpush.msra.mxu1 %v71_v0  ;;  %101 = vmatpush.msra.mxu0 %v71_v0  ;;  %v2072_v2 = vld [vmem:[%s3089_s20] sm:$0xff]  ;;  %v2122_v27 = vld [vmem:[%s3089_s20 + $0x8] sm:$0xff] }
   0xc   :  { %1880 = vmatpush.msra.mxu3 %v2072_v2  ;;  %v68_v4 = vld [vmem:[%s3088_s29] sm:$0xff] }
   0xd   :  { %141 = vmatpush.msra.mxu1 %v70_v1  ;;  %102 = vmatpush.msra.mxu0 %v70_v1  ;;  %v2101_v7 = vld [vmem:[%s3090_s30] ss:$0 sm:$0xff] }
   0xf   :  { %142 = vmatpush.msra.mxu1 %v69_v3  ;;  %103 = vmatpush.msra.mxu0 %v69_v3 }
  0x11   :  { %143 = vmatpush.msra.mxu1 %v68_v4  ;;  %104 = vmatpush.msra.mxu0 %v68_v4 }
  0x12   :  { %1832 = vmatmul.msk.f32.vlgmr.msra.gmra.mxu1 %vm76_vm0, %v2072_v2  ;;  %1828 = vmatmul.msk.f32.vlgmr.msra.gmra.mxu0 %vm76_vm0, %v2084_v5 }
  0x13   :  { %261 = vmatpush.msrb.mxu1 %v2072_v2 }
  0x1a   :  { %1829 = vmatmul.msk.f32.gmra.mxu0 %vm76_vm0, %v2094_v6  ;;  %1833 = vmatmul.msk.f32.gmra.mxu1 %vm76_vm0, %v2122_v27 }
  0x22   :  { %1830 = vmatmul.msk.f32.gmra.mxu0 %vm76_vm0, %v2127_v28 }
  0x2a   :  { %1831 = vmatmul.msk.f32.gmra.mxu0 %vm76_vm0, %v2137_v29 }
  0x8f   :  { %v145_v8 = vpop.f32.mrf.mxu1  ;;  %v106_v9 = vpop.f32.mrf.mxu0 }
  0x90   :  { %v146_v10 = vadd.f32 %v2101_v7, %v145_v8  ;;  %v107_v11 = vadd.f32 %v2101_v7, %v106_v9 }
  0x92   :  { %v151_v12 = vmax.f32 %v146_v10, 0.0  ;;  %v118_v13 = vmax.f32 %v107_v11, 0.0 }
  0x94   :  { %1834 = vmatpush.xpose.msk.msra.mxu2 %vm76_vm0, %v151_v12 }
  0x97   :  { %1835 = vmatmul.msk.f32.vlgmr.msra.gmra.mxu2 %vm76_vm0, %v118_v13  ;;  %v109_v14 = vpop.f32.mrf.mxu0  ;;  %v148_v35 = vpop.f32.mrf.mxu1 }
  0x98   :  { %v110_v15 = vadd.f32 %v2101_v7, %v109_v14  ;;  %374 = vmatpush.msrb.mxu2 %v2122_v27  ;;  %v149_v36 = vadd.f32 %v2101_v7, %v148_v35  ;;  %v384_v35 = vld [vmem:[%s3069_s6 + $0x10] sm:$0xff] }
  0x9a   :  { %v119_v16 = vmax.f32 %v110_v15, 0.0  ;;  %v152_v37 = vmax.f32 %v149_v36, 0.0  ;;  %v389_v36 = vld [vmem:[%s3069_s6 + $0x38] sm:$0xff] }
  0x9b   :  { %420 = vmatpush.msra.mxu1 %v389_v36 }
  0x9c   :  { %1839 = vmatpush.xpose.msk.msrb.mxu3 %vm76_vm0, %v152_v37  ;;  %v394_v37 = vld [vmem:[%s3070_s8 + $0x18] sm:$0xff] }
  0x9d   :  { %488 = vmatpush.msra.mxu2 %v394_v37 }
  0x9f   :  { %1836 = vmatmul.msk.f32.gmra.mxu2 %vm76_vm0, %v119_v16  ;;  %v112_v47 = vpop.f32.mrf.mxu0 }
  0xa0   :  { %v113_v51 = vadd.f32 %v2101_v7, %v112_v47 }
  0xa2   :  { %v120_v52 = vmax.f32 %v113_v51, 0.0 }
  0xa7   :  { %v115_v53 = vpop.f32.mrf.mxu0 }
  0xa8   :  { %v116_v54 = vadd.f32 %v2101_v7, %v115_v53  ;;  %v2208_v53 = vld [vmem:[%s3071_s10 + $0x78] sm:$0xff] }
  0xa9   :  { %645 = vmatpush.msrb.mxu0 %v2208_v53 }
  0xaa   :  { %v121_v55 = vmax.f32 %v116_v54, 0.0  ;;  %v1966_v54 = vmov 0.0  }
 0x11a   :  { %v179_v21 = vpop.f32.mrf.mxu2 }
 0x11b   :  { %v189_v22 = vsel %vm188_vm2, -1e+30, %v179_v21 }
 0x11c   :  { %v192_v23 = vsel %vm191_vm3, %v189_v22, -inf }
 0x11d   :  { %193 = vmax.xlane.f32.xlu1 %v192_v23 }
 0x122   :  { %v182_v24 = vpop.f32.mrf.mxu2 }
 0x123   :  { %v190_v25 = vsel %vm188_vm2, -1e+30, %v182_v24 }
 0x124   :  { %v195_v26 = vsel %vm191_vm3, %v190_v25, -inf }
 0x125   :  { %196 = vmax.xlane.f32.xlu0 %v195_v26 }
 0x190   :  { %v194_v58 = vpop.xlane.xlu1 %193 }
 0x191   :  { %v198_v60 = vsub.f32 %v189_v22, %v194_v58 }
 0x193   :  { %v200_v63 = vmul.f32 1.442695, %v198_v60 }
 0x198   :  { %v197_v30 = vpop.xlane.xlu0 %196 }
 0x199   :  { %v199_v31 = vsub.f32 %v190_v25, %v197_v30 }
 0x19b   :  { %v202_v32 = vmul.f32 1.442695, %v199_v31 }
 0x19d   :  { %1889 = vpow2.f32 %v202_v32 }
 0x1a3   :  { %v1890_v33 = vpop.eup %1889 }
 0x1a4   :  { %v207_v34 = vsel %vm191_vm3, %v1890_v33, 0.0 }
 0x1a5   :  { %208 = vadd.xlane.f32.xlu0 %v207_v34  ;;  %v385_v34 = vld [vmem:[%s3069_s6 + $0x18] sm:$0xff] }
 0x218   :  { %v209_v38 = vpop.xlane.xlu0 %208 }
 0x219   :  { %1891 = vrcp.f32 %v209_v38  ;;  %v236_v42 = vand.u32 2147483648, %v209_v38  ;;  %v234_v44 = vand.u32 2147483647, %v209_v38  ;;  %vm230_vm5 = vweird.f32 %v209_v38 }
 0x21a   :  { %1893 = vpow2.f32 %v200_v63 }
 0x21b   :  { %v237_v46 = vor.u32 1.1754944e-38, %v236_v42  ;;  %vm235_vm7 = vcmp.eq.f32.partialorder %v234_v44, 8.507059e+37  ;;  %v393_v42 = vld [vmem:[%s3070_s8 + $0x10] sm:$0xff]  ;;  %v392_v44 = vld [vmem:[%s3070_s8 + $0x8] sm:$0xff] }
 0x21c   :  { %489 = vmatpush.msra.mxu2 %v393_v42 }
 0x21e   :  { %490 = vmatpush.msra.mxu2 %v392_v44 }
 0x21f   :  { %v1892_v39 = vpop.eup %1891 }
 0x220   :  { %v226_v40 = vmul.f32 %v1892_v39, %v209_v38  ;;  %vm231_vm4 = vweird.f32 %v1892_v39  ;;  %v1894_v4 = vpop.eup %1893  ;;  %v383_v38 = vld [vmem:[%s3069_s6 + $0x8] sm:$0xff] }
 0x221   :  { %vm232_vm6 = vmor %vm230_vm5, %vm231_vm4  ;;  %v204_v7 = vsel %vm191_vm3, %v1894_v4, 0.0 }
 0x222   :  { %v227_v41 = vsub.f32 1.0, %v226_v40  ;;  %v388_v40 = vld [vmem:[%s3069_s6 + $0x30] sm:$0xff] }
 0x223   :  { %421 = vmatpush.msra.mxu1 %v388_v40 }
 0x224   :  { %v228_v43 = vmul.f32 %v1892_v39, %v227_v41  ;;  %v387_v41 = vld [vmem:[%s3069_s6 + $0x28] sm:$0xff] }
 0x225   :  { %422 = vmatpush.msra.mxu1 %v387_v41 }
 0x226   :  { %v229_v45 = vadd.f32 %v1892_v39, %v228_v43 }
 0x228   :  { %v233_v48 = vsel %vm232_vm6, %v1892_v39, %v229_v45  ;;  %v382_v39 = vld [vmem:[%s3069_s6] sm:$0xff] }
 0x229   :  { %v238_v49 = vsel %vm235_vm7, %v237_v46, %v233_v48  ;;  %v391_v45 = vld [vmem:[%s3070_s8] sm:$0xff] }
 0x22a   :  { %v239_v50 = vmul.f32 %v1890_v33, %v238_v49  ;;  %491 = vmatpush.msra.mxu2 %v391_v45 }
 0x22c   :  { %1838 = vmatmul.msk.f32.vlgmr.msra.gmra.mxu3 %vm191_vm3, %v239_v50 }
 0x22d   :  { %449 = vmatpush.msra.mxu3 %v385_v34  ;;  %v1888_v34 = vld [vmem:[%s3073_s9] ss:$0 sm:$0xff] }
 0x22f   :  { %450 = vmatpush.msra.mxu3 %v384_v35 }
 0x231   :  { %451 = vmatpush.msra.mxu3 %v383_v38 }
 0x233   :  { %452 = vmatpush.msra.mxu3 %v382_v39 }
 0x234   :  { %1840 = vmatmul.msk.f32.vlgmr.msrb.gmra.mxu3 %vm76_vm0, %v120_v52 }
 0x235   :  { %698 = vmatpush.msrb.mxu3 %v2208_v53 }
 0x23c   :  { %1841 = vmatmul.msk.f32.gmra.mxu3 %vm76_vm0, %v121_v55 }
 0x244   :  { %1848 = vmatmul.msk.f32.vlgmr.msra.gmra.mxu3 %vm76_vm0, %v2084_v5  ;;  %v386_v5 = vld [vmem:[%s3069_s6 + $0x20] sm:$0xff] }
 0x245   :  { %423 = vmatpush.msra.mxu1 %v386_v5 }
 0x24c   :  { %1849 = vmatmul.msk.f32.gmra.mxu3 %vm76_vm0, %v2094_v6  ;;  %v2213_v6 = vld [vmem:[%s3071_s10 + $0x70] sm:$0xff] }
 0x24d   :  { %646 = vmatpush.msrb.mxu0 %v2213_v6  ;;  %699 = vmatpush.msrb.mxu3 %v2213_v6 }
 0x254   :  { %1850 = vmatmul.msk.f32.gmra.mxu3 %vm76_vm0, %v2127_v28  ;;  %v2221_v28 = vld [vmem:[%s3071_s10 + $0x68] sm:$0xff] }
 0x255   :  { %647 = vmatpush.msrb.mxu0 %v2221_v28  ;;  %700 = vmatpush.msrb.mxu3 %v2221_v28 }
 0x25c   :  { %1851 = vmatmul.msk.f32.gmra.mxu3 %vm76_vm0, %v2137_v29  ;;  %v2251_v29 = vld [vmem:[%s3071_s10 + $0x60] sm:$0xff] }
 0x25d   :  { %648 = vmatpush.msrb.mxu0 %v2251_v29  ;;  %701 = vmatpush.msrb.mxu3 %v2251_v29 }
 0x2af   :  { %v2149_v56 = vpop.f32.mrf.mxu3 }
 0x2b7   :  { %v295_v59 = vpop.f32.mrf.mxu3 }
 0x2b8   :  { %v303_v61 = vsel %vm302_vm8, -1e+30, %v295_v59 }
 0x2b9   :  { %v305_v62 = vsel %vm191_vm3, %v303_v61, -inf }
 0x2ba   :  { %306 = vmax.xlane.f32.xlu1 %v305_v62 }
 0x2bf   :  { %v298_v0 = vpop.f32.mrf.mxu3 }
 0x2c0   :  { %v304_v1 = vsel %vm302_vm8, -1e+30, %v298_v0  ;;  %vm517_vm8 = vcmask 1040384  }
 0x2c1   :  { %v308_v3 = vsel %vm191_vm3, %v304_v1, -inf }
 0x2c2   :  { %309 = vmax.xlane.f32.xlu2 %v308_v3 }
 0x2ca   :  { %205 = vadd.xlane.f32.xlu2 %v204_v7 }
 0x32d   :  { %v307_v8 = vpop.xlane.xlu1 %306 }
 0x32e   :  { %v311_v9 = vsub.f32 %v303_v61, %v307_v8 }
 0x330   :  { %v313_v10 = vmul.f32 1.442695, %v311_v9 }
 0x332   :  { %1895 = vpow2.f32 %v313_v10 }
 0x335   :  { %v310_v11 = vpop.xlane.xlu2 %309 }
 0x336   :  { %v312_v12 = vsub.f32 %v304_v1, %v310_v11 }
 0x338   :  { %v2154_v13 = vpop.eup %1895  ;;  %v315_v14 = vmul.f32 1.442695, %v312_v12  ;;  %v2256_v12 = vld [vmem:[%s3071_s10 + $0x58] sm:$0xff] }
 0x339   :  { %v317_v15 = vsel %vm191_vm3, %v2154_v13, 0.0  ;;  %649 = vmatpush.msrb.mxu0 %v2256_v12  ;;  %702 = vmatpush.msrb.mxu3 %v2256_v12 }
 0x33a   :  { %1897 = vpow2.f32 %v315_v14  ;;  %318 = vadd.xlane.f32.xlu0 %v317_v15  ;;  %v2303_v14 = vld [vmem:[%s3071_s10 + $0x30] sm:$0xff]  ;;  %v2312_v15 = vld [vmem:[%s3071_s10 + $0x28] sm:$0xff] }
 0x33d   :  { %v206_v16 = vpop.xlane.xlu2 %205 }
 0x33e   :  { %1899 = vrcp.f32 %v206_v16  ;;  %v221_v23 = vand.u32 2147483648, %v206_v16  ;;  %v219_v25 = vand.u32 2147483647, %v206_v16  ;;  %vm215_vm10 = vweird.f32 %v206_v16 }
 0x340   :  { %v2158_v17 = vpop.eup %1897  ;;  %v222_v30 = vor.u32 1.1754944e-38, %v221_v23  ;;  %vm220_vm12 = vcmp.eq.f32.partialorder %v219_v25, 8.507059e+37  ;;  %v454_v23 = vpop.f32.mrf.mxu3 }
 0x341   :  { %v320_v19 = vsel %vm191_vm3, %v2158_v17, 0.0 }
 0x342   :  { %321 = vadd.xlane.f32.xlu1 %v320_v19  ;;  %v2339_v19 = vld [vmem:[%s3071_s10 + $0x10] sm:$0xff] }
 0x344   :  { %v1900_v20 = vpop.eup %1899 }
 0x345   :  { %v211_v21 = vmul.f32 %v1900_v20, %v206_v16  ;;  %vm216_vm9 = vweird.f32 %v1900_v20  ;;  %v2321_v16 = vld [vmem:[%s3071_s10 + $0x20] sm:$0xff] }
 0x346   :  { %vm217_vm11 = vmor %vm215_vm10, %vm216_vm9  ;;  %vm519_vm9 = vcmask 1041408   ;;  %vm521_vm10 = vcmask 1042432  }
 0x347   :  { %v212_v22 = vsub.f32 1.0, %v211_v21  ;;  %v2353_v21 = vld [vmem:[%s3071_s10] sm:$0xff] }
 0x348   :  { %v457_v36 = vpop.f32.mrf.mxu3 }
 0x349   :  { %v213_v24 = vmul.f32 %v1900_v20, %v212_v22 }
 0x34b   :  { %v214_v26 = vadd.f32 %v1900_v20, %v213_v24  ;;  %v2390_v24 = vld [vmem:[%s3072_s7] ss:$0 sm:$0xff] }
 0x34d   :  { %v218_v31 = vsel %vm217_vm11, %v1900_v20, %v214_v26  ;;  %v2348_v20 = vld [vmem:[%s3071_s10 + $0x8] sm:$0xff]  ;;  %vm523_vm11 = vcmask 1043456  }
 0x34e   :  { %v223_v32 = vsel %vm220_vm12, %v222_v30, %v218_v31  ;;  %vm525_vm12 = vcmask 1044480  }
 0x34f   :  { %v224_v33 = vmul.f32 %v1894_v4, %v223_v32 }
 0x351   :  { %1837 = vmatmul.msk.f32.vlgmr.msrb.gmra.mxu1 %vm191_vm3, %v224_v33 }
 0x352   :  { %671 = vmatpush.msrb.mxu1 %v2208_v53 }
 0x354   :  { %672 = vmatpush.msrb.mxu1 %v2213_v6 }
 0x356   :  { %673 = vmatpush.msrb.mxu1 %v2221_v28 }
 0x358   :  { %674 = vmatpush.msrb.mxu1 %v2251_v29 }
 0x35a   :  { %675 = vmatpush.msrb.mxu1 %v2256_v12 }
 0x35b   :  { %561 = vrot.lane.b32.xlu1 %v1966_v54, %s1967_s4 }
 0x3ad   :  { %v319_v43 = vpop.xlane.xlu0 %318 }
 0x3ae   :  { %1901 = vrcp.f32 %v319_v43  ;;  %v334_v50 = vand.u32 2147483648, %v319_v43  ;;  %v332_v52 = vand.u32 2147483647, %v319_v43  ;;  %vm328_vm14 = vweird.f32 %v319_v43 }
 0x3b0   :  { %v335_v58 = vor.u32 1.1754944e-38, %v334_v50  ;;  %vm333_vm2 = vcmp.eq.f32.partialorder %v332_v52, 8.507059e+37 }
 0x3b4   :  { %v1902_v46 = vpop.eup %1901 }
 0x3b5   :  { %v324_v47 = vmul.f32 %v1902_v46, %v319_v43  ;;  %v322_v48 = vpop.xlane.xlu1 %321  ;;  %vm329_vm13 = vweird.f32 %v1902_v46 }
 0x3b6   :  { %1903 = vrcp.f32 %v322_v48  ;;  %vm330_vm15 = vmor %vm328_vm14, %vm329_vm13  ;;  %v349_v0 = vand.u32 2147483648, %v322_v48  ;;  %v347_v3 = vand.u32 2147483647, %v322_v48  ;;  %vm343_vm5 = vweird.f32 %v322_v48 }
 0x3b7   :  { %v325_v49 = vsub.f32 1.0, %v324_v47  ;;  %vm527_vm13 = vcmask 1045504   ;;  %vm529_vm14 = vcmask 1046528  }
 0x3b8   :  { %v350_v7 = vor.u32 1.1754944e-38, %v349_v0  ;;  %vm348_vm7 = vcmp.eq.f32.partialorder %v347_v3, 8.507059e+37 }
 0x3b9   :  { %v326_v51 = vmul.f32 %v1902_v46, %v325_v49 }
 0x3bb   :  { %v327_v55 = vadd.f32 %v1902_v46, %v326_v51 }
 0x3bc   :  { %v1904_v57 = vpop.eup %1903 }
 0x3bd   :  { %v339_v59 = vmul.f32 %v1904_v57, %v322_v48  ;;  %v331_v60 = vsel %vm330_vm15, %v1902_v46, %v327_v55  ;;  %vm344_vm4 = vweird.f32 %v1904_v57  ;;  %vm565_vm15 = vcmask 523264  }
 0x3be   :  { %v336_v61 = vsel %vm333_vm2, %v335_v58, %v331_v60  ;;  %vm345_vm6 = vmor %vm343_vm5, %vm344_vm4  ;;  %vm1228_vm2 = vcmask 57344  }
 0x3bf   :  { %v340_v62 = vsub.f32 1.0, %v339_v59  ;;  %v337_v63 = vmul.f32 %v2154_v13, %v336_v61  ;;  %v2294_v13 = vld [vmem:[%s3071_s10 + $0x38] sm:$0xff] }
 0x3c1   :  { %v341_v1 = vmul.f32 %v1904_v57, %v340_v62  ;;  %1842 = vmatmul.msk.f32.vlgmr.msrb.gmra.mxu2 %vm191_vm3, %v337_v63 }
 0x3c2   :  { %725 = vmatpush.msrb.mxu2 %v2208_v53 }
 0x3c3   :  { %v342_v4 = vadd.f32 %v1904_v57, %v341_v1 }
 0x3c4   :  { %726 = vmatpush.msrb.mxu2 %v2213_v6 }
 0x3c5   :  { %v346_v8 = vsel %vm345_vm6, %v1904_v57, %v342_v4 }
 0x3c6   :  { %v351_v9 = vsel %vm348_vm7, %v350_v7, %v346_v8  ;;  %727 = vmatpush.msrb.mxu2 %v2221_v28 }
 0x3c7   :  { %v352_v10 = vmul.f32 %v2158_v17, %v351_v9  ;;  %v2330_v17 = vld [vmem:[%s3071_s10 + $0x18] sm:$0xff] }
 0x3c8   :  { %728 = vmatpush.msrb.mxu2 %v2251_v29 }
 0x3c9   :  { %1843 = vmatmul.msk.f32.gmra.mxu2 %vm191_vm3, %v352_v10 }
 0x3ca   :  { %729 = vmatpush.msrb.mxu2 %v2256_v12 }
 0x3ce   :  { %v263_v11 = vpop.f32.mrf.mxu1 }
 0x3cf   :  { %1844 = vmatmul.msk.f32.vlgmr.msra.gmra.mxu1 %vm76_vm0, %v263_v11 }
 0x3d1   :  { %1852 = vmatmul.msk.f32.vlgmr.msra.gmra.mxu2 %vm76_vm0, %v2072_v2  ;;  %v2263_v2 = vld [vmem:[%s3071_s10 + $0x50] sm:$0xff] }
 0x3d2   :  { %650 = vmatpush.msrb.mxu0 %v2263_v2  ;;  %676 = vmatpush.msrb.mxu1 %v2263_v2 }
 0x3d3   :  { %703 = vmatpush.msrb.mxu3 %v2263_v2  ;;  %730 = vmatpush.msrb.mxu2 %v2263_v2 }
 0x3d7   :  { %1845 = vmatmul.msk.f32.gmra.mxu1 %vm76_vm0, %v2149_v56  ;;  %v2285_v56 = vld [vmem:[%s3071_s10 + $0x40] sm:$0xff] }
 0x3d9   :  { %1853 = vmatmul.msk.f32.gmra.mxu2 %vm76_vm0, %v2122_v27  ;;  %v2272_v27 = vld [vmem:[%s3071_s10 + $0x48] sm:$0xff] }
 0x3da   :  { %651 = vmatpush.msrb.mxu0 %v2272_v27  ;;  %677 = vmatpush.msrb.mxu1 %v2272_v27 }
 0x3db   :  { %704 = vmatpush.msrb.mxu3 %v2272_v27  ;;  %731 = vmatpush.msrb.mxu2 %v2272_v27 }
 0x3dc   :  { %652 = vmatpush.msrb.mxu0 %v2285_v56  ;;  %678 = vmatpush.msrb.mxu1 %v2285_v56 }
 0x3dd   :  { %705 = vmatpush.msrb.mxu3 %v2285_v56  ;;  %732 = vmatpush.msrb.mxu2 %v2285_v56 }
 0x3de   :  { %653 = vmatpush.msrb.mxu0 %v2294_v13  ;;  %679 = vmatpush.msrb.mxu1 %v2294_v13 }
 0x3df   :  { %706 = vmatpush.msrb.mxu3 %v2294_v13  ;;  %733 = vmatpush.msrb.mxu2 %v2294_v13 }
 0x3e0   :  { %654 = vmatpush.msrb.mxu0 %v2303_v14  ;;  %680 = vmatpush.msrb.mxu1 %v2303_v14 }
 0x3e1   :  { %707 = vmatpush.msrb.mxu3 %v2303_v14  ;;  %734 = vmatpush.msrb.mxu2 %v2303_v14 }
 0x3e2   :  { %655 = vmatpush.msrb.mxu0 %v2312_v15  ;;  %681 = vmatpush.msrb.mxu1 %v2312_v15 }
 0x3e3   :  { %708 = vmatpush.msrb.mxu3 %v2312_v15  ;;  %735 = vmatpush.msrb.mxu2 %v2312_v15 }
 0x3e4   :  { %656 = vmatpush.msrb.mxu0 %v2321_v16  ;;  %682 = vmatpush.msrb.mxu1 %v2321_v16 }
 0x3e5   :  { %709 = vmatpush.msrb.mxu3 %v2321_v16  ;;  %736 = vmatpush.msrb.mxu2 %v2321_v16 }
 0x3e6   :  { %657 = vmatpush.msrb.mxu0 %v2330_v17  ;;  %683 = vmatpush.msrb.mxu1 %v2330_v17 }
 0x3e7   :  { %710 = vmatpush.msrb.mxu3 %v2330_v17  ;;  %737 = vmatpush.msrb.mxu2 %v2330_v17 }
 0x3e8   :  { %658 = vmatpush.msrb.mxu0 %v2339_v19  ;;  %684 = vmatpush.msrb.mxu1 %v2339_v19 }
 0x3e9   :  { %711 = vmatpush.msrb.mxu3 %v2339_v19  ;;  %738 = vmatpush.msrb.mxu2 %v2339_v19 }
 0x3ea   :  { %659 = vmatpush.msrb.mxu0 %v2348_v20  ;;  %685 = vmatpush.msrb.mxu1 %v2348_v20 }
 0x3eb   :  { %712 = vmatpush.msrb.mxu3 %v2348_v20  ;;  %739 = vmatpush.msrb.mxu2 %v2348_v20 }
 0x3ec   :  { %660 = vmatpush.msrb.mxu0 %v2353_v21  ;;  %686 = vmatpush.msrb.mxu1 %v2353_v21 }
 0x3ed   :  { %661 = vmatmul.f32.vlgmr.msrb.gmra.mxu0 %v1966_v54  ;;  %713 = vmatpush.msrb.mxu3 %v2353_v21 }
 0x3ee   :  { %740 = vmatpush.msrb.mxu2 %v2353_v21  ;;  %752 = vmatpush.msra.mxu0 %v2208_v53 }
 0x3ef   :  { %779 = vmatpush.msra.mxu1 %v2208_v53  ;;  %806 = vmatpush.msra.mxu3 %v2208_v53 }
 0x3f0   :  { %753 = vmatpush.msra.mxu0 %v2213_v6  ;;  %833 = vmatpush.msra.mxu2 %v2208_v53 }
 0x3f1   :  { %780 = vmatpush.msra.mxu1 %v2213_v6  ;;  %807 = vmatpush.msra.mxu3 %v2213_v6 }
 0x3f2   :  { %754 = vmatpush.msra.mxu0 %v2221_v28  ;;  %834 = vmatpush.msra.mxu2 %v2213_v6 }
 0x3f3   :  { %808 = vmatpush.msra.mxu3 %v2221_v28  ;;  %781 = vmatpush.msra.mxu1 %v2221_v28 }
 0x3f4   :  { %755 = vmatpush.msra.mxu0 %v2251_v29  ;;  %835 = vmatpush.msra.mxu2 %v2221_v28 }
 0x3f5   :  { %809 = vmatpush.msra.mxu3 %v2251_v29  ;;  %782 = vmatpush.msra.mxu1 %v2251_v29 }
 0x3f6   :  { %756 = vmatpush.msra.mxu0 %v2256_v12  ;;  %836 = vmatpush.msra.mxu2 %v2251_v29 }
 0x3f7   :  { %810 = vmatpush.msra.mxu3 %v2256_v12  ;;  %783 = vmatpush.msra.mxu1 %v2256_v12 }
 0x3f8   :  { %757 = vmatpush.msra.mxu0 %v2263_v2  ;;  %837 = vmatpush.msra.mxu2 %v2256_v12 }
 0x3f9   :  { %811 = vmatpush.msra.mxu3 %v2263_v2  ;;  %784 = vmatpush.msra.mxu1 %v2263_v2 }
 0x3fa   :  { %758 = vmatpush.msra.mxu0 %v2272_v27  ;;  %838 = vmatpush.msra.mxu2 %v2263_v2 }
 0x3fb   :  { %812 = vmatpush.msra.mxu3 %v2272_v27  ;;  %785 = vmatpush.msra.mxu1 %v2272_v27 }
 0x3fc   :  { %759 = vmatpush.msra.mxu0 %v2285_v56  ;;  %839 = vmatpush.msra.mxu2 %v2272_v27 }
 0x3fd   :  { %813 = vmatpush.msra.mxu3 %v2285_v56  ;;  %786 = vmatpush.msra.mxu1 %v2285_v56 }
 0x3fe   :  { %760 = vmatpush.msra.mxu0 %v2294_v13  ;;  %840 = vmatpush.msra.mxu2 %v2285_v56 }
 0x3ff   :  { %814 = vmatpush.msra.mxu3 %v2294_v13  ;;  %787 = vmatpush.msra.mxu1 %v2294_v13 }
 0x400   :  { %761 = vmatpush.msra.mxu0 %v2303_v14  ;;  %841 = vmatpush.msra.mxu2 %v2294_v13 }
 0x401   :  { %815 = vmatpush.msra.mxu3 %v2303_v14  ;;  %788 = vmatpush.msra.mxu1 %v2303_v14 }
 0x402   :  { %762 = vmatpush.msra.mxu0 %v2312_v15  ;;  %842 = vmatpush.msra.mxu2 %v2303_v14 }
 0x403   :  { %816 = vmatpush.msra.mxu3 %v2312_v15  ;;  %789 = vmatpush.msra.mxu1 %v2312_v15 }
 0x404   :  { %763 = vmatpush.msra.mxu0 %v2321_v16  ;;  %843 = vmatpush.msra.mxu2 %v2312_v15 }
 0x405   :  { %817 = vmatpush.msra.mxu3 %v2321_v16  ;;  %790 = vmatpush.msra.mxu1 %v2321_v16 }
 0x406   :  { %764 = vmatpush.msra.mxu0 %v2330_v17  ;;  %844 = vmatpush.msra.mxu2 %v2321_v16 }
 0x407   :  { %818 = vmatpush.msra.mxu3 %v2330_v17  ;;  %791 = vmatpush.msra.mxu1 %v2330_v17 }
 0x408   :  { %765 = vmatpush.msra.mxu0 %v2339_v19  ;;  %845 = vmatpush.msra.mxu2 %v2330_v17 }
 0x409   :  { %819 = vmatpush.msra.mxu3 %v2339_v19  ;;  %792 = vmatpush.msra.mxu1 %v2339_v19 }
 0x40a   :  { %766 = vmatpush.msra.mxu0 %v2348_v20  ;;  %846 = vmatpush.msra.mxu2 %v2339_v19 }
 0x40b   :  { %820 = vmatpush.msra.mxu3 %v2348_v20  ;;  %793 = vmatpush.msra.mxu1 %v2348_v20 }
 0x40c   :  { %767 = vmatpush.msra.mxu0 %v2353_v21  ;;  %847 = vmatpush.msra.mxu2 %v2348_v20 }
 0x40d   :  { %821 = vmatpush.msra.mxu3 %v2353_v21  ;;  %794 = vmatpush.msra.mxu1 %v2353_v21 }
 0x40e   :  { %859 = vmatpush.msrb.mxu0 %v2208_v53  ;;  %848 = vmatpush.msra.mxu2 %v2353_v21 }
 0x410   :  { %860 = vmatpush.msrb.mxu0 %v2213_v6 }
 0x412   :  { %861 = vmatpush.msrb.mxu0 %v2221_v28 }
 0x414   :  { %862 = vmatpush.msrb.mxu0 %v2251_v29 }
 0x416   :  { %863 = vmatpush.msrb.mxu0 %v2256_v12 }
 0x418   :  { %864 = vmatpush.msrb.mxu0 %v2263_v2 }
 0x41a   :  { %865 = vmatpush.msrb.mxu0 %v2272_v27 }
 0x41c   :  { %866 = vmatpush.msrb.mxu0 %v2285_v56 }
 0x41e   :  { %867 = vmatpush.msrb.mxu0 %v2294_v13 }
 0x420   :  { %868 = vmatpush.msrb.mxu0 %v2303_v14 }
 0x422   :  { %869 = vmatpush.msrb.mxu0 %v2312_v15 }
 0x424   :  { %870 = vmatpush.msrb.mxu0 %v2321_v16 }
 0x426   :  { %871 = vmatpush.msrb.mxu0 %v2330_v17 }
 0x428   :  { %872 = vmatpush.msrb.mxu0 %v2339_v19 }
 0x42a   :  { %873 = vmatpush.msrb.mxu0 %v2348_v20 }
 0x42c   :  { %874 = vmatpush.msrb.mxu0 %v2353_v21 }
 0x444   :  { %v376_v22 = vpop.f32.mrf.mxu2 }
 0x445   :  { %1846 = vmatmul.msk.f32.gmra.mxu1 %vm76_vm0, %v376_v22 }
 0x44c   :  { %v379_v25 = vpop.f32.mrf.mxu2  ;;  %v425_v26 = vpop.f32.mrf.mxu1 }
 0x44d   :  { %v455_v30 = vadd.f32 %v454_v23, %v425_v26  ;;  %1847 = vmatmul.msk.f32.gmra.mxu1 %vm76_vm0, %v379_v25 }
 0x44f   :  { %v2401_v31 = vadd.f32 %v2390_v24, %v455_v30 }
 0x451   :  { %v509_v32 = vrot.slane %v2401_v31, 7  ;;  %v511_v33 = vrot.slane %v2401_v31, 5  ;;  %v513_v35 = vrot.slane %v2401_v31, 3  ;;  %v515_v38 = vrot.slane %v2401_v31, 1 }
 0x453   :  { %v531_v37 = vsel %vm517_vm8, %v509_v32, %v511_v33 }
 0x454   :  { %v428_v39 = vpop.f32.mrf.mxu1  ;;  %v493_v40 = vpop.f32.mrf.mxu2  ;;  %v532_v41 = vsel %vm519_vm9, %v531_v37, %v513_v35 }
 0x455   :  { %v458_v42 = vadd.f32 %v457_v36, %v428_v39  ;;  %v494_v43 = vadd.f32 %v1888_v34, %v493_v40  ;;  %v533_v5 = vsel %vm521_vm10, %v532_v41, %v515_v38 }
 0x456   :  { %v534_v44 = vsel %vm523_vm11, %v533_v5, %v509_v32 }
 0x457   :  { %v2431_v45 = vadd.f32 %v2390_v24, %v458_v42  ;;  %v541_v46 = vrot.slane %v494_v43, 7  ;;  %v535_v47 = vsel %vm525_vm12, %v534_v44, %v511_v33  ;;  %v543_v48 = vrot.slane %v494_v43, 5 }
 0x458   :  { %v536_v49 = vsel %vm527_vm13, %v535_v47, %v513_v35  ;;  %v545_v50 = vrot.slane %v494_v43, 3  ;;  %v547_v51 = vrot.slane %v494_v43, 1 }
 0x459   :  { %v537_v52 = vsel %vm529_vm14, %v536_v49, %v515_v38  ;;  %v549_v54 = vsel %vm517_vm8, %v541_v46, %v543_v48  ;;  %v500_v32 = vrot.slane %v2431_v45, 7  ;;  %v502_v33 = vrot.slane %v2431_v45, 5 }
 0x45a   :  { %v2445_v55 = vsel %vm76_vm0, %v2431_v45, %v537_v52  ;;  %v550_v57 = vsel %vm519_vm9, %v549_v54, %v545_v50  ;;  %v504_v35 = vrot.slane %v2431_v45, 3  ;;  %v506_v40 = vrot.slane %v2431_v45, 1 }
 0x45b   :  { %v551_v58 = vsel %vm521_vm10, %v550_v57, %v547_v51  ;;  %v518_v36 = vsel %vm517_vm8, %v500_v32, %v502_v33 }
 0x45c   :  { %v552_v59 = vsel %vm523_vm11, %v551_v58, %v541_v46  ;;  %v496_v60 = vpop.f32.mrf.mxu2  ;;  %v520_v38 = vsel %vm519_vm9, %v518_v36, %v504_v35 }
 0x45d   :  { %v553_v61 = vsel %vm525_vm12, %v552_v59, %v543_v48  ;;  %v497_v62 = vadd.f32 %v1888_v34, %v496_v60  ;;  %v460_v34 = vpop.f32.mrf.mxu3  ;;  %v522_v42 = vsel %vm521_vm10, %v520_v38, %v506_v40 }
 0x45e   :  { %v554_v63 = vsel %vm527_vm13, %v553_v61, %v545_v50  ;;  %v524_v47 = vsel %vm523_vm11, %v522_v42, %v500_v32 }
 0x45f   :  { %v555_v0 = vsel %vm529_vm14, %v554_v63, %v547_v51  ;;  %v603_v1 = vrot.slane %v497_v62, 7  ;;  %v605_v3 = vrot.slane %v497_v62, 5  ;;  %v607_v4 = vrot.slane %v497_v62, 3 }
 0x460   :  { %v556_v7 = vsel %vm76_vm0, %v494_v43, %v555_v0  ;;  %v609_v8 = vrot.slane %v497_v62, 1  ;;  %v526_v45 = vsel %vm525_vm12, %v524_v47, %v502_v33 }
 0x461   :  { %559 = vrot.lane.b32.xlu0 %v556_v7, %s1967_s4  ;;  %v611_v9 = vsel %vm517_vm8, %v603_v1, %v605_v3  ;;  %v528_v61 = vsel %vm527_vm13, %v526_v45, %v504_v35 }
 0x462   :  { %v612_v10 = vsel %vm519_vm9, %v611_v9, %v607_v4 }
 0x463   :  { %v613_v11 = vsel %vm521_vm10, %v612_v10, %v609_v8 }
 0x464   :  { %v614_v22 = vsel %vm523_vm11, %v613_v11, %v603_v1 }
 0x465   :  { %v615_v23 = vsel %vm525_vm12, %v614_v22, %v605_v3  ;;  %v463_v46 = vpop.f32.mrf.mxu3 }
 0x466   :  { %v616_v25 = vsel %vm527_vm13, %v615_v23, %v607_v4 }
 0x467   :  { %v617_v26 = vsel %vm529_vm14, %v616_v25, %v609_v8  ;;  %v530_v8 = vsel %vm529_vm14, %v528_v61, %v506_v40 }
 0x468   :  { %v618_v30 = vsel %vm76_vm0, %v497_v62, %v617_v26  ;;  %v538_v22 = vsel %vm76_vm0, %v2401_v31, %v530_v8 }
 0x469   :  { %620 = vrot.lane.b32.xlu2 %v618_v30, %s1967_s4 }
 0x46a   :  { %v662_v42 = vpop.f32.mrf.mxu0 }
 0x4c2   :  { %v431_v37 = vpop.f32.mrf.mxu1 }
 0x4c3   :  { %v461_v39 = vadd.f32 %v460_v34, %v431_v37  ;;  %v621_v33 = vpop.permute.xlu2 %620 }
 0x4c5   :  { %v471_v41 = vadd.f32 %v2390_v24, %v461_v39 }
 0x4c7   :  { %v578_v43 = vrot.slane %v471_v41, 7  ;;  %v580_v5 = vrot.slane %v471_v41, 5  ;;  %v582_v44 = vrot.slane %v471_v41, 3  ;;  %v584_v48 = vrot.slane %v471_v41, 1 }
 0x4c9   :  { %v593_v49 = vsel %vm517_vm8, %v578_v43, %v580_v5 }
 0x4ca   :  { %v594_v50 = vsel %vm519_vm9, %v593_v49, %v582_v44  ;;  %v434_v51 = vpop.f32.mrf.mxu1 }
 0x4cb   :  { %v595_v52 = vsel %vm521_vm10, %v594_v50, %v584_v48  ;;  %v464_v54 = vadd.f32 %v463_v46, %v434_v51 }
 0x4cc   :  { %v596_v57 = vsel %vm523_vm11, %v595_v52, %v578_v43 }
 0x4cd   :  { %v597_v58 = vsel %vm525_vm12, %v596_v57, %v580_v5  ;;  %v472_v59 = vadd.f32 %v2390_v24, %v464_v54 }
 0x4ce   :  { %v598_v60 = vsel %vm527_vm13, %v597_v58, %v582_v44 }
 0x4cf   :  { %v569_v62 = vrot.slane %v472_v59, 7  ;;  %v571_v63 = vrot.slane %v472_v59, 5  ;;  %v599_v0 = vsel %vm529_vm14, %v598_v60, %v584_v48  ;;  %v573_v1 = vrot.slane %v472_v59, 3 }
 0x4d0   :  { %v2515_v3 = vsel %vm76_vm0, %v472_v59, %v599_v0  ;;  %v575_v7 = vrot.slane %v472_v59, 1 }
 0x4d1   :  { %v586_v4 = vsel %vm517_vm8, %v569_v62, %v571_v63 }
 0x4d2   :  { %v587_v9 = vsel %vm519_vm9, %v586_v4, %v573_v1 }
 0x4d3   :  { %v588_v24 = vsel %vm521_vm10, %v587_v9, %v575_v7  ;;  %v560_v10 = vpop.permute.xlu0 %559 }
 0x4d4   :  { %v589_v11 = vsel %vm523_vm11, %v588_v24, %v569_v62  ;;  %v566_v25 = vsel %vm565_vm15, %v538_v22, %v560_v10 }
 0x4d5   :  { %v590_v23 = vsel %vm525_vm12, %v589_v11, %v571_v63  ;;  %v668_v34 = vrot.slane %v566_v25, 1  ;;  %v693_v35 = vrot.slane %v566_v25, 2  ;;  %v720_v36 = vrot.slane %v566_v25, 3 }
 0x4d6   :  { %v591_v26 = vsel %vm527_vm13, %v590_v23, %v573_v1  ;;  %v747_v38 = vrot.slane %v566_v25, 4  ;;  %v774_v39 = vrot.slane %v566_v25, 5  ;;  %v801_v40 = vrot.slane %v566_v25, 6 }
 0x4d7   :  { %v592_v30 = vsel %vm529_vm14, %v591_v26, %v575_v7  ;;  %v828_v52 = vrot.slane %v566_v25, 7 }
 0x4d8   :  { %v600_v32 = vsel %vm76_vm0, %v471_v41, %v592_v30 }
 0x4d9   :  { %v623_v37 = vsel %vm565_vm15, %v600_v32, %v621_v33 }
 0x4da   :  { %v642_v31 = vrot.slane %v623_v37, 7  ;;  %v670_v43 = vsel %vm517_vm8, %v668_v34, %v623_v37  ;;  %v695_v5 = vrot.slane %v623_v37, 1  ;;  %v722_v44 = vrot.slane %v623_v37, 2 }
 0x4db   :  { %v749_v46 = vrot.slane %v623_v37, 3  ;;  %v776_v47 = vrot.slane %v623_v37, 4  ;;  %v803_v48 = vrot.slane %v623_v37, 5  ;;  %v830_v49 = vrot.slane %v623_v37, 6 }
 0x4dc   :  { %v644_v41 = vsel %vm517_vm8, %v566_v25, %v642_v31  ;;  %v697_v50 = vsel %vm517_vm8, %v693_v35, %v695_v5  ;;  %v2534_v51 = vsel %vm517_vm8, %v720_v36, %v722_v44 }
 0x4dd   :  { %v665_v54 = vadd.f32 %v662_v42, %v644_v41  ;;  %v2537_v45 = vsel %vm517_vm8, %v747_v38, %v749_v46  ;;  %v2540_v57 = vsel %vm517_vm8, %v774_v39, %v776_v47  ;;  %v2543_v58 = vsel %vm517_vm8, %v801_v40, %v803_v48 }
 0x4de   :  { %v2546_v59 = vsel %vm517_vm8, %v828_v52, %v830_v49 }
 0x4df   :  { %1905 = vtanh.f32 %v665_v54 }
 0x4e5   :  { %v1906_v60 = vpop.eup %1905 }
 0x4e6   :  { %687 = vmatmul.f32.vlgmr.msrb.gmra.mxu1 %v1906_v60  ;;  %v1463_v8 = vrot.slane %v1906_v60, 1 }
 0x4e7   :  { %885 = vmatpush.msrb.mxu1 %v2208_v53 }
 0x4e9   :  { %886 = vmatpush.msrb.mxu1 %v2213_v6 }
 0x4eb   :  { %887 = vmatpush.msrb.mxu1 %v2221_v28 }
 0x4ed   :  { %888 = vmatpush.msrb.mxu1 %v2251_v29 }
 0x4ef   :  { %889 = vmatpush.msrb.mxu1 %v2256_v12 }
 0x4f1   :  { %890 = vmatpush.msrb.mxu1 %v2263_v2 }
 0x4f3   :  { %891 = vmatpush.msrb.mxu1 %v2272_v27 }
 0x4f5   :  { %892 = vmatpush.msrb.mxu1 %v2285_v56 }
 0x4f7   :  { %893 = vmatpush.msrb.mxu1 %v2294_v13 }
 0x4f9   :  { %894 = vmatpush.msrb.mxu1 %v2303_v14 }
 0x4fb   :  { %895 = vmatpush.msrb.mxu1 %v2312_v15 }
 0x4fd   :  { %896 = vmatpush.msrb.mxu1 %v2321_v16 }
 0x4ff   :  { %897 = vmatpush.msrb.mxu1 %v2330_v17 }
 0x501   :  { %898 = vmatpush.msrb.mxu1 %v2339_v19 }
 0x503   :  { %899 = vmatpush.msrb.mxu1 %v2348_v20 }
 0x505   :  { %900 = vmatpush.msrb.mxu1 %v2353_v21 }
 0x563   :  { %v688_v61 = vpop.f32.mrf.mxu1 }
 0x564   :  { %v691_v62 = vadd.f32 %v688_v61, %v670_v43 }
 0x566   :  { %1907 = vtanh.f32 %v691_v62 }
 0x56c   :  { %v1908_v63 = vpop.eup %1907 }
 0x56d   :  { %714 = vmatmul.f32.vlgmr.msrb.gmra.mxu3 %v1908_v63  ;;  %v1098_v4 = vrot.slane %v1908_v63, 7  ;;  %v1492_v11 = vsel %vm517_vm8, %v1463_v8, %v1908_v63 }
 0x56e   :  { %912 = vmatpush.msrb.mxu3 %v2208_v53 }
 0x56f   :  { %v1139_v10 = vsel %vm517_vm8, %v1906_v60, %v1098_v4  ;;  %v562_v60 = vpop.permute.xlu1 %561 }
 0x570   :  { %913 = vmatpush.msrb.mxu3 %v2213_v6  ;;  %v2702_v61 = vsel %vm565_vm15, %v2515_v3, %v562_v60  ;;  %v2707_v63 = vsel %vm565_vm15, %v2445_v55, %v562_v60 }
 0x571   :  { %v856_v62 = vrot.slane %v2702_v61, 7 }
 0x572   :  { %914 = vmatpush.msrb.mxu3 %v2221_v28 }
 0x574   :  { %915 = vmatpush.msrb.mxu3 %v2251_v29 }
 0x576   :  { %916 = vmatpush.msrb.mxu3 %v2256_v12 }
 0x578   :  { %917 = vmatpush.msrb.mxu3 %v2263_v2 }
 0x57a   :  { %918 = vmatpush.msrb.mxu3 %v2272_v27 }
 0x57c   :  { %919 = vmatpush.msrb.mxu3 %v2285_v56 }
 0x57e   :  { %920 = vmatpush.msrb.mxu3 %v2294_v13 }
 0x580   :  { %921 = vmatpush.msrb.mxu3 %v2303_v14 }
 0x582   :  { %922 = vmatpush.msrb.mxu3 %v2312_v15 }
 0x584   :  { %923 = vmatpush.msrb.mxu3 %v2321_v16 }
 0x586   :  { %924 = vmatpush.msrb.mxu3 %v2330_v17 }
 0x588   :  { %925 = vmatpush.msrb.mxu3 %v2339_v19 }
 0x58a   :  { %926 = vmatpush.msrb.mxu3 %v2348_v20 }
 0x58c   :  { %927 = vmatpush.msrb.mxu3 %v2353_v21 }
 0x5f0   :  { %v715_v0 = vpop.f32.mrf.mxu3 }
 0x5f1   :  { %v718_v1 = vadd.f32 %v715_v0, %v697_v50  ;;  %v858_v0 = vsel %vm517_vm8, %v2707_v63, %v856_v62 }
 0x5f3   :  { %1909 = vtanh.f32 %v718_v1 }
 0x5f9   :  { %v1910_v7 = vpop.eup %1909 }
 0x5fa   :  { %v1101_v9 = vrot.slane %v1910_v7, 6  ;;  %v1465_v24 = vrot.slane %v1910_v7, 7  ;;  %741 = vmatmul.f32.vlgmr.msrb.gmra.mxu2 %v1910_v7 }
 0x5fb   :  { %939 = vmatpush.msrb.mxu2 %v2208_v53 }
 0x5fc   :  { %v1140_v22 = vsel %vm519_vm9, %v1139_v10, %v1101_v9  ;;  %v1493_v23 = vsel %vm519_vm9, %v1492_v11, %v1465_v24  ;;  %v882_v24 = vrot.slane %v2707_v63, 1 }
 0x5fd   :  { %940 = vmatpush.msrb.mxu2 %v2213_v6 }
 0x5fe   :  { %v884_v55 = vsel %vm517_vm8, %v882_v24, %v2702_v61 }
 0x5ff   :  { %941 = vmatpush.msrb.mxu2 %v2221_v28 }
 0x601   :  { %942 = vmatpush.msrb.mxu2 %v2251_v29 }
 0x603   :  { %943 = vmatpush.msrb.mxu2 %v2256_v12 }
 0x605   :  { %944 = vmatpush.msrb.mxu2 %v2263_v2 }
 0x607   :  { %945 = vmatpush.msrb.mxu2 %v2272_v27 }
 0x609   :  { %946 = vmatpush.msrb.mxu2 %v2285_v56 }
 0x60b   :  { %947 = vmatpush.msrb.mxu2 %v2294_v13 }
 0x60d   :  { %948 = vmatpush.msrb.mxu2 %v2303_v14 }
 0x60f   :  { %949 = vmatpush.msrb.mxu2 %v2312_v15 }
 0x611   :  { %950 = vmatpush.msrb.mxu2 %v2321_v16 }
 0x613   :  { %951 = vmatpush.msrb.mxu2 %v2330_v17 }
 0x615   :  { %952 = vmatpush.msrb.mxu2 %v2339_v19 }
 0x617   :  { %953 = vmatpush.msrb.mxu2 %v2348_v20 }
 0x619   :  { %954 = vmatpush.msrb.mxu2 %v2353_v21 }
 0x67d   :  { %v742_v25 = vpop.f32.mrf.mxu2 }
 0x67e   :  { %v745_v26 = vadd.f32 %v742_v25, %v2534_v51  ;;  %v907_v25 = vrot.slane %v2707_v63, 2 }
 0x680   :  { %1911 = vtanh.f32 %v745_v26 }
 0x686   :  { %v1912_v30 = vpop.eup %1911 }
 0x687   :  { %v1104_v32 = vrot.slane %v1912_v30, 5  ;;  %v1467_v33 = vrot.slane %v1912_v30, 6  ;;  %768 = vmatmul.f32.vlgmr.msra.gmra.mxu0 %v1912_v30 }
 0x688   :  { %966 = vmatpush.msra.mxu0 %v2208_v53 }
 0x689   :  { %v1141_v34 = vsel %vm521_vm10, %v1140_v22, %v1104_v32  ;;  %v1494_v35 = vsel %vm521_vm10, %v1493_v23, %v1467_v33  ;;  %v909_v23 = vrot.slane %v2702_v61, 1 }
 0x68a   :  { %967 = vmatpush.msra.mxu0 %v2213_v6 }
 0x68b   :  { %v911_v26 = vsel %vm517_vm8, %v907_v25, %v909_v23  ;;  %v2762_v23 = vld [vmem:[%s3076_s13 + $0x38] sm:$0xff] }
 0x68c   :  { %968 = vmatpush.msra.mxu0 %v2221_v28  ;;  %v2767_v25 = vld [vmem:[%s3077_s15 + $0x38] sm:$0xff] }
 0x68e   :  { %969 = vmatpush.msra.mxu0 %v2251_v29 }
 0x690   :  { %970 = vmatpush.msra.mxu0 %v2256_v12 }
 0x692   :  { %971 = vmatpush.msra.mxu0 %v2263_v2 }
 0x694   :  { %972 = vmatpush.msra.mxu0 %v2272_v27 }
 0x696   :  { %973 = vmatpush.msra.mxu0 %v2285_v56 }
 0x698   :  { %974 = vmatpush.msra.mxu0 %v2294_v13 }
 0x69a   :  { %975 = vmatpush.msra.mxu0 %v2303_v14 }
 0x69c   :  { %976 = vmatpush.msra.mxu0 %v2312_v15 }
 0x69e   :  { %977 = vmatpush.msra.mxu0 %v2321_v16 }
 0x6a0   :  { %978 = vmatpush.msra.mxu0 %v2330_v17 }
 0x6a2   :  { %979 = vmatpush.msra.mxu0 %v2339_v19 }
 0x6a4   :  { %980 = vmatpush.msra.mxu0 %v2348_v20 }
 0x6a6   :  { %981 = vmatpush.msra.mxu0 %v2353_v21 }
 0x704   :  { %v769_v36 = vpop.f32.mrf.mxu0 }
 0x705   :  { %v772_v37 = vadd.f32 %v769_v36, %v2537_v45 }
 0x707   :  { %1913 = vtanh.f32 %v772_v37 }
 0x70d   :  { %v1914_v38 = vpop.eup %1913 }
 0x70e   :  { %v1107_v39 = vrot.slane %v1914_v38, 4  ;;  %v1469_v40 = vrot.slane %v1914_v38, 5  ;;  %795 = vmatmul.f32.vlgmr.msra.gmra.mxu1 %v1914_v38 }
 0x70f   :  { %993 = vmatpush.msra.mxu1 %v2208_v53 }
 0x710   :  { %v1142_v31 = vsel %vm523_vm11, %v1141_v34, %v1107_v39  ;;  %v1495_v42 = vsel %vm523_vm11, %v1494_v35, %v1469_v40 }
 0x711   :  { %994 = vmatpush.msra.mxu1 %v2213_v6 }
 0x713   :  { %995 = vmatpush.msra.mxu1 %v2221_v28 }
 0x715   :  { %996 = vmatpush.msra.mxu1 %v2251_v29 }
 0x717   :  { %997 = vmatpush.msra.mxu1 %v2256_v12 }
 0x719   :  { %998 = vmatpush.msra.mxu1 %v2263_v2 }
 0x71b   :  { %999 = vmatpush.msra.mxu1 %v2272_v27 }
 0x71d   :  { %1000 = vmatpush.msra.mxu1 %v2285_v56 }
 0x71f   :  { %1001 = vmatpush.msra.mxu1 %v2294_v13 }
 0x721   :  { %1002 = vmatpush.msra.mxu1 %v2303_v14 }
 0x723   :  { %1003 = vmatpush.msra.mxu1 %v2312_v15 }
 0x725   :  { %1004 = vmatpush.msra.mxu1 %v2321_v16 }
 0x727   :  { %1005 = vmatpush.msra.mxu1 %v2330_v17 }
 0x729   :  { %1006 = vmatpush.msra.mxu1 %v2339_v19 }
 0x72b   :  { %1007 = vmatpush.msra.mxu1 %v2348_v20 }
 0x72d   :  { %1008 = vmatpush.msra.mxu1 %v2353_v21 }
 0x78b   :  { %v796_v43 = vpop.f32.mrf.mxu1 }
 0x78c   :  { %v799_v5 = vadd.f32 %v796_v43, %v2540_v57 }
 0x78e   :  { %1915 = vtanh.f32 %v799_v5  ;;  %v936_v5 = vrot.slane %v2702_v61, 2 }
 0x794   :  { %v1916_v44 = vpop.eup %1915 }
 0x795   :  { %v1110_v46 = vrot.slane %v1916_v44, 3  ;;  %v1471_v47 = vrot.slane %v1916_v44, 4  ;;  %822 = vmatmul.f32.vlgmr.msra.gmra.mxu3 %v1916_v44  ;;  %v934_v44 = vrot.slane %v2707_v63, 3 }
 0x796   :  { %1020 = vmatpush.msra.mxu3 %v2208_v53 }
 0x797   :  { %v1143_v48 = vsel %vm525_vm12, %v1142_v31, %v1110_v46  ;;  %v1496_v49 = vsel %vm525_vm12, %v1495_v42, %v1471_v47  ;;  %v24_v42 = vstv %s3074_s12  ;;  %v938_v46 = vsel %vm517_vm8, %v934_v44, %v936_v5  ;;  %v2837_v5 = vld [vmem:[%s3077_s15 + $0x8] sm:$0xff] }
 0x798   :  { %1021 = vmatpush.msra.mxu3 %v2213_v6  ;;  %25 = vst [vmem:[#allocation2] sm:$0x1] %v24_v42 }
 0x79a   :  { %1022 = vmatpush.msra.mxu3 %v2221_v28 }
 0x79c   :  { %1023 = vmatpush.msra.mxu3 %v2251_v29 }
 0x79e   :  { %1024 = vmatpush.msra.mxu3 %v2256_v12 }
 0x79f   :  { %v1070_v43 = vld [vmem:[#allocation2] sm:$0x1] }
 0x7a0   :  { %1025 = vmatpush.msra.mxu3 %v2263_v2 }
 0x7a2   :  { %1026 = vmatpush.msra.mxu3 %v2272_v27 }
 0x7a4   :  { %1027 = vmatpush.msra.mxu3 %v2285_v56 }
 0x7a6   :  { %1028 = vmatpush.msra.mxu3 %v2294_v13 }
 0x7a8   :  { %1029 = vmatpush.msra.mxu3 %v2303_v14 }
 0x7aa   :  { %1030 = vmatpush.msra.mxu3 %v2312_v15 }
 0x7ac   :  { %1031 = vmatpush.msra.mxu3 %v2321_v16 }
 0x7ae   :  { %1032 = vmatpush.msra.mxu3 %v2330_v17 }
 0x7b0   :  { %1033 = vmatpush.msra.mxu3 %v2339_v19 }
 0x7b2   :  { %1034 = vmatpush.msra.mxu3 %v2348_v20 }
 0x7b4   :  { %1035 = vmatpush.msra.mxu3 %v2353_v21 }
 0x818   :  { %v823_v41 = vpop.f32.mrf.mxu3 }
 0x819   :  { %v826_v50 = vadd.f32 %v823_v41, %v2543_v58 }
 0x81b   :  { %1917 = vtanh.f32 %v826_v50 }
 0x821   :  { %v1918_v51 = vpop.eup %1917 }
 0x822   :  { %849 = vmatmul.f32.vlgmr.msra.gmra.mxu2 %v1918_v51  ;;  %v1113_v52 = vrot.slane %v1918_v51, 2  ;;  %v1473_v54 = vrot.slane %v1918_v51, 3 }
 0x823   :  { %1047 = vmatpush.msra.mxu2 %v2208_v53 }
 0x824   :  { %v1144_v45 = vsel %vm527_vm13, %v1143_v48, %v1113_v52  ;;  %v1497_v57 = vsel %vm527_vm13, %v1496_v49, %v1473_v54  ;;  %v2734_v54 = vld [vmem:[%s3075_s11] sm:$0x1] }
 0x825   :  { %1048 = vmatpush.msra.mxu2 %v2213_v6 }
 0x827   :  { %1049 = vmatpush.msra.mxu2 %v2221_v28 }
 0x829   :  { %1050 = vmatpush.msra.mxu2 %v2251_v29 }
 0x82b   :  { %1051 = vmatpush.msra.mxu2 %v2256_v12 }
 0x82d   :  { %1052 = vmatpush.msra.mxu2 %v2263_v2 }
 0x82f   :  { %1053 = vmatpush.msra.mxu2 %v2272_v27 }
 0x831   :  { %1054 = vmatpush.msra.mxu2 %v2285_v56 }
 0x833   :  { %1055 = vmatpush.msra.mxu2 %v2294_v13 }
 0x835   :  { %1056 = vmatpush.msra.mxu2 %v2303_v14 }
 0x837   :  { %1057 = vmatpush.msra.mxu2 %v2312_v15 }
 0x839   :  { %1058 = vmatpush.msra.mxu2 %v2321_v16 }
 0x83b   :  { %1059 = vmatpush.msra.mxu2 %v2330_v17 }
 0x83d   :  { %1060 = vmatpush.msra.mxu2 %v2339_v19 }
 0x83f   :  { %1061 = vmatpush.msra.mxu2 %v2348_v20 }
 0x841   :  { %1062 = vmatpush.msra.mxu2 %v2353_v21 }
 0x8a5   :  { %v850_v53 = vpop.f32.mrf.mxu2 }
 0x8a6   :  { %v853_v6 = vadd.f32 %v850_v53, %v2546_v59 }
 0x8a8   :  { %1919 = vtanh.f32 %v853_v6 }
 0x8ae   :  { %v1920_v28 = vpop.eup %1919 }
 0x8af   :  { %875 = vmatmul.f32.vlgmr.msrb.gmra.mxu0 %v1920_v28  ;;  %v1116_v29 = vrot.slane %v1920_v28, 1  ;;  %v1475_v12 = vrot.slane %v1920_v28, 2 }
 0x8b1   :  { %v2678_v2 = vsel %vm529_vm14, %v1144_v45, %v1116_v29  ;;  %v2681_v27 = vsel %vm529_vm14, %v1497_v57, %v1475_v12  ;;  %v963_v45 = vrot.slane %v2702_v61, 3  ;;  %v961_v57 = vrot.slane %v2707_v63, 4 }
 0x8b2   :  { %1187 = vrot.lane.b32.xlu2 %v2678_v2, %s1967_s4  ;;  %v1163_v56 = vrot.slane %v2678_v2, 7  ;;  %v1165_v13 = vrot.slane %v2678_v2, 5  ;;  %v1167_v14 = vrot.slane %v2678_v2, 3  ;;  %v1169_v15 = vrot.slane %v2678_v2, 1 }
 0x8b3   :  { %v965_v53 = vsel %vm517_vm8, %v961_v57, %v963_v45  ;;  %v1015_v45 = vrot.slane %v2707_v63, 6 }
 0x8b4   :  { %v1178_v16 = vsel %vm517_vm8, %v1163_v56, %v1165_v13 }
 0x8b5   :  { %v1179_v17 = vsel %vm519_vm9, %v1178_v16, %v1167_v14 }
 0x8b6   :  { %v1180_v19 = vsel %vm521_vm10, %v1179_v17, %v1169_v15 }
 0x8b7   :  { %v1181_v20 = vsel %vm523_vm11, %v1180_v19, %v1163_v56 }
 0x8b8   :  { %v1182_v21 = vsel %vm525_vm12, %v1181_v20, %v1165_v13 }
 0x8b9   :  { %v1183_v58 = vsel %vm527_vm13, %v1182_v21, %v1167_v14 }
 0x8ba   :  { %v2696_v59 = vsel %vm529_vm14, %v1183_v58, %v1169_v15  ;;  %1197 = vperm.xlu2 %1884, %v1070_v43   ;;  %v2832_v43 = vld [vmem:[%s3076_s13 + $0x8] sm:$0xff] }
 0x8bb   :  { %1191 = vrot.lane.b32.xlu0 %v2696_v59, %s1967_s4 }
 0x90c   :  { %v1188_v4 = vpop.permute.xlu2 %1187 }
 0x914   :  { %v2741_v29 = vpop.permute.xlu2 %1197 }
 0x915   :  { %v1200_v12 = vperm.slane %v2741_v29, 0 }
 0x92c   :  { %v876_v1 = vpop.f32.mrf.mxu0 }
 0x92d   :  { %v879_v7 = vadd.f32 %v876_v1, %v858_v0  ;;  %v1192_v8 = vpop.permute.xlu0 %1191  ;;  %v990_v0 = vrot.slane %v2702_v61, 4  ;;  %v988_v1 = vrot.slane %v2707_v63, 5 }
 0x92e   :  { %v1194_v9 = vsel %vm76_vm0, %v1188_v4, %v1192_v8 }
 0x92f   :  { %1921 = vtanh.f32 %v879_v7  ;;  %1854 = vmatpush.xpose.msk.msrb.mxu0 %vm565_vm15, %v1194_v9  ;;  %v992_v4 = vsel %vm517_vm8, %v988_v1, %v990_v0  ;;  %v2895_v1 = vld [vmem:[%s3077_s15 + $0x50] sm:$0xff] }
 0x935   :  { %v1922_v3 = vpop.eup %1921 }
 0x936   :  { %901 = vmatmul.f32.vlgmr.msrb.gmra.mxu1 %v1922_v3  ;;  %v1478_v35 = vrot.slane %v1922_v3, 1 }
 0x9b3   :  { %v902_v10 = vpop.f32.mrf.mxu1 }
 0x9b4   :  { %v905_v11 = vadd.f32 %v902_v10, %v884_v55 }
 0x9b6   :  { %1923 = vtanh.f32 %v905_v11 }
 0x9bc   :  { %v1924_v22 = vpop.eup %1923 }
 0x9bd   :  { %928 = vmatmul.f32.vlgmr.msrb.gmra.mxu3 %v1924_v22  ;;  %v1119_v33 = vrot.slane %v1924_v22, 7  ;;  %v1499_v39 = vsel %vm517_vm8, %v1478_v35, %v1924_v22  ;;  %v2796_v35 = vld [vmem:[%s3076_s13 + $0x20] sm:$0xff] }
 0x9bf   :  { %v1146_v38 = vsel %vm517_vm8, %v1922_v3, %v1119_v33  ;;  %v2784_v33 = vld [vmem:[%s3076_s13 + $0x28] sm:$0xff] }
 0xa40   :  { %v929_v30 = vpop.f32.mrf.mxu3 }
 0xa41   :  { %v932_v32 = vadd.f32 %v929_v30, %v911_v26  ;;  %v2772_v26 = vld [vmem:[%s3076_s13 + $0x30] sm:$0xff] }
 0xa42   :  { %v2779_v30 = vld [vmem:[%s3077_s15 + $0x30] sm:$0xff] }
 0xa43   :  { %1925 = vtanh.f32 %v932_v32 }
 0xa49   :  { %v1926_v34 = vpop.eup %1925 }
 0xa4a   :  { %v1122_v36 = vrot.slane %v1926_v34, 6  ;;  %v1480_v37 = vrot.slane %v1926_v34, 7  ;;  %955 = vmatmul.f32.vlgmr.msrb.gmra.mxu2 %v1926_v34  ;;  %v2789_v34 = vld [vmem:[%s3077_s15 + $0x28] sm:$0xff] }
 0xa4b   :  { %1413 = vmatpush.msrb.mxu2 %v2767_v25 }
 0xa4c   :  { %v1147_v40 = vsel %vm519_vm9, %v1146_v38, %v1122_v36  ;;  %v1500_v31 = vsel %vm519_vm9, %v1499_v39, %v1480_v37  ;;  %v2801_v36 = vld [vmem:[%s3077_s15 + $0x20] sm:$0xff]  ;;  %v2808_v37 = vld [vmem:[%s3076_s13 + $0x18] sm:$0xff]  ;;  %v2820_v39 = vld [vmem:[%s3076_s13 + $0x10] sm:$0xff] }
 0xa4d   :  { %1414 = vmatpush.msrb.mxu2 %v2779_v30  ;;  %v2813_v38 = vld [vmem:[%s3077_s15 + $0x18] sm:$0xff] }
 0xa4f   :  { %1415 = vmatpush.msrb.mxu2 %v2789_v34 }
 0xa51   :  { %1416 = vmatpush.msrb.mxu2 %v2801_v36 }
 0xa53   :  { %1417 = vmatpush.msrb.mxu2 %v2813_v38 }
 0xacd   :  { %v956_v47 = vpop.f32.mrf.mxu2 }
 0xace   :  { %v959_v48 = vadd.f32 %v956_v47, %v938_v46 }
 0xad0   :  { %1927 = vtanh.f32 %v959_v48 }
 0xad6   :  { %v1928_v49 = vpop.eup %1927 }
 0xad7   :  { %v1125_v41 = vrot.slane %v1928_v49, 5  ;;  %v1482_v50 = vrot.slane %v1928_v49, 6  ;;  %982 = vmatmul.f32.vlgmr.msra.gmra.mxu0 %v1928_v49 }
 0xad8   :  { %1271 = vmatpush.msra.mxu0 %v1194_v9 }
 0xad9   :  { %v1148_v51 = vsel %vm521_vm10, %v1147_v40, %v1125_v41  ;;  %v1501_v52 = vsel %vm521_vm10, %v1500_v31, %v1482_v50  ;;  %v2825_v40 = vld [vmem:[%s3077_s15 + $0x10] sm:$0xff] }
 0xada   :  { %1418 = vmatpush.msrb.mxu2 %v2825_v40 }
 0xadc   :  { %1419 = vmatpush.msrb.mxu2 %v2837_v5 }
 0xadf   :  { %1855 = vmatmul.msk.f32.vlgmr.msrb.gmra.mxu0 %vm565_vm15, %v2734_v54 }
 0xae0   :  { %1287 = vmatpush.msrb.mxu0 %v2762_v23 }
 0xae2   :  { %1288 = vmatpush.msrb.mxu0 %v2772_v26 }
 0xae4   :  { %1289 = vmatpush.msrb.mxu0 %v2784_v33 }
 0xae6   :  { %1290 = vmatpush.msrb.mxu0 %v2796_v35 }
 0xae8   :  { %1291 = vmatpush.msrb.mxu0 %v2808_v37 }
 0xaea   :  { %1292 = vmatpush.msrb.mxu0 %v2820_v39 }
 0xaec   :  { %1293 = vmatpush.msrb.mxu0 %v2832_v43 }
 0xb54   :  { %v983_v6 = vpop.f32.mrf.mxu0 }
 0xb55   :  { %v986_v28 = vadd.f32 %v983_v6, %v965_v53 }
 0xb57   :  { %1929 = vtanh.f32 %v986_v28 }
 0xb5c   :  { %v1224_v56 = vpop.f32.mrf.mxu0 }
 0xb5d   :  { %v1930_v13 = vpop.eup %1929  ;;  %v1225_v14 = vadd.f32 %v1224_v56, %v1200_v12 }
 0xb5e   :  { %v1128_v15 = vrot.slane %v1930_v13, 4  ;;  %v1484_v16 = vrot.slane %v1930_v13, 5  ;;  %1009 = vmatmul.f32.vlgmr.msra.gmra.mxu1 %v1930_v13 }
 0xb5f   :  { %v1227_v17 = vsel %vm185_vm1, -1e+30, %v1225_v14 }
 0xb60   :  { %v1229_v19 = vsel %vm1228_vm2, %v1227_v17, -inf  ;;  %v1149_v20 = vsel %vm523_vm11, %v1148_v51, %v1128_v15  ;;  %v1502_v21 = vsel %vm523_vm11, %v1501_v52, %v1484_v16  ;;  %v1017_v51 = vrot.slane %v2702_v61, 5 }
 0xb61   :  { %1230 = vmax.xlane.f32.xlu1 %v1229_v19  ;;  %v2857_v19 = vld [vmem:[%s3077_s15] sm:$0xff] }
 0xb62   :  { %v1019_v53 = vsel %vm517_vm8, %v1015_v45, %v1017_v51  ;;  %1420 = vmatpush.msrb.mxu2 %v2857_v19 }
 0xbd4   :  { %v1231_v58 = vpop.xlane.xlu1 %1230 }
 0xbd5   :  { %v1232_v60 = vsub.f32 %v1227_v17, %v1231_v58  ;;  %v2852_v17 = vld [vmem:[%s3076_s13] sm:$0xff]  ;;  %v2875_v58 = vld [vmem:[%s3077_s15 + $0x68] sm:$0xff] }
 0xbd6   :  { %1294 = vmatpush.msrb.mxu0 %v2852_v17 }
 0xbd7   :  { %v1233_v62 = vmul.f32 1.442695, %v1232_v60  ;;  %v2881_v60 = vld [vmem:[%s3077_s15 + $0x60] sm:$0xff] }
 0xbd9   :  { %1931 = vpow2.f32 %v1233_v62  ;;  %v2888_v62 = vld [vmem:[%s3077_s15 + $0x58] sm:$0xff] }
 0xbdb   :  { %v1010_v7 = vpop.f32.mrf.mxu1 }
 0xbdc   :  { %v1013_v8 = vadd.f32 %v1010_v7, %v992_v4  ;;  %v2901_v4 = vld [vmem:[%s3077_s15 + $0x48] sm:$0xff]  ;;  %v2907_v7 = vld [vmem:[%s3077_s15 + $0x40] sm:$0xff] }
 0xbde   :  { %1933 = vtanh.f32 %v1013_v8  ;;  %v1516_v8 = vrot.slane %v2681_v27, 7 }
 0xbdf   :  { %v1932_v9 = vpop.eup %1931 }
 0xbe0   :  { %v1235_v3 = vsel %vm1228_vm2, %v1932_v9, 0.0  ;;  %vm1575_vm2 = vcmask 58369  }
 0xbe1   :  { %1236 = vadd.xlane.f32.xlu0 %v1235_v3  ;;  %v1520_v3 = vrot.slane %v2681_v27, 3 }
 0xbe4   :  { %v1934_v24 = vpop.eup %1933 }
 0xbe5   :  { %v1131_v55 = vrot.slane %v1934_v24, 3  ;;  %v1486_v10 = vrot.slane %v1934_v24, 4  ;;  %1036 = vmatmul.f32.vlgmr.msra.gmra.mxu3 %v1934_v24 }
 0xbe7   :  { %v1150_v11 = vsel %vm525_vm12, %v1149_v20, %v1131_v55  ;;  %v1503_v22 = vsel %vm525_vm12, %v1502_v21, %v1486_v10  ;;  %v2864_v20 = vld [vmem:[%s3077_s15 + $0x78] sm:$0xff]  ;;  %v2870_v21 = vld [vmem:[%s3077_s15 + $0x70] sm:$0xff]  ;;  %v1044_v55 = vrot.slane %v2702_v61, 6 }
 0xbe8   :  { %1393 = vmatpush.msrb.mxu3 %v2864_v20 }
 0xbea   :  { %1394 = vmatpush.msrb.mxu3 %v2870_v21 }
 0xbec   :  { %1395 = vmatpush.msrb.mxu3 %v2875_v58 }
 0xbee   :  { %1396 = vmatpush.msrb.mxu3 %v2881_v60 }
 0xbf0   :  { %1397 = vmatpush.msrb.mxu3 %v2888_v62 }
 0xbf2   :  { %1398 = vmatpush.msrb.mxu3 %v2895_v1 }
 0xbf4   :  { %1399 = vmatpush.msrb.mxu3 %v2901_v4 }
 0xbf5   :  { %1540 = vrot.lane.b32.xlu0 %v2681_v27, %s1967_s4 }
 0xbf6   :  { %1400 = vmatpush.msrb.mxu3 %v2907_v7 }
 0xc54   :  { %v1237_v32 = vpop.xlane.xlu0 %1236 }
 0xc55   :  { %1935 = vrcp.f32 %v1237_v32  ;;  %v1249_v46 = vand.u32 2147483648, %v1237_v32  ;;  %v1247_v48 = vand.u32 2147483647, %v1237_v32  ;;  %vm1243_vm5 = vweird.f32 %v1237_v32 }
 0xc57   :  { %v1250_v41 = vor.u32 1.1754944e-38, %v1249_v46  ;;  %vm1248_vm7 = vcmp.eq.f32.partialorder %v1247_v48, 8.507059e+37 }
 0xc5b   :  { %v1936_v31 = vpop.eup %1935 }
 0xc5c   :  { %v1239_v42 = vmul.f32 %v1936_v31, %v1237_v32  ;;  %vm1244_vm4 = vweird.f32 %v1936_v31 }
 0xc5d   :  { %vm1245_vm6 = vmor %vm1243_vm5, %vm1244_vm4 }
 0xc5e   :  { %v1240_v44 = vsub.f32 1.0, %v1239_v42 }
 0xc60   :  { %v1241_v47 = vmul.f32 %v1936_v31, %v1240_v44 }
 0xc62   :  { %v1242_v49 = vadd.f32 %v1936_v31, %v1241_v47 }
 0xc64   :  { %v1246_v50 = vsel %vm1245_vm6, %v1936_v31, %v1242_v49 }
 0xc65   :  { %v1251_v52 = vsel %vm1248_vm7, %v1250_v41, %v1246_v50  ;;  %vm1680_vm7 = vcmask 123905  }
 0xc66   :  { %v1252_v57 = vmul.f32 %v1932_v9, %v1251_v52  ;;  %v1518_v9 = vrot.slane %v2681_v27, 5 }
 0xc68   :  { %v1037_v6 = vpop.f32.mrf.mxu3  ;;  %1856 = vmatmul.msk.f32.vlgmr.msra.gmra.mxu0 %vm191_vm3, %v1252_v57  ;;  %v1531_v24 = vsel %vm517_vm8, %v1516_v8, %v1518_v9 }
 0xc69   :  { %v1040_v28 = vadd.f32 %v1037_v6, %v1019_v53  ;;  %v1532_v10 = vsel %vm519_vm9, %v1531_v24, %v1520_v3 }
 0xc6b   :  { %1937 = vtanh.f32 %v1040_v28 }
 0xc71   :  { %v1938_v56 = vpop.eup %1937 }
 0xc72   :  { %v1134_v13 = vrot.slane %v1938_v56, 2  ;;  %v1488_v14 = vrot.slane %v1938_v56, 3  ;;  %1063 = vmatmul.f32.vlgmr.msra.gmra.mxu2 %v1938_v56 }
 0xc74   :  { %v1151_v15 = vsel %vm527_vm13, %v1150_v11, %v1134_v13  ;;  %v1504_v16 = vsel %vm527_vm13, %v1503_v22, %v1488_v14  ;;  %v1042_v11 = vrot.slane %v2707_v63, 7  ;;  %v1522_v22 = vrot.slane %v2681_v27, 1 }
 0xc76   :  { %v1046_v32 = vsel %vm517_vm8, %v1042_v11, %v1044_v55  ;;  %v1533_v42 = vsel %vm521_vm10, %v1532_v10, %v1522_v22 }
 0xc77   :  { %v1534_v46 = vsel %vm523_vm11, %v1533_v42, %v1516_v8 }
 0xc78   :  { %v1535_v47 = vsel %vm525_vm12, %v1534_v46, %v1518_v9 }
 0xc79   :  { %v1536_v61 = vsel %vm527_vm13, %v1535_v47, %v1520_v3 }
 0xc7a   :  { %v1537_v51 = vsel %vm529_vm14, %v1536_v61, %v1522_v22 }
 0xce5   :  { %v1273_v0 = vpop.f32.mrf.mxu0 }
 0xce6   :  { %1857 = vmatmul.msk.f32.vlgmr.msrb.gmra.mxu0 %vm565_vm15, %v1273_v0  ;;  %1863 = vmatmul.msk.f32.vlgmr.msrb.gmra.mxu2 %vm565_vm15, %v1273_v0 }
 0xcf5   :  { %v1064_v31 = vpop.f32.mrf.mxu2 }
 0xcf6   :  { %v1067_v44 = vadd.f32 %v1064_v31, %v1046_v32 }
 0xcf8   :  { %1939 = vtanh.f32 %v1067_v44 }
 0xcfe   :  { %v1940_v48 = vpop.eup %1939 }
 0xcff   :  { %v1137_v49 = vrot.slane %v1940_v48, 1  ;;  %v1490_v41 = vrot.slane %v1940_v48, 2 }
 0xd01   :  { %v1152_v63 = vsel %vm529_vm14, %v1151_v15, %v1137_v49  ;;  %v1505_v50 = vsel %vm529_vm14, %v1504_v16, %v1490_v41 }
 0xd02   :  { %v1186_v52 = vsel %vm76_vm0, %v1152_v63, %v2696_v59  ;;  %v1539_v45 = vsel %vm76_vm0, %v1505_v50, %v1537_v51  ;;  %v1154_v57 = vrot.slane %v1152_v63, 7  ;;  %v1156_v53 = vrot.slane %v1152_v63, 5 }
 0xd03   :  { %1858 = vmatpush.xpose.msk.msrb.mxu1 %vm565_vm15, %v1186_v52  ;;  %1864 = vmatpush.xpose.msk.msra.mxu0 %vm565_vm15, %v1186_v52  ;;  %v1158_v6 = vrot.slane %v1152_v63, 3  ;;  %v1507_v28 = vrot.slane %v1505_v50, 7  ;;  %v1509_v56 = vrot.slane %v1505_v50, 5  ;;  %v1160_v13 = vrot.slane %v1152_v63, 1 }
 0xd04   :  { %1871 = vmatpush.xpose.msk.msra.mxu3 %vm565_vm15, %v1539_v45  ;;  %1726 = vmatpush.msra.mxu2 %v1539_v45  ;;  %v1171_v14 = vsel %vm517_vm8, %v1154_v57, %v1156_v53  ;;  %v1511_v15 = vrot.slane %v1505_v50, 3  ;;  %v1513_v16 = vrot.slane %v1505_v50, 1 }
 0xd05   :  { %v1172_v59 = vsel %vm519_vm9, %v1171_v14, %v1158_v6  ;;  %v1524_v0 = vsel %vm517_vm8, %v1507_v28, %v1509_v56 }
 0xd06   :  { %v1173_v8 = vsel %vm521_vm10, %v1172_v59, %v1160_v13  ;;  %v1525_v9 = vsel %vm519_vm9, %v1524_v0, %v1511_v15 }
 0xd07   :  { %v1174_v3 = vsel %vm523_vm11, %v1173_v8, %v1154_v57  ;;  %v1526_v24 = vsel %vm521_vm10, %v1525_v9, %v1513_v16  ;;  %vm1330_vm10 = vcmask 122880  }
 0xd08   :  { %v1175_v55 = vsel %vm525_vm12, %v1174_v3, %v1156_v53  ;;  %v1527_v10 = vsel %vm523_vm11, %v1526_v24, %v1507_v28 }
 0xd09   :  { %v1176_v11 = vsel %vm527_vm13, %v1175_v55, %v1158_v6  ;;  %v1528_v22 = vsel %vm525_vm12, %v1527_v10, %v1509_v56 }
 0xd0a   :  { %v1177_v32 = vsel %vm529_vm14, %v1176_v11, %v1160_v13  ;;  %v1529_v31 = vsel %vm527_vm13, %v1528_v22, %v1511_v15 }
 0xd0b   :  { %v1185_v42 = vsel %vm76_vm0, %v2678_v2, %v1177_v32  ;;  %v1530_v44 = vsel %vm529_vm14, %v1529_v31, %v1513_v16  ;;  %v2959_v2 = vld [vmem:[%s3078_s14] sm:$0x1]  ;;  %vm1358_vm14 = vcmask 130048  }
 0xd0c   :  { %1859 = vmatpush.xpose.msk.msrb.mxu1 %vm565_vm15, %v1185_v42  ;;  %1865 = vmatpush.xpose.msk.msra.mxu0 %vm565_vm15, %v1185_v42  ;;  %v1538_v46 = vsel %vm76_vm0, %v2681_v27, %v1530_v44  ;;  %v2966_v27 = vld [vmem:[%s3079_s2] sm:$0x3] }
 0xd0d   :  { %1872 = vmatpush.xpose.msk.msra.mxu3 %vm565_vm15, %v1538_v46  ;;  %1727 = vmatpush.msra.mxu2 %v1538_v46  ;;  %vm1328_vm9 = vcmp.gt.f32.partialorder %v2966_v27, 0.5 }
 0xd0f   :  { %1877 = vmatpush.xpose.msk.msrb.mxu2 %vm565_vm15, %v1539_v45  ;;  %v1541_v45 = vpop.permute.xlu0 %1540 }
 0xd10   :  { %1376 = vmatpush.msra.mxu1 %v1186_v52 }
 0xd12   :  { %1377 = vmatpush.msra.mxu1 %v1185_v42 }
 0xd13   :  { %1878 = vmatpush.xpose.msk.msrb.mxu2 %vm565_vm15, %v1538_v46 }
 0xd63   :  { %v1296_v47 = vpop.f32.mrf.mxu0 }
 0xd64   :  { %v1297_v48 = vadd.f32 %v1296_v47, %v2959_v2 }
 0xd66   :  { %1860 = vmatmul.msk.f32.vlgmr.msrb.gmra.mxu1 %vm565_vm15, %v1297_v48 }
 0xd69   :  { %v1422_v29 = vpop.f32.mrf.mxu2 }
 0xde3   :  { %v1325_v61 = vpop.f32.mrf.mxu1 }
 0xde4   :  { %v1329_v49 = vsel %vm1328_vm9, -1e+30, %v1325_v61 }
 0xde5   :  { %v1331_v41 = vsel %vm1330_vm10, %v1329_v49, -inf }
 0xde6   :  { %1332 = vmax.xlane.f32.xlu2 %v1331_v41 }
 0xdfe   :  { %1544 = vrot.lane.b32.xlu2 %v1537_v51, %s1967_s4 }
 0xe59   :  { %v1333_v63 = vpop.xlane.xlu2 %1332 }
 0xe5a   :  { %v2973_v50 = vsub.f32 %v1329_v49, %v1333_v63 }
 0xe5c   :  { %v1335_v52 = vmul.f32 1.442695, %v2973_v50 }
 0xe5e   :  { %1941 = vpow2.f32 %v1335_v52 }
 0xe61   :  { %v1545_v57 = vpop.permute.xlu2 %1544 }
 0xe62   :  { %v1547_v53 = vsel %vm76_vm0, %v1541_v45, %v1545_v57 }
 0xe63   :  { %1867 = vmatpush.xpose.msk.msrb.mxu1 %vm565_vm15, %v1547_v53  ;;  %1619 = vmatpush.msrb.mxu0 %v1547_v53 }
 0xe64   :  { %v1942_v6 = vpop.eup %1941 }
 0xe65   :  { %v1337_v28 = vsel %vm1330_vm10, %v1942_v6, 0.0 }
 0xe66   :  { %1338 = vadd.xlane.f32.xlu1 %v1337_v28 }
 0xed9   :  { %v2979_v56 = vpop.xlane.xlu1 %1338 }
 0xeda   :  { %1943 = vrcp.f32 %v2979_v56  ;;  %v1354_v15 = vand.u32 2147483648, %v2979_v56  ;;  %v1352_v16 = vand.u32 2147483647, %v2979_v56  ;;  %vm1348_vm0 = vweird.f32 %v2979_v56 }
 0xedc   :  { %v1355_v8 = vor.u32 1.1754944e-38, %v1354_v15  ;;  %vm1353_vm13 = vcmp.eq.f32.partialorder %v1352_v16, 8.507059e+37 }
 0xee0   :  { %v1944_v51 = vpop.eup %1943 }
 0xee1   :  { %v1344_v13 = vmul.f32 %v1944_v51, %v2979_v56  ;;  %vm1349_vm11 = vweird.f32 %v1944_v51 }
 0xee2   :  { %vm1350_vm12 = vmor %vm1348_vm0, %vm1349_vm11 }
 0xee3   :  { %v1345_v14 = vsub.f32 1.0, %v1344_v13 }
 0xee5   :  { %v1346_v59 = vmul.f32 %v1944_v51, %v1345_v14 }
 0xee7   :  { %v1347_v0 = vadd.f32 %v1944_v51, %v1346_v59 }
 0xee9   :  { %v1351_v9 = vsel %vm1350_vm12, %v1944_v51, %v1347_v0 }
 0xeea   :  { %v1356_v3 = vsel %vm1353_vm13, %v1355_v8, %v1351_v9 }
 0xeeb   :  { %v1357_v24 = vmul.f32 %v1942_v6, %v1356_v3 }
 0xeed   :  { %1861 = vmatmul.msk.f32.vlgmr.msra.gmra.mxu1 %vm1358_vm14, %v1357_v24 }
 0xeee   :  { %1635 = vmatpush.msra.mxu1 %v2762_v23 }
 0xef0   :  { %1636 = vmatpush.msra.mxu1 %v2772_v26 }
 0xef2   :  { %1637 = vmatpush.msra.mxu1 %v2784_v33 }
 0xef4   :  { %1638 = vmatpush.msra.mxu1 %v2796_v35 }
 0xef5   :  { %1868 = vmatmul.msk.f32.vlgmr.msrb.gmra.mxu1 %vm565_vm15, %v2734_v54 }
 0xef6   :  { %1639 = vmatpush.msra.mxu1 %v2808_v37 }
 0xef8   :  { %1640 = vmatpush.msra.mxu1 %v2820_v39 }
 0xefa   :  { %1641 = vmatpush.msra.mxu1 %v2832_v43 }
 0xefc   :  { %1642 = vmatpush.msra.mxu1 %v2852_v17 }
 0xf6a   :  { %v1379_v55 = vpop.f32.mrf.mxu1 }
 0xf6b   :  { %1862 = vmatmul.msk.f32.vlgmr.msrb.gmra.mxu3 %vm565_vm15, %v1379_v55 }
 0xf6c   :  { %1763 = vmatpush.msrb.mxu3 %v2767_v25 }
 0xf6e   :  { %1764 = vmatpush.msrb.mxu3 %v2779_v30 }
 0xf70   :  { %1765 = vmatpush.msrb.mxu3 %v2789_v34 }
 0xf72   :  { %v1568_v23 = vpop.f32.mrf.mxu1  ;;  %1766 = vmatpush.msrb.mxu3 %v2801_v36 }
 0xf73   :  { %v1569_v54 = vadd.f32 %v1568_v23, %v1200_v12  ;;  %v3014_v12 = vld [vmem:[%s3080_s16] sm:$0x1] }
 0xf74   :  { %1767 = vmatpush.msrb.mxu3 %v2813_v38 }
 0xf75   :  { %v1572_v26 = vrot.slane %v1569_v54, 7 }
 0xf76   :  { %1768 = vmatpush.msrb.mxu3 %v2825_v40 }
 0xf77   :  { %v1574_v33 = vsel %vm185_vm1, -1e+30, %v1572_v26 }
 0xf78   :  { %v1576_v25 = vsel %vm1575_vm2, %v1574_v33, -inf  ;;  %1769 = vmatpush.msrb.mxu3 %v2837_v5 }
 0xf79   :  { %1577 = vmax.xlane.f32.xlu1 %v1576_v25 }
 0xf7a   :  { %1770 = vmatpush.msrb.mxu3 %v2857_v19 }
 0xfec   :  { %v1578_v30 = vpop.xlane.xlu1 %1577 }
 0xfed   :  { %v1579_v34 = vsub.f32 %v1574_v33, %v1578_v30 }
 0xfee   :  { %v1402_v35 = vpop.f32.mrf.mxu3 }
 0xfef   :  { %v1580_v36 = vmul.f32 1.442695, %v1579_v34  ;;  %v1423_v37 = vadd.f32 %v1422_v29, %v1402_v35 }
 0xff1   :  { %1945 = vpow2.f32 %v1580_v36  ;;  %v1425_v18 = vadd.f32 %v1423_v37, %v3014_v12 }
 0xff3   :  { %1866 = vmatmul.msk.f32.vlgmr.msra.gmra.mxu0 %vm565_vm15, %v1425_v18 }
 0xff4   :  { %1743 = vmatpush.msra.mxu0 %v2864_v20 }
 0xff6   :  { %1744 = vmatpush.msra.mxu0 %v2870_v21 }
 0xff7   :  { %v1946_v38 = vpop.eup %1945 }
 0xff8   :  { %v1582_v39 = vsel %vm1575_vm2, %v1946_v38, 0.0  ;;  %1745 = vmatpush.msra.mxu0 %v2875_v58 }
 0xff9   :  { %1583 = vadd.xlane.f32.xlu1 %v1582_v39 }
 0xffa   :  { %1746 = vmatpush.msra.mxu0 %v2881_v60 }
 0xffc   :  { %1747 = vmatpush.msra.mxu0 %v2888_v62 }
 0xffe   :  { %1748 = vmatpush.msra.mxu0 %v2895_v1 }
0x1000   :  { %1749 = vmatpush.msra.mxu0 %v2901_v4 }
0x1002   :  { %1750 = vmatpush.msra.mxu0 %v2907_v7 }
0x106c   :  { %v1584_v40 = vpop.xlane.xlu1 %1583 }
0x106d   :  { %1947 = vrcp.f32 %v1584_v40  ;;  %v1596_v58 = vand.u32 2147483648, %v1584_v40  ;;  %v1594_v62 = vand.u32 2147483647, %v1584_v40  ;;  %vm1590_vm4 = vweird.f32 %v1584_v40 }
0x106f   :  { %v1597_v4 = vor.u32 1.1754944e-38, %v1596_v58  ;;  %vm1595_vm6 = vcmp.eq.f32.partialorder %v1594_v62, 8.507059e+37 }
0x1070   :  { %v1446_v43 = vpop.f32.mrf.mxu0 }
0x1071   :  { %v3029_v5 = vsel %vm1328_vm9, -1e+30, %v1446_v43 }
0x1072   :  { %v1450_v17 = vsel %vm1330_vm10, %v3029_v5, -inf }
0x1073   :  { %v1948_v19 = vpop.eup %1947  ;;  %1451 = vmax.xlane.f32.xlu2 %v1450_v17 }
0x1074   :  { %v1586_v20 = vmul.f32 %v1948_v19, %v1584_v40  ;;  %vm1591_vm1 = vweird.f32 %v1948_v19 }
0x1075   :  { %vm1592_vm5 = vmor %vm1590_vm4, %vm1591_vm1 }
0x1076   :  { %v1587_v21 = vsub.f32 1.0, %v1586_v20 }
0x1078   :  { %v1588_v60 = vmul.f32 %v1948_v19, %v1587_v21 }
0x107a   :  { %v1589_v1 = vadd.f32 %v1948_v19, %v1588_v60 }
0x107c   :  { %v1593_v7 = vsel %vm1592_vm5, %v1948_v19, %v1589_v1 }
0x107d   :  { %v1598_v10 = vsel %vm1595_vm6, %v1597_v4, %v1593_v7 }
0x107e   :  { %v1599_v11 = vmul.f32 %v1946_v38, %v1598_v10 }
0x1080   :  { %v1601_v22 = vrot.slane %v1599_v11, 1 }
0x1082   :  { %1869 = vmatmul.msk.f32.vlgmr.msrb.gmra.mxu0 %vm191_vm3, %v1601_v22  ;;  %vm1816_vm3 = vcmask 123904  }
0x10e6   :  { %v1452_v30 = vpop.xlane.xlu2 %1451 }
0x10e7   :  { %v1453_v34 = vsub.f32 %v3029_v5, %v1452_v30 }
0x10e9   :  { %v1454_v29 = vmul.f32 1.442695, %v1453_v34 }
0x10ff   :  { %v1621_v32 = vpop.f32.mrf.mxu0 }
0x1100   :  { %1870 = vmatmul.msk.f32.vlgmr.msra.gmra.mxu1 %vm565_vm15, %v1621_v32 }
0x117d   :  { %v1644_v31 = vpop.f32.mrf.mxu1 }
0x117e   :  { %v1645_v42 = vadd.f32 %v1644_v31, %v2959_v2 }
0x1180   :  { %1873 = vmatmul.msk.f32.vlgmr.msra.gmra.mxu3 %vm565_vm15, %v1645_v42 }
0x1188   :  { %1876 = vmatmul.msk.f32.vlgmr.msrb.gmra.mxu3 %vm565_vm15, %v1621_v32 }
0x1203   :  { %v1673_v44 = vpop.f32.mrf.mxu3 }
0x1204   :  { %v1677_v46 = vrot.slane %v1673_v44, 7 }
0x1206   :  { %v1679_v47 = vsel %vm1328_vm9, -1e+30, %v1677_v46 }
0x1207   :  { %v1681_v48 = vsel %vm1680_vm7, %v1679_v47, -inf }
0x1208   :  { %1682 = vmax.xlane.f32.xlu0 %v1681_v48 }
0x120b   :  { %v1772_v54 = vpop.f32.mrf.mxu3 }
0x127b   :  { %v1683_v61 = vpop.xlane.xlu0 %1682 }
0x127c   :  { %v1684_v49 = vsub.f32 %v1679_v47, %v1683_v61 }
0x127e   :  { %v1685_v41 = vmul.f32 1.442695, %v1684_v49 }
0x1280   :  { %1949 = vpow2.f32 %v1685_v41 }
0x1281   :  { %1951 = vlog2.f32 %v2979_v56 }
0x1286   :  { %v1950_v63 = vpop.eup %1949 }
0x1287   :  { %v1687_v2 = vsel %vm1680_vm7, %v1950_v63, 0.0  ;;  %v1952_v45 = vpop.eup %1951 }
0x1288   :  { %1688 = vadd.xlane.f32.xlu1 %v1687_v2  ;;  %v1341_v57 = vmul.f32 0.6931472, %v1952_v45 }
0x128a   :  { %v1342_v13 = vsub.f32 %v2973_v50, %v1341_v57 }
0x12fb   :  { %v1689_v52 = vpop.xlane.xlu1 %1688 }
0x12fc   :  { %1953 = vlog2.f32 %v1689_v52  ;;  %v1704_v59 = vand.u32 2147483648, %v1689_v52  ;;  %v1702_v56 = vand.u32 2147483647, %v1689_v52  ;;  %vm1698_vm0 = vweird.f32 %v1689_v52 }
0x12fd   :  { %1955 = vrcp.f32 %v1689_v52 }
0x12fe   :  { %v1705_v9 = vor.u32 1.1754944e-38, %v1704_v59  ;;  %vm1703_vm13 = vcmp.eq.f32.partialorder %v1702_v56, 8.507059e+37  ;;  %1957 = vpow2.f32 %v1454_v29 }
0x1302   :  { %v1954_v53 = vpop.eup %1953 }
0x1303   :  { %v1956_v6 = vpop.eup %1955  ;;  %v1691_v28 = vmul.f32 0.6931472, %v1954_v53 }
0x1304   :  { %v1694_v51 = vmul.f32 %v1956_v6, %v1689_v52  ;;  %vm1699_vm11 = vweird.f32 %v1956_v6  ;;  %v1958_v38 = vpop.eup %1957 }
0x1305   :  { %v1692_v14 = vsub.f32 %v1684_v49, %v1691_v28  ;;  %vm1700_vm12 = vmor %vm1698_vm0, %vm1699_vm11  ;;  %v1456_v39 = vsel %vm1330_vm10, %v1958_v38, 0.0 }
0x1306   :  { %v1695_v15 = vsub.f32 1.0, %v1694_v51 }
0x1307   :  { %v1815_v16 = vsel %vm517_vm8, %v1342_v13, %v1692_v14 }
0x1308   :  { %v1696_v0 = vmul.f32 %v1956_v6, %v1695_v15  ;;  %1817 = vst.msk [vmem:[%s3081_s17] sm:$0x3] %vm1816_vm3, %v1815_v16 }
0x130a   :  { %v1697_v8 = vadd.f32 %v1956_v6, %v1696_v0 }
0x130c   :  { %v1701_v3 = vsel %vm1700_vm12, %v1956_v6, %v1697_v8 }
0x130d   :  { %v1706_v50 = vsel %vm1703_vm13, %v1705_v9, %v1701_v3 }
0x130e   :  { %v1707_v24 = vmul.f32 %v1950_v63, %v1706_v50 }
0x1310   :  { %v1709_v55 = vrot.slane %v1707_v24, 1 }
0x1312   :  { %1874 = vmatmul.msk.f32.vlgmr.msra.gmra.mxu2 %vm1358_vm14, %v1709_v55 }
0x1395   :  { %v1729_v23 = vpop.f32.mrf.mxu2 }
0x1396   :  { %1875 = vmatmul.msk.f32.vlgmr.msra.gmra.mxu0 %vm565_vm15, %v1729_v23 }
0x1413   :  { %v1752_v26 = vpop.f32.mrf.mxu0 }
0x1414   :  { %v1773_v33 = vadd.f32 %v1772_v54, %v1752_v26 }
0x1416   :  { %v1775_v25 = vadd.f32 %v1773_v33, %v3014_v12 }
0x1418   :  { %1879 = vmatmul.msk.f32.vlgmr.msrb.gmra.mxu2 %vm565_vm15, %v1775_v25 }
0x149b   :  { %v1796_v35 = vpop.f32.mrf.mxu2 }
0x149c   :  { %v1800_v36 = vrot.slane %v1796_v35, 7 }
0x149e   :  { %v1802_v37 = vsel %vm1328_vm9, -1e+30, %v1800_v36 }
0x149f   :  { %v1803_v18 = vsel %vm1680_vm7, %v1802_v37, -inf }
0x14a0   :  { %1804 = vmax.xlane.f32.xlu1 %v1803_v18 }
0x14a8   :  { %1457 = vadd.xlane.f32.xlu1 %v1456_v39 }
0x1513   :  { %v1805_v12 = vpop.xlane.xlu1 %1804 }
0x1514   :  { %v1806_v40 = vsub.f32 %v1802_v37, %v1805_v12 }
0x1516   :  { %v1807_v43 = vmul.f32 1.442695, %v1806_v40 }
0x1518   :  { %1959 = vpow2.f32 %v1807_v43 }
0x151b   :  { %v1458_v19 = vpop.xlane.xlu1 %1457 }
0x151c   :  { %1961 = vlog2.f32 %v1458_v19 }
0x151e   :  { %v1960_v17 = vpop.eup %1959 }
0x151f   :  { %v1809_v5 = vsel %vm1680_vm7, %v1960_v17, 0.0 }
0x1520   :  { %1810 = vadd.xlane.f32.xlu1 %v1809_v5 }
0x1522   :  { %v1962_v27 = vpop.eup %1961 }
0x1523   :  { %v1460_v21 = vmul.f32 0.6931472, %v1962_v27 }
0x1525   :  { %v1461_v62 = vsub.f32 %v1453_v34, %v1460_v21 }
0x1593   :  { %v1811_v20 = vpop.xlane.xlu1 %1810 }
0x1594   :  { %1963 = vlog2.f32 %v1811_v20 }
0x159a   :  { %v1964_v58 = vpop.eup %1963 }
0x159b   :  { %v1813_v60 = vmul.f32 0.6931472, %v1964_v58 }
0x159d   :  { %v1814_v1 = vsub.f32 %v1806_v40, %v1813_v60 }
0x159f   :  { %v1818_v4 = vsel %vm517_vm8, %v1461_v62, %v1814_v1 }
0x15a0   :  { %1819 = vst.msk [vmem:[%s3082_s18] sm:$0x3] %vm1816_vm3, %v1818_v4 }

</bundles_post_ra>
